<compile_context>
chip_gen: v6e
topology: v6e:2x2x1
jax: 0.10.0
libtpu: 0.0.40
codegen_flags: <defaults>
</compile_context>

<pallas_src>
import functools
import math

import jax
import jax.numpy as jnp
from jax import lax
from jax.experimental import pallas as pl
from jax.experimental.pallas import tpu as pltpu

BN_EPS = 1e-5
_VMEM_LIMIT = 64 * 1024 * 1024


def _round_up(x, m):
    return ((x + m - 1) // m) * m


# ---------------------------------------------------------------------------
# Pass 1: tiled conv-as-matmul + per-tile BN partial stats
# ---------------------------------------------------------------------------
def _matmul_stats_kernel(patches_ref, w_ref, y_ref, stats_ref, acc_ref, *, tk):
    """patches block: (TM, TK) bf16; w: full (K_pad, C_pad) bf16 (VMEM resident);
    y block: (TM, C_pad) bf16; stats block: (1, 2, C_pad) f32; acc: (TM, C_pad) f32."""
    k = pl.program_id(1)
    nk = pl.num_programs(1)

    @pl.when(k == 0)
    def _():
        acc_ref[...] = jnp.zeros_like(acc_ref)

    # Weight slab stays resident in VMEM for the whole M sweep; slice the k-tile.
    k0 = pl.multiple_of(k * tk, 128)
    w_tile = w_ref[pl.ds(k0, tk), :]                      # (TK, C_pad) bf16
    acc_ref[...] += jnp.dot(patches_ref[...], w_tile,
                            preferred_element_type=jnp.float32)

    @pl.when(k == nk - 1)
    def _():
        acc = acc_ref[...]
        y_ref[...] = acc.astype(y_ref.dtype)              # bf16 writeback
        # Per-M-tile partial BatchNorm statistics (reduced over the tile rows).
        # Padded (zero) rows/columns contribute exactly zero, so dividing by the
        # true M later gives correct statistics.  Direct lane-dense row stores.
        stats_ref[0, 0:1, :] = jnp.sum(acc, axis=0, keepdims=True)
        stats_ref[0, 1:2, :] = jnp.sum(acc * acc, axis=0, keepdims=True)


# ---------------------------------------------------------------------------
# Pass 2: lane-dense per-channel affine (BN or bias) + optional LeakyReLU
# ---------------------------------------------------------------------------
def _affine_act_kernel(y_ref, scale_ref, shift_ref, out_ref, *, slope):
    v = y_ref[...].astype(jnp.float32) * scale_ref[...] + shift_ref[...]
    if slope is not None:
        v = jnp.where(v > 0, v, slope * v)
    out_ref[...] = v.astype(out_ref.dtype)


# ---------------------------------------------------------------------------
# JAX glue
# ---------------------------------------------------------------------------
def _im2col_nhwc(x, kh, kw, stride, pad):
    """x: (N, H, W, C) bf16 -> patches (N*Hout*Wout, kh*kw*C), K ordered (kh, kw, c)."""
    n, h, w, c = x.shape
    h_out = (h + 2 * pad - kh) // stride + 1
    w_out = (w + 2 * pad - kw) // stride + 1
    x_pad = jnp.pad(x, ((0, 0), (pad, pad), (pad, pad), (0, 0)))
    taps = []
    for i in range(kh):
        for j in range(kw):
            taps.append(
                x_pad[:, i:i + stride * h_out:stride, j:j + stride * w_out:stride, :]
            )  # (N, Hout, Wout, C)
    p = jnp.stack(taps, axis=3)                        # (N, Hout, Wout, kh*kw, C)
    p = p.reshape(n * h_out * w_out, kh * kw * c)
    return p, h_out, w_out


def _choose_tiles(m, k, cout):
    """Per-layer tile sizes (the previous fixed 256/512 tiles left both passes
    overhead-bound on small layers and below the HBM roofline on large ones)."""
    c_pad = _round_up(cout, 128)
    k_pad = _round_up(k, 128)
    # K tile: cover the whole reduction when it fits (removes the reduction grid
    # axis and the accumulator init/finalize for most layers).
    tk = k_pad if k_pad <= 2048 else 2048
    k_pad = _round_up(k_pad, tk)

    m_pad8 = _round_up(m, 8)
    tm_target = 1024
    if m_pad8 <= 2 * 256:
        tm = m_pad8                       # too little work to split
    else:
        # Even number of ~tm_target tiles so v7x's two TensorCores both get work.
        n_tiles = 2 * max(1, math.ceil(m_pad8 / (2 * tm_target)))
        tm = _round_up(-(-m_pad8 // n_tiles), 16)
    m_pad = _round_up(m_pad8, tm)
    m_tiles = m_pad // tm

    # Pass-2 row tile: group pass-1 tiles up to ~2048 rows (pure streaming).
    g = max(1, min(m_tiles, 2048 // tm))
    while m_tiles % g:
        g -= 1
    tm2 = tm * g
    return tm, tk, tm2, m_pad, k_pad, c_pad


def _conv_block(x_nhwc, p, cfg, out_dtype):
    stride, use_bn, slope = cfg["stride"], cfg["use_bn"], cfg["slope"]
    w, b = p["w"], p["b"]
    cout, cin, kh, kw = w.shape
    n = x_nhwc.shape[0]
    cin_eff = x_nhwc.shape[-1]            # may exceed cin (lane-padded, zero lanes)

    # bf16 BEFORE im2col: halves the XLA-side tap-stack HBM traffic (no-op for
    # hidden layers, whose activations are already bf16).
    x_nhwc = x_nhwc.astype(jnp.bfloat16)
    patches, h_out, w_out = _im2col_nhwc(x_nhwc, kh, kw, stride, 1)
    m, k = patches.shape

    tm, tk, tm2, m_pad, k_pad, c_pad = _choose_tiles(m, k, cout)
    m_tiles, k_tiles = m_pad // tm, k_pad // tk

    patches_p = jnp.pad(patches, ((0, m_pad - m), (0, k_pad - k)))

    # Weight slab (K, Cout) laid out to match the (kh, kw, c) patch ordering;
    # zero-pad the cin axis up to the (possibly lane-padded) input channel count
    # and Cout/K to lane multiples.  Kept VMEM-resident across the M sweep.
    w2 = jnp.transpose(w, (2, 3, 1, 0))                       # (kh, kw, cin, cout)
    w2 = jnp.pad(w2, ((0, 0), (0, 0), (0, cin_eff - cin), (0, c_pad - cout)))
    w2 = w2.reshape(kh * kw * cin_eff, c_pad)
    w2 = jnp.pad(w2, ((0, k_pad - k), (0, 0))).astype(jnp.bfloat16)

    y, stats = pl.pallas_call(
        functools.partial(_matmul_stats_kernel, tk=tk),
        grid_spec=pltpu.PrefetchScalarGridSpec(
            num_scalar_prefetch=0,
            grid=(m_tiles, k_tiles),
            in_specs=[
                pl.BlockSpec((tm, tk), lambda i, kk: (i, kk)),
                pl.BlockSpec((k_pad, c_pad), lambda i, kk: (0, 0)),   # resident weight
            ],
            out_specs=[
                pl.BlockSpec((tm, c_pad), lambda i, kk: (i, 0)),
                pl.BlockSpec((1, 2, c_pad), lambda i, kk: (i, 0, 0)),
            ],
            scratch_shapes=[pltpu.VMEM((tm, c_pad), jnp.float32)],
        ),
        out_shape=[
            jax.ShapeDtypeStruct((m_pad, c_pad), jnp.bfloat16),       # bf16 y
            jax.ShapeDtypeStruct((m_tiles, 2, c_pad), jnp.float32),
        ],
        compiler_params=pltpu.CompilerParams(
            dimension_semantics=("parallel", "arbitrary"),
            vmem_limit_bytes=_VMEM_LIMIT),
        cost_estimate=pl.CostEstimate(
            flops=2 * m_pad * k_pad * c_pad,
            transcendentals=0,
            bytes_accessed=(m_pad * k_pad + k_pad * c_pad + m_pad * c_pad) * 2
                           + m_tiles * 2 * c_pad * 4),
    )(patches_p, w2)

    # Per-channel scale/shift computed once (hoisted out of the tile loop).
    if use_bn:
        total = jnp.sum(stats, axis=0)                    # (2, c_pad)
        mean = total[0] / m                               # true M; padded rows are 0
        # Guard against tiny negative variances from E[y^2] - mean^2 cancellation.
        var = jnp.maximum(total[1] / m - mean * mean, 0.0)
        inv = lax.rsqrt(var + BN_EPS)
        gamma_p = jnp.pad(p["gamma"].astype(jnp.float32), (0, c_pad - cout))
        beta_p = jnp.pad(p["beta"].astype(jnp.float32), (0, c_pad - cout))
        scale = gamma_p * inv
        shift = beta_p - mean * scale
        # Conv bias is mathematically absorbed by training-mode BatchNorm.
    else:
        scale = jnp.ones((c_pad,), jnp.float32)
        shift = jnp.pad(b.astype(jnp.float32), (0, c_pad - cout))

    scale = scale.reshape(1, c_pad)
    shift = shift.reshape(1, c_pad)

    act = pl.pallas_call(
        functools.partial(_affine_act_kernel, slope=slope),
        grid_spec=pltpu.PrefetchScalarGridSpec(
            num_scalar_prefetch=0,
            grid=(m_pad // tm2,),
            in_specs=[
                pl.BlockSpec((tm2, c_pad), lambda i: (i, 0)),
                pl.BlockSpec((1, c_pad), lambda i: (0, 0)),
                pl.BlockSpec((1, c_pad), lambda i: (0, 0)),
            ],
            out_specs=pl.BlockSpec((tm2, c_pad), lambda i: (i, 0)),
        ),
        out_shape=jax.ShapeDtypeStruct((m_pad, c_pad), out_dtype),
        compiler_params=pltpu.CompilerParams(
            dimension_semantics=("parallel",),
            vmem_limit_bytes=_VMEM_LIMIT),
    )(y, scale, shift)

    # Keep the channel axis padded between layers when Cout is already
    # lane-aligned (no slice/re-pad round trip); padded lanes are exactly zero
    # (gamma/beta/bias padding is zero), so they are inert downstream.
    keep_c = c_pad if cout == c_pad else cout
    if m_pad != m or keep_c != c_pad:
        act = act[:m, :keep_c]
    return act.reshape(n, h_out, w_out, keep_c)


def make_configs(in_channels, ndf, n_layers):
    """Mirror of NLayerDiscriminator.__init__'s layer sequence."""
    cfgs = [dict(cin=in_channels, cout=ndf, stride=2, use_bn=False, slope=0.2)]
    nf_mult = 1
    for nl in range(1, n_layers):
        nf_prev, nf_mult = nf_mult, min(2 ** nl, 8)
        cfgs.append(dict(cin=ndf * nf_prev, cout=ndf * nf_mult,
                         stride=2, use_bn=True, slope=0.2))
    nf_prev, nf_mult = nf_mult, min(2 ** n_layers, 8)
    cfgs.append(dict(cin=ndf * nf_prev, cout=ndf * nf_mult,
                     stride=1, use_bn=True, slope=0.2))
    cfgs.append(dict(cin=ndf * nf_mult, cout=1, stride=1, use_bn=False, slope=None))
    return tuple(cfgs)


def build_forward(configs):
    @jax.jit
    def forward(params, img_a, img_b):
        x = jnp.concatenate([img_a, img_b], axis=1)       # torch.cat((A, B), dim=1)
        x = jnp.transpose(x, (0, 2, 3, 1))                # NCHW -> NHWC once
        last = len(configs) - 1
        for idx, (p, cfg) in enumerate(zip(params, configs)):
            out_dtype = jnp.float32 if idx == last else jnp.bfloat16
            x = _conv_block(x, p, cfg, out_dtype)
        return jnp.transpose(x, (0, 3, 1, 2))             # back to NCHW once
    return forward


def init_params(key, configs):
    params = []
    for cfg in configs:
        key, kw_, kb_, kg_, kbt_ = jax.random.split(key, 5)
        p = {
            "w": 0.1 * jax.random.normal(kw_, (cfg["cout"], cfg["cin"], 4, 4), jnp.float32),
            "b": 0.05 * jax.random.normal(kb_, (cfg["cout"],), jnp.float32),
        }
        if cfg["use_bn"]:
            p["gamma"] = 1.0 + 0.1 * jax.random.normal(kg_, (cfg["cout"],), jnp.float32)
            p["beta"] = 0.1 * jax.random.normal(kbt_, (cfg["cout"],), jnp.float32)
        params.append(p)
    return params


def reference_forward(params, configs, img_a, img_b):
    """Pure-JAX mirror of the PyTorch module (train-mode BN).  Inputs/weights are
    quantized to bf16 exactly like the kernel path so the check isolates kernel
    correctness rather than the (intentional) bf16 operand cast."""
    x = jnp.concatenate([img_a, img_b], axis=1)
    for p, cfg in zip(params, configs):
        xq = x.astype(jnp.bfloat16).astype(jnp.float32)
        wq = p["w"].astype(jnp.bfloat16).astype(jnp.float32)
        y = lax.conv_general_dilated(
            xq, wq, (cfg["stride"], cfg["stride"]), ((1, 1), (1, 1)),
            dimension_numbers=("NCHW", "OIHW", "NCHW"),
            precision=lax.Precision.HIGHEST)
        y = y + p["b"].reshape(1, -1, 1, 1)
        if cfg["use_bn"]:
            mean = jnp.mean(y, axis=(0, 2, 3), keepdims=True)
            var = jnp.mean((y - mean) ** 2, axis=(0, 2, 3), keepdims=True)
            y = (y - mean) * lax.rsqrt(var + BN_EPS)
            y = y * p["gamma"].reshape(1, -1, 1, 1) + p["beta"].reshape(1, -1, 1, 1)
        if cfg["slope"] is not None:
            y = jnp.where(y > 0, y, cfg["slope"] * y)
        x = y
    return x


if __name__ == "__main__":
    key = jax.random.PRNGKey(0)
    N, C_IMG, H, W = 2, 3, 32, 32           # img_A / img_B: (2, 3, 32, 32)
    NDF, N_LAYERS = 16, 3                   # small ndf to keep the demo light

    configs = make_configs(2 * C_IMG, NDF, N_LAYERS)
    key, ka, kb, kp = jax.random.split(key, 4)
    img_a = jax.random.normal(ka, (N, C_IMG, H, W), jnp.float32)
    img_b = jax.random.normal(kb, (N, C_IMG, H, W), jnp.float32)
    params = init_params(kp, configs)

    forward = build_forward(configs)
    out = jax.block_until_ready(forward(params, img_a, img_b))

    ref = jax.block_until_ready(reference_forward(params, configs, img_a, img_b))
    assert out.shape == ref.shape == (N, 1, 2, 2), (out.shape, ref.shape)
    max_err = float(jnp.max(jnp.abs(out - ref)))
    # Tolerance reflects the intentional bf16 storage of the inter-pass y tensor
    # and of the activations between layers (the f32 reference keeps those in
    # f32); real kernel bugs show up as O(1) errors vs the ~4-unit output scale.
    assert jnp.allclose(out, ref, atol=5e-2, rtol=5e-2), f"mismatch vs reference: {max_err}"

    print("KERNEL_OK")
</pallas_src>

<mosaic_0001>
module attributes {stable_mosaic.version = 11 : i64} {
  func.func @_matmul_stats_kernel(%arg0: i32, %arg1: i32, %arg2: memref<512x128xbf16, #tpu.memory_space<vmem>>, %arg3: memref<128x128xbf16, #tpu.memory_space<vmem>>, %arg4: memref<512x128xbf16, #tpu.memory_space<vmem>>, %arg5: memref<1x2x128xf32, #tpu.memory_space<vmem>>, %arg6: memref<512x128xf32, #tpu.memory_space<vmem>>) attributes {dimension_semantics = [#tpu.dimension_semantics<parallel>, #tpu.dimension_semantics<arbitrary>], iteration_bounds = array<i64: 1, 1>, scalar_prefetch = 0 : i64, scratch_operands = 1 : i64, tpu.core_type = #tpu.core_type<tc>, window_params = [{transform_indices = @transform_0, window_bounds = array<i64: 512, 128>}, {pipeline_mode = #tpu.pipeline_mode<synchronous>, transform_indices = @transform_1, window_bounds = array<i64: 128, 128>}, {transform_indices = @transform_2, window_bounds = array<i64: 512, 128>}, {transform_indices = @transform_3, window_bounds = array<i64: 1, 2, 128>}]} {
    %c0_i32 = arith.constant 0 : i32
    %0 = arith.cmpi eq, %arg1, %c0_i32 : i32
    %1 = arith.extui %0 : i1 to i32
    %c0_i32_0 = arith.constant 0 : i32
    %2 = arith.cmpi ne, %1, %c0_i32_0 : i32
    scf.if %2 {
      %cst_9 = arith.constant 0.000000e+00 : f32
      %15 = vector.broadcast %cst_9 : f32 to vector<512x128xf32>
      %c0_10 = arith.constant 0 : index
      %c0_11 = arith.constant 0 : index
      %16 = vector.load %arg6[%c0_10, %c0_11] : memref<512x128xf32, #tpu.memory_space<vmem>>, vector<512x128xf32>
      tpu.vector_store %arg6[%c0_10, %c0_11], %15 {strides = array<i32>} : memref<512x128xf32, #tpu.memory_space<vmem>>, vector<512x128xf32>,
    } else {
    }
    %c128_i32 = arith.constant 128 : i32
    %3 = arith.muli %arg1, %c128_i32 : i32
    %4 = tpu.assume_multiple %3, 128 : i32
    %5 = arith.index_cast %4 : i32 to index
    %c0 = arith.constant 0 : index
    %6 = vector.load %arg3[%5, %c0] : memref<128x128xbf16, #tpu.memory_space<vmem>>, vector<128x128xbf16>
    %c0_1 = arith.constant 0 : index
    %c0_2 = arith.constant 0 : index
    %7 = vector.load %arg6[%c0_1, %c0_2] : memref<512x128xf32, #tpu.memory_space<vmem>>, vector<512x128xf32>
    %c0_3 = arith.constant 0 : index
    %c0_4 = arith.constant 0 : index
    %8 = vector.load %arg2[%c0_3, %c0_4] : memref<512x128xbf16, #tpu.memory_space<vmem>>, vector<512x128xbf16>
    %cst = arith.constant dense<0.000000e+00> : vector<512x128xf32>
    %9 = tpu.matmul %8, %6, %cst {dimension_numbers = #tpu.dot_dimension_numbers<[1], [0], [0], [1], [0, 0, 1, 1], [], []>} : vector<512x128xbf16>, vector<128x128xbf16>, vector<512x128xf32> -> vector<512x128xf32>
    %10 = arith.addf %7, %9 : vector<512x128xf32>
    %c0_5 = arith.constant 0 : index
    %c0_6 = arith.constant 0 : index
    %11 = vector.load %arg6[%c0_5, %c0_6] : memref<512x128xf32, #tpu.memory_space<vmem>>, vector<512x128xf32>
    tpu.vector_store %arg6[%c0_5, %c0_6], %10 {strides = array<i32>} : memref<512x128xf32, #tpu.memory_space<vmem>>, vector<512x128xf32>,
    %c0_i32_7 = arith.constant 0 : i32
    %12 = arith.cmpi eq, %arg1, %c0_i32_7 : i32
    %13 = arith.extui %12 : i1 to i32
    %c0_i32_8 = arith.constant 0 : i32
    %14 = arith.cmpi ne, %13, %c0_i32_8 : i32
    scf.if %14 {
      %c0_9 = arith.constant 0 : index
      %c0_10 = arith.constant 0 : index
      %15 = vector.load %arg6[%c0_9, %c0_10] : memref<512x128xf32, #tpu.memory_space<vmem>>, vector<512x128xf32>
      %16 = arith.truncf %15 : vector<512x128xf32> to vector<512x128xbf16>
      %c0_11 = arith.constant 0 : index
      %c0_12 = arith.constant 0 : index
      %17 = vector.load %arg4[%c0_11, %c0_12] : memref<512x128xbf16, #tpu.memory_space<vmem>>, vector<512x128xbf16>
      tpu.vector_store %arg4[%c0_11, %c0_12], %16 {strides = array<i32>} : memref<512x128xbf16, #tpu.memory_space<vmem>>, vector<512x128xbf16>,
      %cst_13 = arith.constant dense<0.000000e+00> : vector<128xf32>
      %18 = vector.multi_reduction <add>, %15, %cst_13 [0] : vector<512x128xf32> to vector<128xf32>
      %19 = vector.shape_cast %18 : vector<128xf32> to vector<1x128xf32>
      %c0_14 = arith.constant 0 : index
      %c0_15 = arith.constant 0 : index
      %c0_16 = arith.constant 0 : index
      %20 = vector.load %arg5[%c0_14, %c0_15, %c0_16] : memref<1x2x128xf32, #tpu.memory_space<vmem>>, vector<1x1x128xf32>
      %21 = vector.shape_cast %20 : vector<1x1x128xf32> to vector<1x128xf32>
      %22 = vector.shape_cast %19 : vector<1x128xf32> to vector<1x1x128xf32>
      tpu.vector_store %arg5[%c0_14, %c0_15, %c0_16], %22 {strides = array<i32>} : memref<1x2x128xf32, #tpu.memory_space<vmem>>, vector<1x1x128xf32>,
      %23 = arith.mulf %15, %15 : vector<512x128xf32>
      %cst_17 = arith.constant dense<0.000000e+00> : vector<128xf32>
      %24 = vector.multi_reduction <add>, %23, %cst_17 [0] : vector<512x128xf32> to vector<128xf32>
      %25 = vector.shape_cast %24 : vector<128xf32> to vector<1x128xf32>
      %c0_18 = arith.constant 0 : index
      %c1 = arith.constant 1 : index
      %c0_19 = arith.constant 0 : index
      %26 = vector.load %arg5[%c0_18, %c1, %c0_19] : memref<1x2x128xf32, #tpu.memory_space<vmem>>, vector<1x1x128xf32>
      %27 = vector.shape_cast %26 : vector<1x1x128xf32> to vector<1x128xf32>
      %28 = vector.shape_cast %25 : vector<1x128xf32> to vector<1x1x128xf32>
      tpu.vector_store %arg5[%c0_18, %c1, %c0_19], %28 {strides = array<i32>} : memref<1x2x128xf32, #tpu.memory_space<vmem>>, vector<1x1x128xf32>,
    } else {
    }
    return
  }
  func.func @transform_0(%arg0: i32, %arg1: i32) -> (i32, i32) {
    %c0_i32 = arith.constant 0 : i32
    return %arg0, %arg1 : i32, i32
  }
  func.func @transform_1(%arg0: i32, %arg1: i32) -> (i32, i32) {
    %c0_i32 = arith.constant 0 : i32
    %c0_i32_0 = arith.constant 0 : i32
    %c0_i32_1 = arith.constant 0 : i32
    return %c0_i32, %c0_i32_0 : i32, i32
  }
  func.func @transform_2(%arg0: i32, %arg1: i32) -> (i32, i32) {
    %c0_i32 = arith.constant 0 : i32
    %c0_i32_0 = arith.constant 0 : i32
    return %arg0, %c0_i32 : i32, i32
  }
  func.func @transform_3(%arg0: i32, %arg1: i32) -> (i32, i32, i32) {
    %c0_i32 = arith.constant 0 : i32
    %c0_i32_0 = arith.constant 0 : i32
    %c0_i32_1 = arith.constant 0 : i32
    return %arg0, %c0_i32, %c0_i32_0 : i32, i32, i32
  }
}

module attributes {stable_mosaic.version = 11 : i64} {
  func.func @_affine_act_kernel(%arg0: i32, %arg1: memref<512x128xbf16, #tpu.memory_space<vmem>>, %arg2: memref<1x128xf32, #tpu.memory_space<vmem>>, %arg3: memref<1x128xf32, #tpu.memory_space<vmem>>, %arg4: memref<512x128xbf16, #tpu.memory_space<vmem>>) attributes {dimension_semantics = [#tpu.dimension_semantics<parallel>], iteration_bounds = array<i64: 1>, scalar_prefetch = 0 : i64, scratch_operands = 0 : i64, tpu.core_type = #tpu.core_type<tc>, window_params = [{transform_indices = @transform_0, window_bounds = array<i64: 512, 128>}, {pipeline_mode = #tpu.pipeline_mode<synchronous>, transform_indices = @transform_1, window_bounds = array<i64: 1, 128>}, {pipeline_mode = #tpu.pipeline_mode<synchronous>, transform_indices = @transform_2, window_bounds = array<i64: 1, 128>}, {transform_indices = @transform_3, window_bounds = array<i64: 512, 128>}]} {
    %c0 = arith.constant 0 : index
    %c0_0 = arith.constant 0 : index
    %0 = vector.load %arg1[%c0, %c0_0] : memref<512x128xbf16, #tpu.memory_space<vmem>>, vector<512x128xbf16>
    %1 = arith.extf %0 : vector<512x128xbf16> to vector<512x128xf32>
    %c0_1 = arith.constant 0 : index
    %c0_2 = arith.constant 0 : index
    %2 = vector.load %arg2[%c0_1, %c0_2] : memref<1x128xf32, #tpu.memory_space<vmem>>, vector<1x128xf32>
    %3 = vector.broadcast %2 : vector<1x128xf32> to vector<512x128xf32>
    %4 = arith.mulf %1, %3 : vector<512x128xf32>
    %c0_3 = arith.constant 0 : index
    %c0_4 = arith.constant 0 : index
    %5 = vector.load %arg3[%c0_3, %c0_4] : memref<1x128xf32, #tpu.memory_space<vmem>>, vector<1x128xf32>
    %6 = vector.broadcast %5 : vector<1x128xf32> to vector<512x128xf32>
    %7 = arith.addf %4, %6 : vector<512x128xf32>
    %cst = arith.constant 0.000000e+00 : f32
    %8 = vector.broadcast %cst : f32 to vector<512x128xf32>
    %9 = arith.cmpf ogt, %7, %8 : vector<512x128xf32>
    %cst_5 = arith.constant 2.000000e-01 : f32
    %10 = vector.broadcast %cst_5 : f32 to vector<512x128xf32>
    %11 = arith.mulf %10, %7 : vector<512x128xf32>
    %12 = arith.select %9, %7, %11 : vector<512x128xi1>, vector<512x128xf32>
    %13 = arith.truncf %12 : vector<512x128xf32> to vector<512x128xbf16>
    %c0_6 = arith.constant 0 : index
    %c0_7 = arith.constant 0 : index
    %14 = vector.load %arg4[%c0_6, %c0_7] : memref<512x128xbf16, #tpu.memory_space<vmem>>, vector<512x128xbf16>
    tpu.vector_store %arg4[%c0_6, %c0_7], %13 {strides = array<i32>} : memref<512x128xbf16, #tpu.memory_space<vmem>>, vector<512x128xbf16>,
    return
  }
  func.func @transform_0(%arg0: i32) -> (i32, i32) {
    %c0_i32 = arith.constant 0 : i32
    %c0_i32_0 = arith.constant 0 : i32
    return %arg0, %c0_i32 : i32, i32
  }
  func.func @transform_1(%arg0: i32) -> (i32, i32) {
    %c0_i32 = arith.constant 0 : i32
    %c0_i32_0 = arith.constant 0 : i32
    %c0_i32_1 = arith.constant 0 : i32
    return %c0_i32, %c0_i32_0 : i32, i32
  }
  func.func @transform_2(%arg0: i32) -> (i32, i32) {
    %c0_i32 = arith.constant 0 : i32
    %c0_i32_0 = arith.constant 0 : i32
    %c0_i32_1 = arith.constant 0 : i32
    return %c0_i32, %c0_i32_0 : i32, i32
  }
  func.func @transform_3(%arg0: i32) -> (i32, i32) {
    %c0_i32 = arith.constant 0 : i32
    %c0_i32_0 = arith.constant 0 : i32
    return %arg0, %c0_i32 : i32, i32
  }
}

module attributes {stable_mosaic.version = 11 : i64} {
  func.func @_matmul_stats_kernel(%arg0: i32, %arg1: i32, %arg2: memref<128x256xbf16, #tpu.memory_space<vmem>>, %arg3: memref<256x128xbf16, #tpu.memory_space<vmem>>, %arg4: memref<128x128xbf16, #tpu.memory_space<vmem>>, %arg5: memref<1x2x128xf32, #tpu.memory_space<vmem>>, %arg6: memref<128x128xf32, #tpu.memory_space<vmem>>) attributes {dimension_semantics = [#tpu.dimension_semantics<parallel>, #tpu.dimension_semantics<arbitrary>], iteration_bounds = array<i64: 1, 1>, scalar_prefetch = 0 : i64, scratch_operands = 1 : i64, tpu.core_type = #tpu.core_type<tc>, window_params = [{transform_indices = @transform_0, window_bounds = array<i64: 128, 256>}, {pipeline_mode = #tpu.pipeline_mode<synchronous>, transform_indices = @transform_1, window_bounds = array<i64: 256, 128>}, {transform_indices = @transform_2, window_bounds = array<i64: 128, 128>}, {transform_indices = @transform_3, window_bounds = array<i64: 1, 2, 128>}]} {
    %c0_i32 = arith.constant 0 : i32
    %0 = arith.cmpi eq, %arg1, %c0_i32 : i32
    %1 = arith.extui %0 : i1 to i32
    %c0_i32_0 = arith.constant 0 : i32
    %2 = arith.cmpi ne, %1, %c0_i32_0 : i32
    scf.if %2 {
      %cst_9 = arith.constant 0.000000e+00 : f32
      %15 = vector.broadcast %cst_9 : f32 to vector<128x128xf32>
      %c0_10 = arith.constant 0 : index
      %c0_11 = arith.constant 0 : index
      %16 = vector.load %arg6[%c0_10, %c0_11] : memref<128x128xf32, #tpu.memory_space<vmem>>, vector<128x128xf32>
      tpu.vector_store %arg6[%c0_10, %c0_11], %15 {strides = array<i32>} : memref<128x128xf32, #tpu.memory_space<vmem>>, vector<128x128xf32>,
    } else {
    }
    %c256_i32 = arith.constant 256 : i32
    %3 = arith.muli %arg1, %c256_i32 : i32
    %4 = tpu.assume_multiple %3, 128 : i32
    %5 = arith.index_cast %4 : i32 to index
    %c0 = arith.constant 0 : index
    %6 = vector.load %arg3[%5, %c0] : memref<256x128xbf16, #tpu.memory_space<vmem>>, vector<256x128xbf16>
    %c0_1 = arith.constant 0 : index
    %c0_2 = arith.constant 0 : index
    %7 = vector.load %arg6[%c0_1, %c0_2] : memref<128x128xf32, #tpu.memory_space<vmem>>, vector<128x128xf32>
    %c0_3 = arith.constant 0 : index
    %c0_4 = arith.constant 0 : index
    %8 = vector.load %arg2[%c0_3, %c0_4] : memref<128x256xbf16, #tpu.memory_space<vmem>>, vector<128x256xbf16>
    %cst = arith.constant dense<0.000000e+00> : vector<128x128xf32>
    %9 = tpu.matmul %8, %6, %cst {dimension_numbers = #tpu.dot_dimension_numbers<[1], [0], [0], [1], [0, 0, 1, 1], [], []>} : vector<128x256xbf16>, vector<256x128xbf16>, vector<128x128xf32> -> vector<128x128xf32>
    %10 = arith.addf %7, %9 : vector<128x128xf32>
    %c0_5 = arith.constant 0 : index
    %c0_6 = arith.constant 0 : index
    %11 = vector.load %arg6[%c0_5, %c0_6] : memref<128x128xf32, #tpu.memory_space<vmem>>, vector<128x128xf32>
    tpu.vector_store %arg6[%c0_5, %c0_6], %10 {strides = array<i32>} : memref<128x128xf32, #tpu.memory_space<vmem>>, vector<128x128xf32>,
    %c0_i32_7 = arith.constant 0 : i32
    %12 = arith.cmpi eq, %arg1, %c0_i32_7 : i32
    %13 = arith.extui %12 : i1 to i32
    %c0_i32_8 = arith.constant 0 : i32
    %14 = arith.cmpi ne, %13, %c0_i32_8 : i32
    scf.if %14 {
      %c0_9 = arith.constant 0 : index
      %c0_10 = arith.constant 0 : index
      %15 = vector.load %arg6[%c0_9, %c0_10] : memref<128x128xf32, #tpu.memory_space<vmem>>, vector<128x128xf32>
      %16 = arith.truncf %15 : vector<128x128xf32> to vector<128x128xbf16>
      %c0_11 = arith.constant 0 : index
      %c0_12 = arith.constant 0 : index
      %17 = vector.load %arg4[%c0_11, %c0_12] : memref<128x128xbf16, #tpu.memory_space<vmem>>, vector<128x128xbf16>
      tpu.vector_store %arg4[%c0_11, %c0_12], %16 {strides = array<i32>} : memref<128x128xbf16, #tpu.memory_space<vmem>>, vector<128x128xbf16>,
      %cst_13 = arith.constant dense<0.000000e+00> : vector<128xf32>
      %18 = vector.multi_reduction <add>, %15, %cst_13 [0] : vector<128x128xf32> to vector<128xf32>
      %19 = vector.shape_cast %18 : vector<128xf32> to vector<1x128xf32>
      %c0_14 = arith.constant 0 : index
      %c0_15 = arith.constant 0 : index
      %c0_16 = arith.constant 0 : index
      %20 = vector.load %arg5[%c0_14, %c0_15, %c0_16] : memref<1x2x128xf32, #tpu.memory_space<vmem>>, vector<1x1x128xf32>
      %21 = vector.shape_cast %20 : vector<1x1x128xf32> to vector<1x128xf32>
      %22 = vector.shape_cast %19 : vector<1x128xf32> to vector<1x1x128xf32>
      tpu.vector_store %arg5[%c0_14, %c0_15, %c0_16], %22 {strides = array<i32>} : memref<1x2x128xf32, #tpu.memory_space<vmem>>, vector<1x1x128xf32>,
      %23 = arith.mulf %15, %15 : vector<128x128xf32>
      %cst_17 = arith.constant dense<0.000000e+00> : vector<128xf32>
      %24 = vector.multi_reduction <add>, %23, %cst_17 [0] : vector<128x128xf32> to vector<128xf32>
      %25 = vector.shape_cast %24 : vector<128xf32> to vector<1x128xf32>
      %c0_18 = arith.constant 0 : index
      %c1 = arith.constant 1 : index
      %c0_19 = arith.constant 0 : index
      %26 = vector.load %arg5[%c0_18, %c1, %c0_19] : memref<1x2x128xf32, #tpu.memory_space<vmem>>, vector<1x1x128xf32>
      %27 = vector.shape_cast %26 : vector<1x1x128xf32> to vector<1x128xf32>
      %28 = vector.shape_cast %25 : vector<1x128xf32> to vector<1x1x128xf32>
      tpu.vector_store %arg5[%c0_18, %c1, %c0_19], %28 {strides = array<i32>} : memref<1x2x128xf32, #tpu.memory_space<vmem>>, vector<1x1x128xf32>,
    } else {
    }
    return
  }
  func.func @transform_0(%arg0: i32, %arg1: i32) -> (i32, i32) {
    %c0_i32 = arith.constant 0 : i32
    return %arg0, %arg1 : i32, i32
  }
  func.func @transform_1(%arg0: i32, %arg1: i32) -> (i32, i32) {
    %c0_i32 = arith.constant 0 : i32
    %c0_i32_0 = arith.constant 0 : i32
    %c0_i32_1 = arith.constant 0 : i32
    return %c0_i32, %c0_i32_0 : i32, i32
  }
  func.func @transform_2(%arg0: i32, %arg1: i32) -> (i32, i32) {
    %c0_i32 = arith.constant 0 : i32
    %c0_i32_0 = arith.constant 0 : i32
    return %arg0, %c0_i32 : i32, i32
  }
  func.func @transform_3(%arg0: i32, %arg1: i32) -> (i32, i32, i32) {
    %c0_i32 = arith.constant 0 : i32
    %c0_i32_0 = arith.constant 0 : i32
    %c0_i32_1 = arith.constant 0 : i32
    return %arg0, %c0_i32, %c0_i32_0 : i32, i32, i32
  }
}

module attributes {stable_mosaic.version = 11 : i64} {
  func.func @_affine_act_kernel(%arg0: i32, %arg1: memref<128x128xbf16, #tpu.memory_space<vmem>>, %arg2: memref<1x128xf32, #tpu.memory_space<vmem>>, %arg3: memref<1x128xf32, #tpu.memory_space<vmem>>, %arg4: memref<128x128xbf16, #tpu.memory_space<vmem>>) attributes {dimension_semantics = [#tpu.dimension_semantics<parallel>], iteration_bounds = array<i64: 1>, scalar_prefetch = 0 : i64, scratch_operands = 0 : i64, tpu.core_type = #tpu.core_type<tc>, window_params = [{transform_indices = @transform_0, window_bounds = array<i64: 128, 128>}, {pipeline_mode = #tpu.pipeline_mode<synchronous>, transform_indices = @transform_1, window_bounds = array<i64: 1, 128>}, {pipeline_mode = #tpu.pipeline_mode<synchronous>, transform_indices = @transform_2, window_bounds = array<i64: 1, 128>}, {transform_indices = @transform_3, window_bounds = array<i64: 128, 128>}]} {
    %c0 = arith.constant 0 : index
    %c0_0 = arith.constant 0 : index
    %0 = vector.load %arg1[%c0, %c0_0] : memref<128x128xbf16, #tpu.memory_space<vmem>>, vector<128x128xbf16>
    %1 = arith.extf %0 : vector<128x128xbf16> to vector<128x128xf32>
    %c0_1 = arith.constant 0 : index
    %c0_2 = arith.constant 0 : index
    %2 = vector.load %arg2[%c0_1, %c0_2] : memref<1x128xf32, #tpu.memory_space<vmem>>, vector<1x128xf32>
    %3 = vector.broadcast %2 : vector<1x128xf32> to vector<128x128xf32>
    %4 = arith.mulf %1, %3 : vector<128x128xf32>
    %c0_3 = arith.constant 0 : index
    %c0_4 = arith.constant 0 : index
    %5 = vector.load %arg3[%c0_3, %c0_4] : memref<1x128xf32, #tpu.memory_space<vmem>>, vector<1x128xf32>
    %6 = vector.broadcast %5 : vector<1x128xf32> to vector<128x128xf32>
    %7 = arith.addf %4, %6 : vector<128x128xf32>
    %cst = arith.constant 0.000000e+00 : f32
    %8 = vector.broadcast %cst : f32 to vector<128x128xf32>
    %9 = arith.cmpf ogt, %7, %8 : vector<128x128xf32>
    %cst_5 = arith.constant 2.000000e-01 : f32
    %10 = vector.broadcast %cst_5 : f32 to vector<128x128xf32>
    %11 = arith.mulf %10, %7 : vector<128x128xf32>
    %12 = arith.select %9, %7, %11 : vector<128x128xi1>, vector<128x128xf32>
    %13 = arith.truncf %12 : vector<128x128xf32> to vector<128x128xbf16>
    %c0_6 = arith.constant 0 : index
    %c0_7 = arith.constant 0 : index
    %14 = vector.load %arg4[%c0_6, %c0_7] : memref<128x128xbf16, #tpu.memory_space<vmem>>, vector<128x128xbf16>
    tpu.vector_store %arg4[%c0_6, %c0_7], %13 {strides = array<i32>} : memref<128x128xbf16, #tpu.memory_space<vmem>>, vector<128x128xbf16>,
    return
  }
  func.func @transform_0(%arg0: i32) -> (i32, i32) {
    %c0_i32 = arith.constant 0 : i32
    %c0_i32_0 = arith.constant 0 : i32
    return %arg0, %c0_i32 : i32, i32
  }
  func.func @transform_1(%arg0: i32) -> (i32, i32) {
    %c0_i32 = arith.constant 0 : i32
    %c0_i32_0 = arith.constant 0 : i32
    %c0_i32_1 = arith.constant 0 : i32
    return %c0_i32, %c0_i32_0 : i32, i32
  }
  func.func @transform_2(%arg0: i32) -> (i32, i32) {
    %c0_i32 = arith.constant 0 : i32
    %c0_i32_0 = arith.constant 0 : i32
    %c0_i32_1 = arith.constant 0 : i32
    return %c0_i32, %c0_i32_0 : i32, i32
  }
  func.func @transform_3(%arg0: i32) -> (i32, i32) {
    %c0_i32 = arith.constant 0 : i32
    %c0_i32_0 = arith.constant 0 : i32
    return %arg0, %c0_i32 : i32, i32
  }
}

module attributes {stable_mosaic.version = 11 : i64} {
  func.func @_matmul_stats_kernel(%arg0: i32, %arg1: i32, %arg2: memref<32x512xbf16, #tpu.memory_space<vmem>>, %arg3: memref<512x128xbf16, #tpu.memory_space<vmem>>, %arg4: memref<32x128xbf16, #tpu.memory_space<vmem>>, %arg5: memref<1x2x128xf32, #tpu.memory_space<vmem>>, %arg6: memref<32x128xf32, #tpu.memory_space<vmem>>) attributes {dimension_semantics = [#tpu.dimension_semantics<parallel>, #tpu.dimension_semantics<arbitrary>], iteration_bounds = array<i64: 1, 1>, scalar_prefetch = 0 : i64, scratch_operands = 1 : i64, tpu.core_type = #tpu.core_type<tc>, window_params = [{transform_indices = @transform_0, window_bounds = array<i64: 32, 512>}, {pipeline_mode = #tpu.pipeline_mode<synchronous>, transform_indices = @transform_1, window_bounds = array<i64: 512, 128>}, {transform_indices = @transform_2, window_bounds = array<i64: 32, 128>}, {transform_indices = @transform_3, window_bounds = array<i64: 1, 2, 128>}]} {
    %c0_i32 = arith.constant 0 : i32
    %0 = arith.cmpi eq, %arg1, %c0_i32 : i32
    %1 = arith.extui %0 : i1 to i32
    %c0_i32_0 = arith.constant 0 : i32
    %2 = arith.cmpi ne, %1, %c0_i32_0 : i32
    scf.if %2 {
      %cst_9 = arith.constant 0.000000e+00 : f32
      %15 = vector.broadcast %cst_9 : f32 to vector<32x128xf32>
      %c0_10 = arith.constant 0 : index
      %c0_11 = arith.constant 0 : index
      %16 = vector.load %arg6[%c0_10, %c0_11] : memref<32x128xf32, #tpu.memory_space<vmem>>, vector<32x128xf32>
      tpu.vector_store %arg6[%c0_10, %c0_11], %15 {strides = array<i32>} : memref<32x128xf32, #tpu.memory_space<vmem>>, vector<32x128xf32>,
    } else {
    }
    %c512_i32 = arith.constant 512 : i32
    %3 = arith.muli %arg1, %c512_i32 : i32
    %4 = tpu.assume_multiple %3, 128 : i32
    %5 = arith.index_cast %4 : i32 to index
    %c0 = arith.constant 0 : index
    %6 = vector.load %arg3[%5, %c0] : memref<512x128xbf16, #tpu.memory_space<vmem>>, vector<512x128xbf16>
    %c0_1 = arith.constant 0 : index
    %c0_2 = arith.constant 0 : index
    %7 = vector.load %arg6[%c0_1, %c0_2] : memref<32x128xf32, #tpu.memory_space<vmem>>, vector<32x128xf32>
    %c0_3 = arith.constant 0 : index
    %c0_4 = arith.constant 0 : index
    %8 = vector.load %arg2[%c0_3, %c0_4] : memref<32x512xbf16, #tpu.memory_space<vmem>>, vector<32x512xbf16>
    %cst = arith.constant dense<0.000000e+00> : vector<32x128xf32>
    %9 = tpu.matmul %8, %6, %cst {dimension_numbers = #tpu.dot_dimension_numbers<[1], [0], [0], [1], [0, 0, 1, 1], [], []>} : vector<32x512xbf16>, vector<512x128xbf16>, vector<32x128xf32> -> vector<32x128xf32>
    %10 = arith.addf %7, %9 : vector<32x128xf32>
    %c0_5 = arith.constant 0 : index
    %c0_6 = arith.constant 0 : index
    %11 = vector.load %arg6[%c0_5, %c0_6] : memref<32x128xf32, #tpu.memory_space<vmem>>, vector<32x128xf32>
    tpu.vector_store %arg6[%c0_5, %c0_6], %10 {strides = array<i32>} : memref<32x128xf32, #tpu.memory_space<vmem>>, vector<32x128xf32>,
    %c0_i32_7 = arith.constant 0 : i32
    %12 = arith.cmpi eq, %arg1, %c0_i32_7 : i32
    %13 = arith.extui %12 : i1 to i32
    %c0_i32_8 = arith.constant 0 : i32
    %14 = arith.cmpi ne, %13, %c0_i32_8 : i32
    scf.if %14 {
      %c0_9 = arith.constant 0 : index
      %c0_10 = arith.constant 0 : index
      %15 = vector.load %arg6[%c0_9, %c0_10] : memref<32x128xf32, #tpu.memory_space<vmem>>, vector<32x128xf32>
      %16 = arith.truncf %15 : vector<32x128xf32> to vector<32x128xbf16>
      %c0_11 = arith.constant 0 : index
      %c0_12 = arith.constant 0 : index
      %17 = vector.load %arg4[%c0_11, %c0_12] : memref<32x128xbf16, #tpu.memory_space<vmem>>, vector<32x128xbf16>
      tpu.vector_store %arg4[%c0_11, %c0_12], %16 {strides = array<i32>} : memref<32x128xbf16, #tpu.memory_space<vmem>>, vector<32x128xbf16>,
      %cst_13 = arith.constant dense<0.000000e+00> : vector<128xf32>
      %18 = vector.multi_reduction <add>, %15, %cst_13 [0] : vector<32x128xf32> to vector<128xf32>
      %19 = vector.shape_cast %18 : vector<128xf32> to vector<1x128xf32>
      %c0_14 = arith.constant 0 : index
      %c0_15 = arith.constant 0 : index
      %c0_16 = arith.constant 0 : index
      %20 = vector.load %arg5[%c0_14, %c0_15, %c0_16] : memref<1x2x128xf32, #tpu.memory_space<vmem>>, vector<1x1x128xf32>
      %21 = vector.shape_cast %20 : vector<1x1x128xf32> to vector<1x128xf32>
      %22 = vector.shape_cast %19 : vector<1x128xf32> to vector<1x1x128xf32>
      tpu.vector_store %arg5[%c0_14, %c0_15, %c0_16], %22 {strides = array<i32>} : memref<1x2x128xf32, #tpu.memory_space<vmem>>, vector<1x1x128xf32>,
      %23 = arith.mulf %15, %15 : vector<32x128xf32>
      %cst_17 = arith.constant dense<0.000000e+00> : vector<128xf32>
      %24 = vector.multi_reduction <add>, %23, %cst_17 [0] : vector<32x128xf32> to vector<128xf32>
      %25 = vector.shape_cast %24 : vector<128xf32> to vector<1x128xf32>
      %c0_18 = arith.constant 0 : index
      %c1 = arith.constant 1 : index
      %c0_19 = arith.constant 0 : index
      %26 = vector.load %arg5[%c0_18, %c1, %c0_19] : memref<1x2x128xf32, #tpu.memory_space<vmem>>, vector<1x1x128xf32>
      %27 = vector.shape_cast %26 : vector<1x1x128xf32> to vector<1x128xf32>
      %28 = vector.shape_cast %25 : vector<1x128xf32> to vector<1x1x128xf32>
      tpu.vector_store %arg5[%c0_18, %c1, %c0_19], %28 {strides = array<i32>} : memref<1x2x128xf32, #tpu.memory_space<vmem>>, vector<1x1x128xf32>,
    } else {
    }
    return
  }
  func.func @transform_0(%arg0: i32, %arg1: i32) -> (i32, i32) {
    %c0_i32 = arith.constant 0 : i32
    return %arg0, %arg1 : i32, i32
  }
  func.func @transform_1(%arg0: i32, %arg1: i32) -> (i32, i32) {
    %c0_i32 = arith.constant 0 : i32
    %c0_i32_0 = arith.constant 0 : i32
    %c0_i32_1 = arith.constant 0 : i32
    return %c0_i32, %c0_i32_0 : i32, i32
  }
  func.func @transform_2(%arg0: i32, %arg1: i32) -> (i32, i32) {
    %c0_i32 = arith.constant 0 : i32
    %c0_i32_0 = arith.constant 0 : i32
    return %arg0, %c0_i32 : i32, i32
  }
  func.func @transform_3(%arg0: i32, %arg1: i32) -> (i32, i32, i32) {
    %c0_i32 = arith.constant 0 : i32
    %c0_i32_0 = arith.constant 0 : i32
    %c0_i32_1 = arith.constant 0 : i32
    return %arg0, %c0_i32, %c0_i32_0 : i32, i32, i32
  }
}

module attributes {stable_mosaic.version = 11 : i64} {
  func.func @_affine_act_kernel(%arg0: i32, %arg1: memref<32x128xbf16, #tpu.memory_space<vmem>>, %arg2: memref<1x128xf32, #tpu.memory_space<vmem>>, %arg3: memref<1x128xf32, #tpu.memory_space<vmem>>, %arg4: memref<32x128xbf16, #tpu.memory_space<vmem>>) attributes {dimension_semantics = [#tpu.dimension_semantics<parallel>], iteration_bounds = array<i64: 1>, scalar_prefetch = 0 : i64, scratch_operands = 0 : i64, tpu.core_type = #tpu.core_type<tc>, window_params = [{transform_indices = @transform_0, window_bounds = array<i64: 32, 128>}, {pipeline_mode = #tpu.pipeline_mode<synchronous>, transform_indices = @transform_1, window_bounds = array<i64: 1, 128>}, {pipeline_mode = #tpu.pipeline_mode<synchronous>, transform_indices = @transform_2, window_bounds = array<i64: 1, 128>}, {transform_indices = @transform_3, window_bounds = array<i64: 32, 128>}]} {
    %c0 = arith.constant 0 : index
    %c0_0 = arith.constant 0 : index
    %0 = vector.load %arg1[%c0, %c0_0] : memref<32x128xbf16, #tpu.memory_space<vmem>>, vector<32x128xbf16>
    %1 = arith.extf %0 : vector<32x128xbf16> to vector<32x128xf32>
    %c0_1 = arith.constant 0 : index
    %c0_2 = arith.constant 0 : index
    %2 = vector.load %arg2[%c0_1, %c0_2] : memref<1x128xf32, #tpu.memory_space<vmem>>, vector<1x128xf32>
    %3 = vector.broadcast %2 : vector<1x128xf32> to vector<32x128xf32>
    %4 = arith.mulf %1, %3 : vector<32x128xf32>
    %c0_3 = arith.constant 0 : index
    %c0_4 = arith.constant 0 : index
    %5 = vector.load %arg3[%c0_3, %c0_4] : memref<1x128xf32, #tpu.memory_space<vmem>>, vector<1x128xf32>
    %6 = vector.broadcast %5 : vector<1x128xf32> to vector<32x128xf32>
    %7 = arith.addf %4, %6 : vector<32x128xf32>
    %cst = arith.constant 0.000000e+00 : f32
    %8 = vector.broadcast %cst : f32 to vector<32x128xf32>
    %9 = arith.cmpf ogt, %7, %8 : vector<32x128xf32>
    %cst_5 = arith.constant 2.000000e-01 : f32
    %10 = vector.broadcast %cst_5 : f32 to vector<32x128xf32>
    %11 = arith.mulf %10, %7 : vector<32x128xf32>
    %12 = arith.select %9, %7, %11 : vector<32x128xi1>, vector<32x128xf32>
    %13 = arith.truncf %12 : vector<32x128xf32> to vector<32x128xbf16>
    %c0_6 = arith.constant 0 : index
    %c0_7 = arith.constant 0 : index
    %14 = vector.load %arg4[%c0_6, %c0_7] : memref<32x128xbf16, #tpu.memory_space<vmem>>, vector<32x128xbf16>
    tpu.vector_store %arg4[%c0_6, %c0_7], %13 {strides = array<i32>} : memref<32x128xbf16, #tpu.memory_space<vmem>>, vector<32x128xbf16>,
    return
  }
  func.func @transform_0(%arg0: i32) -> (i32, i32) {
    %c0_i32 = arith.constant 0 : i32
    %c0_i32_0 = arith.constant 0 : i32
    return %arg0, %c0_i32 : i32, i32
  }
  func.func @transform_1(%arg0: i32) -> (i32, i32) {
    %c0_i32 = arith.constant 0 : i32
    %c0_i32_0 = arith.constant 0 : i32
    %c0_i32_1 = arith.constant 0 : i32
    return %c0_i32, %c0_i32_0 : i32, i32
  }
  func.func @transform_2(%arg0: i32) -> (i32, i32) {
    %c0_i32 = arith.constant 0 : i32
    %c0_i32_0 = arith.constant 0 : i32
    %c0_i32_1 = arith.constant 0 : i32
    return %c0_i32, %c0_i32_0 : i32, i32
  }
  func.func @transform_3(%arg0: i32) -> (i32, i32) {
    %c0_i32 = arith.constant 0 : i32
    %c0_i32_0 = arith.constant 0 : i32
    return %arg0, %c0_i32 : i32, i32
  }
}

module attributes {stable_mosaic.version = 11 : i64} {
  func.func @_matmul_stats_kernel(%arg0: i32, %arg1: i32, %arg2: memref<24x1024xbf16, #tpu.memory_space<vmem>>, %arg3: memref<1024x128xbf16, #tpu.memory_space<vmem>>, %arg4: memref<24x128xbf16, #tpu.memory_space<vmem>>, %arg5: memref<1x2x128xf32, #tpu.memory_space<vmem>>, %arg6: memref<24x128xf32, #tpu.memory_space<vmem>>) attributes {dimension_semantics = [#tpu.dimension_semantics<parallel>, #tpu.dimension_semantics<arbitrary>], iteration_bounds = array<i64: 1, 1>, scalar_prefetch = 0 : i64, scratch_operands = 1 : i64, tpu.core_type = #tpu.core_type<tc>, window_params = [{transform_indices = @transform_0, window_bounds = array<i64: 24, 1024>}, {pipeline_mode = #tpu.pipeline_mode<synchronous>, transform_indices = @transform_1, window_bounds = array<i64: 1024, 128>}, {transform_indices = @transform_2, window_bounds = array<i64: 24, 128>}, {transform_indices = @transform_3, window_bounds = array<i64: 1, 2, 128>}]} {
    %c0_i32 = arith.constant 0 : i32
    %0 = arith.cmpi eq, %arg1, %c0_i32 : i32
    %1 = arith.extui %0 : i1 to i32
    %c0_i32_0 = arith.constant 0 : i32
    %2 = arith.cmpi ne, %1, %c0_i32_0 : i32
    scf.if %2 {
      %cst_9 = arith.constant 0.000000e+00 : f32
      %15 = vector.broadcast %cst_9 : f32 to vector<24x128xf32>
      %c0_10 = arith.constant 0 : index
      %c0_11 = arith.constant 0 : index
      %16 = vector.load %arg6[%c0_10, %c0_11] : memref<24x128xf32, #tpu.memory_space<vmem>>, vector<24x128xf32>
      tpu.vector_store %arg6[%c0_10, %c0_11], %15 {strides = array<i32>} : memref<24x128xf32, #tpu.memory_space<vmem>>, vector<24x128xf32>,
    } else {
    }
    %c1024_i32 = arith.constant 1024 : i32
    %3 = arith.muli %arg1, %c1024_i32 : i32
    %4 = tpu.assume_multiple %3, 128 : i32
    %5 = arith.index_cast %4 : i32 to index
    %c0 = arith.constant 0 : index
    %6 = vector.load %arg3[%5, %c0] : memref<1024x128xbf16, #tpu.memory_space<vmem>>, vector<1024x128xbf16>
    %c0_1 = arith.constant 0 : index
    %c0_2 = arith.constant 0 : index
    %7 = vector.load %arg6[%c0_1, %c0_2] : memref<24x128xf32, #tpu.memory_space<vmem>>, vector<24x128xf32>
    %c0_3 = arith.constant 0 : index
    %c0_4 = arith.constant 0 : index
    %8 = vector.load %arg2[%c0_3, %c0_4] : memref<24x1024xbf16, #tpu.memory_space<vmem>>, vector<24x1024xbf16>
    %cst = arith.constant dense<0.000000e+00> : vector<24x128xf32>
    %9 = tpu.matmul %8, %6, %cst {dimension_numbers = #tpu.dot_dimension_numbers<[1], [0], [0], [1], [0, 0, 1, 1], [], []>} : vector<24x1024xbf16>, vector<1024x128xbf16>, vector<24x128xf32> -> vector<24x128xf32>
    %10 = arith.addf %7, %9 : vector<24x128xf32>
    %c0_5 = arith.constant 0 : index
    %c0_6 = arith.constant 0 : index
    %11 = vector.load %arg6[%c0_5, %c0_6] : memref<24x128xf32, #tpu.memory_space<vmem>>, vector<24x128xf32>
    tpu.vector_store %arg6[%c0_5, %c0_6], %10 {strides = array<i32>} : memref<24x128xf32, #tpu.memory_space<vmem>>, vector<24x128xf32>,
    %c0_i32_7 = arith.constant 0 : i32
    %12 = arith.cmpi eq, %arg1, %c0_i32_7 : i32
    %13 = arith.extui %12 : i1 to i32
    %c0_i32_8 = arith.constant 0 : i32
    %14 = arith.cmpi ne, %13, %c0_i32_8 : i32
    scf.if %14 {
      %c0_9 = arith.constant 0 : index
      %c0_10 = arith.constant 0 : index
      %15 = vector.load %arg6[%c0_9, %c0_10] : memref<24x128xf32, #tpu.memory_space<vmem>>, vector<24x128xf32>
      %16 = arith.truncf %15 : vector<24x128xf32> to vector<24x128xbf16>
      %c0_11 = arith.constant 0 : index
      %c0_12 = arith.constant 0 : index
      %17 = vector.load %arg4[%c0_11, %c0_12] : memref<24x128xbf16, #tpu.memory_space<vmem>>, vector<24x128xbf16>
      tpu.vector_store %arg4[%c0_11, %c0_12], %16 {strides = array<i32>} : memref<24x128xbf16, #tpu.memory_space<vmem>>, vector<24x128xbf16>,
      %cst_13 = arith.constant dense<0.000000e+00> : vector<128xf32>
      %18 = vector.multi_reduction <add>, %15, %cst_13 [0] : vector<24x128xf32> to vector<128xf32>
      %19 = vector.shape_cast %18 : vector<128xf32> to vector<1x128xf32>
      %c0_14 = arith.constant 0 : index
      %c0_15 = arith.constant 0 : index
      %c0_16 = arith.constant 0 : index
      %20 = vector.load %arg5[%c0_14, %c0_15, %c0_16] : memref<1x2x128xf32, #tpu.memory_space<vmem>>, vector<1x1x128xf32>
      %21 = vector.shape_cast %20 : vector<1x1x128xf32> to vector<1x128xf32>
      %22 = vector.shape_cast %19 : vector<1x128xf32> to vector<1x1x128xf32>
      tpu.vector_store %arg5[%c0_14, %c0_15, %c0_16], %22 {strides = array<i32>} : memref<1x2x128xf32, #tpu.memory_space<vmem>>, vector<1x1x128xf32>,
      %23 = arith.mulf %15, %15 : vector<24x128xf32>
      %cst_17 = arith.constant dense<0.000000e+00> : vector<128xf32>
      %24 = vector.multi_reduction <add>, %23, %cst_17 [0] : vector<24x128xf32> to vector<128xf32>
      %25 = vector.shape_cast %24 : vector<128xf32> to vector<1x128xf32>
      %c0_18 = arith.constant 0 : index
      %c1 = arith.constant 1 : index
      %c0_19 = arith.constant 0 : index
      %26 = vector.load %arg5[%c0_18, %c1, %c0_19] : memref<1x2x128xf32, #tpu.memory_space<vmem>>, vector<1x1x128xf32>
      %27 = vector.shape_cast %26 : vector<1x1x128xf32> to vector<1x128xf32>
      %28 = vector.shape_cast %25 : vector<1x128xf32> to vector<1x1x128xf32>
      tpu.vector_store %arg5[%c0_18, %c1, %c0_19], %28 {strides = array<i32>} : memref<1x2x128xf32, #tpu.memory_space<vmem>>, vector<1x1x128xf32>,
    } else {
    }
    return
  }
  func.func @transform_0(%arg0: i32, %arg1: i32) -> (i32, i32) {
    %c0_i32 = arith.constant 0 : i32
    return %arg0, %arg1 : i32, i32
  }
  func.func @transform_1(%arg0: i32, %arg1: i32) -> (i32, i32) {
    %c0_i32 = arith.constant 0 : i32
    %c0_i32_0 = arith.constant 0 : i32
    %c0_i32_1 = arith.constant 0 : i32
    return %c0_i32, %c0_i32_0 : i32, i32
  }
  func.func @transform_2(%arg0: i32, %arg1: i32) -> (i32, i32) {
    %c0_i32 = arith.constant 0 : i32
    %c0_i32_0 = arith.constant 0 : i32
    return %arg0, %c0_i32 : i32, i32
  }
  func.func @transform_3(%arg0: i32, %arg1: i32) -> (i32, i32, i32) {
    %c0_i32 = arith.constant 0 : i32
    %c0_i32_0 = arith.constant 0 : i32
    %c0_i32_1 = arith.constant 0 : i32
    return %arg0, %c0_i32, %c0_i32_0 : i32, i32, i32
  }
}

module attributes {stable_mosaic.version = 11 : i64} {
  func.func @_affine_act_kernel(%arg0: i32, %arg1: memref<24x128xbf16, #tpu.memory_space<vmem>>, %arg2: memref<1x128xf32, #tpu.memory_space<vmem>>, %arg3: memref<1x128xf32, #tpu.memory_space<vmem>>, %arg4: memref<24x128xbf16, #tpu.memory_space<vmem>>) attributes {dimension_semantics = [#tpu.dimension_semantics<parallel>], iteration_bounds = array<i64: 1>, scalar_prefetch = 0 : i64, scratch_operands = 0 : i64, tpu.core_type = #tpu.core_type<tc>, window_params = [{transform_indices = @transform_0, window_bounds = array<i64: 24, 128>}, {pipeline_mode = #tpu.pipeline_mode<synchronous>, transform_indices = @transform_1, window_bounds = array<i64: 1, 128>}, {pipeline_mode = #tpu.pipeline_mode<synchronous>, transform_indices = @transform_2, window_bounds = array<i64: 1, 128>}, {transform_indices = @transform_3, window_bounds = array<i64: 24, 128>}]} {
    %c0 = arith.constant 0 : index
    %c0_0 = arith.constant 0 : index
    %0 = vector.load %arg1[%c0, %c0_0] : memref<24x128xbf16, #tpu.memory_space<vmem>>, vector<24x128xbf16>
    %1 = arith.extf %0 : vector<24x128xbf16> to vector<24x128xf32>
    %c0_1 = arith.constant 0 : index
    %c0_2 = arith.constant 0 : index
    %2 = vector.load %arg2[%c0_1, %c0_2] : memref<1x128xf32, #tpu.memory_space<vmem>>, vector<1x128xf32>
    %3 = vector.broadcast %2 : vector<1x128xf32> to vector<24x128xf32>
    %4 = arith.mulf %1, %3 : vector<24x128xf32>
    %c0_3 = arith.constant 0 : index
    %c0_4 = arith.constant 0 : index
    %5 = vector.load %arg3[%c0_3, %c0_4] : memref<1x128xf32, #tpu.memory_space<vmem>>, vector<1x128xf32>
    %6 = vector.broadcast %5 : vector<1x128xf32> to vector<24x128xf32>
    %7 = arith.addf %4, %6 : vector<24x128xf32>
    %cst = arith.constant 0.000000e+00 : f32
    %8 = vector.broadcast %cst : f32 to vector<24x128xf32>
    %9 = arith.cmpf ogt, %7, %8 : vector<24x128xf32>
    %cst_5 = arith.constant 2.000000e-01 : f32
    %10 = vector.broadcast %cst_5 : f32 to vector<24x128xf32>
    %11 = arith.mulf %10, %7 : vector<24x128xf32>
    %12 = arith.select %9, %7, %11 : vector<24x128xi1>, vector<24x128xf32>
    %13 = arith.truncf %12 : vector<24x128xf32> to vector<24x128xbf16>
    %c0_6 = arith.constant 0 : index
    %c0_7 = arith.constant 0 : index
    %14 = vector.load %arg4[%c0_6, %c0_7] : memref<24x128xbf16, #tpu.memory_space<vmem>>, vector<24x128xbf16>
    tpu.vector_store %arg4[%c0_6, %c0_7], %13 {strides = array<i32>} : memref<24x128xbf16, #tpu.memory_space<vmem>>, vector<24x128xbf16>,
    return
  }
  func.func @transform_0(%arg0: i32) -> (i32, i32) {
    %c0_i32 = arith.constant 0 : i32
    %c0_i32_0 = arith.constant 0 : i32
    return %arg0, %c0_i32 : i32, i32
  }
  func.func @transform_1(%arg0: i32) -> (i32, i32) {
    %c0_i32 = arith.constant 0 : i32
    %c0_i32_0 = arith.constant 0 : i32
    %c0_i32_1 = arith.constant 0 : i32
    return %c0_i32, %c0_i32_0 : i32, i32
  }
  func.func @transform_2(%arg0: i32) -> (i32, i32) {
    %c0_i32 = arith.constant 0 : i32
    %c0_i32_0 = arith.constant 0 : i32
    %c0_i32_1 = arith.constant 0 : i32
    return %c0_i32, %c0_i32_0 : i32, i32
  }
  func.func @transform_3(%arg0: i32) -> (i32, i32) {
    %c0_i32 = arith.constant 0 : i32
    %c0_i32_0 = arith.constant 0 : i32
    return %arg0, %c0_i32 : i32, i32
  }
}

module attributes {stable_mosaic.version = 11 : i64} {
  func.func @_matmul_stats_kernel(%arg0: i32, %arg1: i32, %arg2: memref<8x2048xbf16, #tpu.memory_space<vmem>>, %arg3: memref<2048x128xbf16, #tpu.memory_space<vmem>>, %arg4: memref<8x128xbf16, #tpu.memory_space<vmem>>, %arg5: memref<1x2x128xf32, #tpu.memory_space<vmem>>, %arg6: memref<8x128xf32, #tpu.memory_space<vmem>>) attributes {dimension_semantics = [#tpu.dimension_semantics<parallel>, #tpu.dimension_semantics<arbitrary>], iteration_bounds = array<i64: 1, 1>, scalar_prefetch = 0 : i64, scratch_operands = 1 : i64, tpu.core_type = #tpu.core_type<tc>, window_params = [{transform_indices = @transform_0, window_bounds = array<i64: 8, 2048>}, {pipeline_mode = #tpu.pipeline_mode<synchronous>, transform_indices = @transform_1, window_bounds = array<i64: 2048, 128>}, {transform_indices = @transform_2, window_bounds = array<i64: 8, 128>}, {transform_indices = @transform_3, window_bounds = array<i64: 1, 2, 128>}]} {
    %c0_i32 = arith.constant 0 : i32
    %0 = arith.cmpi eq, %arg1, %c0_i32 : i32
    %1 = arith.extui %0 : i1 to i32
    %c0_i32_0 = arith.constant 0 : i32
    %2 = arith.cmpi ne, %1, %c0_i32_0 : i32
    scf.if %2 {
      %cst_9 = arith.constant 0.000000e+00 : f32
      %15 = vector.broadcast %cst_9 : f32 to vector<8x128xf32>
      %c0_10 = arith.constant 0 : index
      %c0_11 = arith.constant 0 : index
      %16 = vector.load %arg6[%c0_10, %c0_11] : memref<8x128xf32, #tpu.memory_space<vmem>>, vector<8x128xf32>
      tpu.vector_store %arg6[%c0_10, %c0_11], %15 {strides = array<i32>} : memref<8x128xf32, #tpu.memory_space<vmem>>, vector<8x128xf32>,
    } else {
    }
    %c2048_i32 = arith.constant 2048 : i32
    %3 = arith.muli %arg1, %c2048_i32 : i32
    %4 = tpu.assume_multiple %3, 128 : i32
    %5 = arith.index_cast %4 : i32 to index
    %c0 = arith.constant 0 : index
    %6 = vector.load %arg3[%5, %c0] : memref<2048x128xbf16, #tpu.memory_space<vmem>>, vector<2048x128xbf16>
    %c0_1 = arith.constant 0 : index
    %c0_2 = arith.constant 0 : index
    %7 = vector.load %arg6[%c0_1, %c0_2] : memref<8x128xf32, #tpu.memory_space<vmem>>, vector<8x128xf32>
    %c0_3 = arith.constant 0 : index
    %c0_4 = arith.constant 0 : index
    %8 = vector.load %arg2[%c0_3, %c0_4] : memref<8x2048xbf16, #tpu.memory_space<vmem>>, vector<8x2048xbf16>
    %cst = arith.constant dense<0.000000e+00> : vector<8x128xf32>
    %9 = tpu.matmul %8, %6, %cst {dimension_numbers = #tpu.dot_dimension_numbers<[1], [0], [0], [1], [0, 0, 1, 1], [], []>} : vector<8x2048xbf16>, vector<2048x128xbf16>, vector<8x128xf32> -> vector<8x128xf32>
    %10 = arith.addf %7, %9 : vector<8x128xf32>
    %c0_5 = arith.constant 0 : index
    %c0_6 = arith.constant 0 : index
    %11 = vector.load %arg6[%c0_5, %c0_6] : memref<8x128xf32, #tpu.memory_space<vmem>>, vector<8x128xf32>
    tpu.vector_store %arg6[%c0_5, %c0_6], %10 {strides = array<i32>} : memref<8x128xf32, #tpu.memory_space<vmem>>, vector<8x128xf32>,
    %c0_i32_7 = arith.constant 0 : i32
    %12 = arith.cmpi eq, %arg1, %c0_i32_7 : i32
    %13 = arith.extui %12 : i1 to i32
    %c0_i32_8 = arith.constant 0 : i32
    %14 = arith.cmpi ne, %13, %c0_i32_8 : i32
    scf.if %14 {
      %c0_9 = arith.constant 0 : index
      %c0_10 = arith.constant 0 : index
      %15 = vector.load %arg6[%c0_9, %c0_10] : memref<8x128xf32, #tpu.memory_space<vmem>>, vector<8x128xf32>
      %16 = arith.truncf %15 : vector<8x128xf32> to vector<8x128xbf16>
      %c0_11 = arith.constant 0 : index
      %c0_12 = arith.constant 0 : index
      %17 = vector.load %arg4[%c0_11, %c0_12] : memref<8x128xbf16, #tpu.memory_space<vmem>>, vector<8x128xbf16>
      tpu.vector_store %arg4[%c0_11, %c0_12], %16 {strides = array<i32>} : memref<8x128xbf16, #tpu.memory_space<vmem>>, vector<8x128xbf16>,
      %cst_13 = arith.constant dense<0.000000e+00> : vector<128xf32>
      %18 = vector.multi_reduction <add>, %15, %cst_13 [0] : vector<8x128xf32> to vector<128xf32>
      %19 = vector.shape_cast %18 : vector<128xf32> to vector<1x128xf32>
      %c0_14 = arith.constant 0 : index
      %c0_15 = arith.constant 0 : index
      %c0_16 = arith.constant 0 : index
      %20 = vector.load %arg5[%c0_14, %c0_15, %c0_16] : memref<1x2x128xf32, #tpu.memory_space<vmem>>, vector<1x1x128xf32>
      %21 = vector.shape_cast %20 : vector<1x1x128xf32> to vector<1x128xf32>
      %22 = vector.shape_cast %19 : vector<1x128xf32> to vector<1x1x128xf32>
      tpu.vector_store %arg5[%c0_14, %c0_15, %c0_16], %22 {strides = array<i32>} : memref<1x2x128xf32, #tpu.memory_space<vmem>>, vector<1x1x128xf32>,
      %23 = arith.mulf %15, %15 : vector<8x128xf32>
      %cst_17 = arith.constant dense<0.000000e+00> : vector<128xf32>
      %24 = vector.multi_reduction <add>, %23, %cst_17 [0] : vector<8x128xf32> to vector<128xf32>
      %25 = vector.shape_cast %24 : vector<128xf32> to vector<1x128xf32>
      %c0_18 = arith.constant 0 : index
      %c1 = arith.constant 1 : index
      %c0_19 = arith.constant 0 : index
      %26 = vector.load %arg5[%c0_18, %c1, %c0_19] : memref<1x2x128xf32, #tpu.memory_space<vmem>>, vector<1x1x128xf32>
      %27 = vector.shape_cast %26 : vector<1x1x128xf32> to vector<1x128xf32>
      %28 = vector.shape_cast %25 : vector<1x128xf32> to vector<1x1x128xf32>
      tpu.vector_store %arg5[%c0_18, %c1, %c0_19], %28 {strides = array<i32>} : memref<1x2x128xf32, #tpu.memory_space<vmem>>, vector<1x1x128xf32>,
    } else {
    }
    return
  }
  func.func @transform_0(%arg0: i32, %arg1: i32) -> (i32, i32) {
    %c0_i32 = arith.constant 0 : i32
    return %arg0, %arg1 : i32, i32
  }
  func.func @transform_1(%arg0: i32, %arg1: i32) -> (i32, i32) {
    %c0_i32 = arith.constant 0 : i32
    %c0_i32_0 = arith.constant 0 : i32
    %c0_i32_1 = arith.constant 0 : i32
    return %c0_i32, %c0_i32_0 : i32, i32
  }
  func.func @transform_2(%arg0: i32, %arg1: i32) -> (i32, i32) {
    %c0_i32 = arith.constant 0 : i32
    %c0_i32_0 = arith.constant 0 : i32
    return %arg0, %c0_i32 : i32, i32
  }
  func.func @transform_3(%arg0: i32, %arg1: i32) -> (i32, i32, i32) {
    %c0_i32 = arith.constant 0 : i32
    %c0_i32_0 = arith.constant 0 : i32
    %c0_i32_1 = arith.constant 0 : i32
    return %arg0, %c0_i32, %c0_i32_0 : i32, i32, i32
  }
}

module attributes {stable_mosaic.version = 11 : i64} {
  func.func @_affine_act_kernel(%arg0: i32, %arg1: memref<8x128xbf16, #tpu.memory_space<vmem>>, %arg2: memref<1x128xf32, #tpu.memory_space<vmem>>, %arg3: memref<1x128xf32, #tpu.memory_space<vmem>>, %arg4: memref<8x128xf32, #tpu.memory_space<vmem>>) attributes {dimension_semantics = [#tpu.dimension_semantics<parallel>], iteration_bounds = array<i64: 1>, scalar_prefetch = 0 : i64, scratch_operands = 0 : i64, tpu.core_type = #tpu.core_type<tc>, window_params = [{transform_indices = @transform_0, window_bounds = array<i64: 8, 128>}, {pipeline_mode = #tpu.pipeline_mode<synchronous>, transform_indices = @transform_1, window_bounds = array<i64: 1, 128>}, {pipeline_mode = #tpu.pipeline_mode<synchronous>, transform_indices = @transform_2, window_bounds = array<i64: 1, 128>}, {transform_indices = @transform_3, window_bounds = array<i64: 8, 128>}]} {
    %c0 = arith.constant 0 : index
    %c0_0 = arith.constant 0 : index
    %0 = vector.load %arg1[%c0, %c0_0] : memref<8x128xbf16, #tpu.memory_space<vmem>>, vector<8x128xbf16>
    %1 = arith.extf %0 : vector<8x128xbf16> to vector<8x128xf32>
    %c0_1 = arith.constant 0 : index
    %c0_2 = arith.constant 0 : index
    %2 = vector.load %arg2[%c0_1, %c0_2] : memref<1x128xf32, #tpu.memory_space<vmem>>, vector<1x128xf32>
    %3 = vector.broadcast %2 : vector<1x128xf32> to vector<8x128xf32>
    %4 = arith.mulf %1, %3 : vector<8x128xf32>
    %c0_3 = arith.constant 0 : index
    %c0_4 = arith.constant 0 : index
    %5 = vector.load %arg3[%c0_3, %c0_4] : memref<1x128xf32, #tpu.memory_space<vmem>>, vector<1x128xf32>
    %6 = vector.broadcast %5 : vector<1x128xf32> to vector<8x128xf32>
    %7 = arith.addf %4, %6 : vector<8x128xf32>
    %c0_5 = arith.constant 0 : index
    %c0_6 = arith.constant 0 : index
    %8 = vector.load %arg4[%c0_5, %c0_6] : memref<8x128xf32, #tpu.memory_space<vmem>>, vector<8x128xf32>
    tpu.vector_store %arg4[%c0_5, %c0_6], %7 {strides = array<i32>} : memref<8x128xf32, #tpu.memory_space<vmem>>, vector<8x128xf32>,
    return
  }
  func.func @transform_0(%arg0: i32) -> (i32, i32) {
    %c0_i32 = arith.constant 0 : i32
    %c0_i32_0 = arith.constant 0 : i32
    return %arg0, %c0_i32 : i32, i32
  }
  func.func @transform_1(%arg0: i32) -> (i32, i32) {
    %c0_i32 = arith.constant 0 : i32
    %c0_i32_0 = arith.constant 0 : i32
    %c0_i32_1 = arith.constant 0 : i32
    return %c0_i32, %c0_i32_0 : i32, i32
  }
  func.func @transform_2(%arg0: i32) -> (i32, i32) {
    %c0_i32 = arith.constant 0 : i32
    %c0_i32_0 = arith.constant 0 : i32
    %c0_i32_1 = arith.constant 0 : i32
    return %c0_i32, %c0_i32_0 : i32, i32
  }
  func.func @transform_3(%arg0: i32) -> (i32, i32) {
    %c0_i32 = arith.constant 0 : i32
    %c0_i32_0 = arith.constant 0 : i32
    return %arg0, %c0_i32 : i32, i32
  }
}

</mosaic_0001>

<bundles_post_ra>
// kernel: forward.11
= control target key start
LH: loop header
LB: loop body
LE: loop exit
PB: predicated region body
PF: predicated region fallthrough
CT: control target
= control target key end

     0   :  { %s1631_s0 = inlined_call_operand.vmem [shape: bf16[512,128], index: 0, kind: input, shape index: {}]   ;;  %s1632_s1 = inlined_call_operand.vmem [shape: f32[1,128], index: 1, kind: input, shape index: {}]   ;;  %s1633_s2 = inlined_call_operand.vmem [shape: f32[1,128], index: 2, kind: input, shape index: {}]   ;;  %s1634_s3 = inlined_call_operand.vmem [shape: bf16[512,128], index: 3, kind: output, shape index: {}]  }
   0x1   :  { %v931_v0 = vld [vmem:[%s1631_s0] sm:$0xff]   ;;  %v1218_v4 = vld [vmem:[%s1631_s0 + $0x8] sm:$0xff]   ;;  %v1219_v5 = vld [vmem:[%s1631_s0 + $0x10] sm:$0xff]  }
   0x2   :  { %v1306_v1 = vld [vmem:[%s1632_s1] ss:$0 sm:$0xff]  ;;  %v932_v2 = vunpack.c.l.bf16 %v931_v0  ;;  %v933_v3 = vunpack.c.h.bf16 %v931_v0  ;;  %v1220_v6 = vld [vmem:[%s1631_s0 + $0x18] sm:$0xff]   ;;  %v936_v8 = vunpack.c.l.bf16 %v1218_v4  ;;  %v937_v9 = vunpack.c.h.bf16 %v1218_v4  ;;  %v1222_v35 = vld [vmem:[%s1631_s0 + $0x28] sm:$0xff]  }
   0x3   :  { %v1320_v7 = vld [vmem:[%s1633_s2] ss:$0 sm:$0xff]  ;;  %v940_v10 = vunpack.c.l.bf16 %v1219_v5  ;;  %v941_v11 = vunpack.c.h.bf16 %v1219_v5  ;;  %v944_v14 = vunpack.c.l.bf16 %v1220_v6  ;;  %v945_v15 = vunpack.c.h.bf16 %v1220_v6  ;;  %v1223_v48 = vld [vmem:[%s1631_s0 + $0x30] sm:$0xff]   ;;  %v1224_v4 = vld [vmem:[%s1631_s0 + $0x38] sm:$0xff]  }
   0x4   :  { %v149_v12 = vmul.f32 %v932_v2, %v1306_v1  ;;  %v150_v13 = vmul.f32 %v933_v3, %v1306_v1  ;;  %v151_v16 = vmul.f32 %v936_v8, %v1306_v1  ;;  %v152_v17 = vmul.f32 %v937_v9, %v1306_v1  ;;  %v1221_v34 = vld [vmem:[%s1631_s0 + $0x20] sm:$0xff]  }
   0x5   :  { %v153_v18 = vmul.f32 %v940_v10, %v1306_v1  ;;  %v154_v19 = vmul.f32 %v941_v11, %v1306_v1  ;;  %v155_v22 = vmul.f32 %v944_v14, %v1306_v1  ;;  %v156_v23 = vmul.f32 %v945_v15, %v1306_v1  ;;  %v1225_v15 = vld [vmem:[%s1631_s0 + $0x40] sm:$0xff]  }
   0x6   :  { %v220_v20 = vadd.f32 %v1320_v7, %v149_v12  ;;  %v221_v21 = vadd.f32 %v1320_v7, %v150_v13  ;;  %v222_v24 = vadd.f32 %v1320_v7, %v151_v16  ;;  %v223_v25 = vadd.f32 %v1320_v7, %v152_v17 }
   0x7   :  { %v224_v26 = vadd.f32 %v1320_v7, %v153_v18  ;;  %v225_v27 = vadd.f32 %v1320_v7, %v154_v19  ;;  %v226_v42 = vadd.f32 %v1320_v7, %v155_v22  ;;  %v227_v43 = vadd.f32 %v1320_v7, %v156_v23 }
   0x8   :  { %vm284_vm0 = vcmp.gt.f32.partialorder %v220_v20, 0.0  ;;  %vm285_vm1 = vcmp.gt.f32.partialorder %v221_v21, 0.0  ;;  %v348_v28 = vmul.f32 0.2, %v220_v20  ;;  %v349_v29 = vmul.f32 0.2, %v221_v21 }
   0x9   :  { %vm286_vm2 = vcmp.gt.f32.partialorder %v222_v24, 0.0  ;;  %vm287_vm3 = vcmp.gt.f32.partialorder %v223_v25, 0.0  ;;  %v350_v30 = vmul.f32 0.2, %v222_v24  ;;  %v351_v31 = vmul.f32 0.2, %v223_v25 }
   0xa   :  { %v412_v32 = vsel %vm284_vm0, %v220_v20, %v348_v28  ;;  %v413_v33 = vsel %vm285_vm1, %v221_v21, %v349_v29  ;;  %vm288_vm4 = vcmp.gt.f32.partialorder %v224_v26, 0.0  ;;  %vm289_vm5 = vcmp.gt.f32.partialorder %v225_v27, 0.0 }
   0xb   :  { %v1061_v36 = vpack.c.bf16 %v413_v33, %v412_v32  ;;  %v414_v37 = vsel %vm286_vm2, %v222_v24, %v350_v30  ;;  %v415_v38 = vsel %vm287_vm3, %v223_v25, %v351_v31  ;;  %v352_v39 = vmul.f32 0.2, %v224_v26 }
   0xc   :  { %v1066_v40 = vpack.c.bf16 %v415_v38, %v414_v37  ;;  %v353_v41 = vmul.f32 0.2, %v225_v27  ;;  %v948_v45 = vunpack.c.l.bf16 %v1221_v34  ;;  %v949_v46 = vunpack.c.h.bf16 %v1221_v34 }
   0xd   :  { %1062 = vst [vmem:[%s1634_s3] sm:$0xff] %v1061_v36   ;;  %v416_v44 = vsel %vm288_vm4, %v224_v26, %v352_v39  ;;  %v952_v47 = vunpack.c.l.bf16 %v1222_v35  ;;  %vm290_vm6 = vcmp.gt.f32.partialorder %v226_v42, 0.0  ;;  %vm291_vm7 = vcmp.gt.f32.partialorder %v227_v43, 0.0  ;;  %v1226_v26 = vld [vmem:[%s1631_s0 + $0x48] sm:$0xff]  }
   0xe   :  { %1249 = vst [vmem:[%s1634_s3 + $0x8] sm:$0xff] %v1066_v40   ;;  %v417_v49 = vsel %vm289_vm5, %v225_v27, %v353_v41  ;;  %v354_v50 = vmul.f32 0.2, %v226_v42  ;;  %v355_v52 = vmul.f32 0.2, %v227_v43  ;;  %v157_v53 = vmul.f32 %v948_v45, %v1306_v1  ;;  %v1227_v27 = vld [vmem:[%s1631_s0 + $0x50] sm:$0xff]  }
   0xf   :  { %v1071_v51 = vpack.c.bf16 %v417_v49, %v416_v44  ;;  %v158_v54 = vmul.f32 %v949_v46, %v1306_v1  ;;  %v953_v56 = vunpack.c.h.bf16 %v1222_v35  ;;  %v159_v57 = vmul.f32 %v952_v47, %v1306_v1 }
  0x10   :  { %v418_v55 = vsel %vm290_vm6, %v226_v42, %v354_v50  ;;  %v956_v58 = vunpack.c.l.bf16 %v1223_v48  ;;  %v419_v59 = vsel %vm291_vm7, %v227_v43, %v355_v52  ;;  %v228_v60 = vadd.f32 %v1320_v7, %v157_v53 }
  0x11   :  { %1250 = vst [vmem:[%s1634_s3 + $0x10] sm:$0xff] %v1071_v51   ;;  %v229_v61 = vadd.f32 %v1320_v7, %v158_v54  ;;  %v957_v62 = vunpack.c.h.bf16 %v1223_v48  ;;  %v1076_v63 = vpack.c.bf16 %v419_v59, %v418_v55  ;;  %v160_v0 = vmul.f32 %v953_v56, %v1306_v1  ;;  %v1228_v55 = vld [vmem:[%s1631_s0 + $0x58] sm:$0xff]  }
  0x12   :  { %v230_v2 = vadd.f32 %v1320_v7, %v159_v57  ;;  %v161_v3 = vmul.f32 %v956_v58, %v1306_v1  ;;  %vm292_vm8 = vcmp.gt.f32.partialorder %v228_v60, 0.0  ;;  %v356_v5 = vmul.f32 0.2, %v228_v60 }
  0x13   :  { %vm293_vm9 = vcmp.gt.f32.partialorder %v229_v61, 0.0  ;;  %v357_v6 = vmul.f32 0.2, %v229_v61  ;;  %1251 = vst [vmem:[%s1634_s3 + $0x18] sm:$0xff] %v1076_v63   ;;  %v231_v8 = vadd.f32 %v1320_v7, %v160_v0  ;;  %v162_v10 = vmul.f32 %v957_v62, %v1306_v1 }
  0x14   :  { %vm294_vm10 = vcmp.gt.f32.partialorder %v230_v2, 0.0  ;;  %v358_v9 = vmul.f32 0.2, %v230_v2  ;;  %v420_v11 = vsel %vm292_vm8, %v228_v60, %v356_v5  ;;  %v232_v13 = vadd.f32 %v1320_v7, %v161_v3  ;;  %v1229_v60 = vld [vmem:[%s1631_s0 + $0x60] sm:$0xff]  }
  0x15   :  { %v421_v12 = vsel %vm293_vm9, %v229_v61, %v357_v6  ;;  %v960_v14 = vunpack.c.l.bf16 %v1224_v4  ;;  %vm295_vm11 = vcmp.gt.f32.partialorder %v231_v8, 0.0  ;;  %v359_v17 = vmul.f32 0.2, %v231_v8 }
  0x16   :  { %v1081_v16 = vpack.c.bf16 %v421_v12, %v420_v11  ;;  %v422_v18 = vsel %vm294_vm10, %v230_v2, %v358_v9  ;;  %v233_v19 = vadd.f32 %v1320_v7, %v162_v10  ;;  %vm296_vm12 = vcmp.gt.f32.partialorder %v232_v13, 0.0  ;;  %v1230_v9 = vld [vmem:[%s1631_s0 + $0x68] sm:$0xff]  }
  0x17   :  { %v360_v20 = vmul.f32 0.2, %v232_v13  ;;  %v961_v21 = vunpack.c.h.bf16 %v1224_v4  ;;  %v423_v22 = vsel %vm295_vm11, %v231_v8, %v359_v17  ;;  %v163_v23 = vmul.f32 %v960_v14, %v1306_v1 }
  0x18   :  { %1252 = vst [vmem:[%s1634_s3 + $0x20] sm:$0xff] %v1081_v16   ;;  %v964_v24 = vunpack.c.l.bf16 %v1225_v15  ;;  %v965_v25 = vunpack.c.h.bf16 %v1225_v15  ;;  %v1086_v28 = vpack.c.bf16 %v423_v22, %v422_v18  ;;  %vm297_vm13 = vcmp.gt.f32.partialorder %v233_v19, 0.0 }
  0x19   :  { %v361_v29 = vmul.f32 0.2, %v233_v19  ;;  %v424_v30 = vsel %vm296_vm12, %v232_v13, %v360_v20  ;;  %v164_v31 = vmul.f32 %v961_v21, %v1306_v1  ;;  %v234_v32 = vadd.f32 %v1320_v7, %v163_v23 }
  0x1a   :  { %v165_v33 = vmul.f32 %v964_v24, %v1306_v1  ;;  %v166_v34 = vmul.f32 %v965_v25, %v1306_v1  ;;  %1253 = vst [vmem:[%s1634_s3 + $0x28] sm:$0xff] %v1086_v28   ;;  %v968_v36 = vunpack.c.l.bf16 %v1226_v26  ;;  %v969_v37 = vunpack.c.h.bf16 %v1226_v26  ;;  %v1231_v28 = vld [vmem:[%s1631_s0 + $0x70] sm:$0xff]  }
  0x1b   :  { %v425_v35 = vsel %vm297_vm13, %v233_v19, %v361_v29  ;;  %v972_v38 = vunpack.c.l.bf16 %v1227_v27  ;;  %v235_v40 = vadd.f32 %v1320_v7, %v164_v31  ;;  %vm298_vm14 = vcmp.gt.f32.partialorder %v234_v32, 0.0 }
  0x1c   :  { %v1091_v39 = vpack.c.bf16 %v425_v35, %v424_v30  ;;  %v362_v41 = vmul.f32 0.2, %v234_v32  ;;  %v236_v42 = vadd.f32 %v1320_v7, %v165_v33  ;;  %v237_v43 = vadd.f32 %v1320_v7, %v166_v34 }
  0x1d   :  { %v167_v44 = vmul.f32 %v968_v36, %v1306_v1  ;;  %v168_v45 = vmul.f32 %v969_v37, %v1306_v1  ;;  %vm299_vm15 = vcmp.gt.f32.partialorder %v235_v40, 0.0  ;;  %v363_v46 = vmul.f32 0.2, %v235_v40  ;;  %v1232_v37 = vld [vmem:[%s1631_s0 + $0x78] sm:$0xff]  }
  0x1e   :  { %1254 = vst [vmem:[%s1634_s3 + $0x30] sm:$0xff] %v1091_v39   ;;  %v426_v47 = vsel %vm298_vm14, %v234_v32, %v362_v41  ;;  %v973_v48 = vunpack.c.h.bf16 %v1227_v27  ;;  %vm300_vm0 = vcmp.gt.f32.partialorder %v236_v42, 0.0  ;;  %vm301_vm1 = vcmp.gt.f32.partialorder %v237_v43, 0.0 }
  0x1f   :  { %v364_v49 = vmul.f32 0.2, %v236_v42  ;;  %v365_v50 = vmul.f32 0.2, %v237_v43  ;;  %v427_v51 = vsel %vm299_vm15, %v235_v40, %v363_v46  ;;  %v238_v52 = vadd.f32 %v1320_v7, %v167_v44 }
  0x20   :  { %v239_v53 = vadd.f32 %v1320_v7, %v168_v45  ;;  %v169_v54 = vmul.f32 %v972_v38, %v1306_v1  ;;  %v1096_v56 = vpack.c.bf16 %v427_v51, %v426_v47  ;;  %v170_v59 = vmul.f32 %v973_v48, %v1306_v1 }
  0x21   :  { %v428_v57 = vsel %vm300_vm0, %v236_v42, %v364_v49  ;;  %v429_v58 = vsel %vm301_vm1, %v237_v43, %v365_v50  ;;  %vm302_vm2 = vcmp.gt.f32.partialorder %v238_v52, 0.0  ;;  %v366_v62 = vmul.f32 0.2, %v238_v52  ;;  %v1233_v42 = vld [vmem:[%s1631_s0 + $0x80] sm:$0xff]   ;;  %v1234_v50 = vld [vmem:[%s1631_s0 + $0x88] sm:$0xff]  }
  0x22   :  { %v1101_v61 = vpack.c.bf16 %v429_v58, %v428_v57  ;;  %vm303_vm3 = vcmp.gt.f32.partialorder %v239_v53, 0.0  ;;  %1255 = vst [vmem:[%s1634_s3 + $0x38] sm:$0xff] %v1096_v56   ;;  %v367_v63 = vmul.f32 0.2, %v239_v53  ;;  %v240_v0 = vadd.f32 %v1320_v7, %v169_v54 }
  0x23   :  { %v241_v2 = vadd.f32 %v1320_v7, %v170_v59  ;;  %v976_v3 = vunpack.c.l.bf16 %v1228_v55  ;;  %v430_v4 = vsel %vm302_vm2, %v238_v52, %v366_v62  ;;  %v977_v5 = vunpack.c.h.bf16 %v1228_v55 }
  0x24   :  { %1256 = vst [vmem:[%s1634_s3 + $0x40] sm:$0xff] %v1101_v61   ;;  %v980_v6 = vunpack.c.l.bf16 %v1229_v60  ;;  %v981_v8 = vunpack.c.h.bf16 %v1229_v60  ;;  %v431_v10 = vsel %vm303_vm3, %v239_v53, %v367_v63  ;;  %vm304_vm4 = vcmp.gt.f32.partialorder %v240_v0, 0.0 }
  0x25   :  { %vm305_vm5 = vcmp.gt.f32.partialorder %v241_v2, 0.0  ;;  %v368_v11 = vmul.f32 0.2, %v240_v0  ;;  %v1106_v12 = vpack.c.bf16 %v431_v10, %v430_v4  ;;  %v369_v13 = vmul.f32 0.2, %v241_v2 }
  0x26   :  { %v171_v14 = vmul.f32 %v976_v3, %v1306_v1  ;;  %v172_v15 = vmul.f32 %v977_v5, %v1306_v1  ;;  %v173_v17 = vmul.f32 %v980_v6, %v1306_v1  ;;  %v174_v18 = vmul.f32 %v981_v8, %v1306_v1 }
  0x27   :  { %v432_v16 = vsel %vm304_vm4, %v240_v0, %v368_v11  ;;  %v984_v19 = vunpack.c.l.bf16 %v1230_v9  ;;  %1257 = vst [vmem:[%s1634_s3 + $0x48] sm:$0xff] %v1106_v12   ;;  %v433_v20 = vsel %vm305_vm5, %v241_v2, %v369_v13  ;;  %v985_v23 = vunpack.c.h.bf16 %v1230_v9 }
  0x28   :  { %v242_v21 = vadd.f32 %v1320_v7, %v171_v14  ;;  %v243_v22 = vadd.f32 %v1320_v7, %v172_v15  ;;  %v1111_v24 = vpack.c.bf16 %v433_v20, %v432_v16  ;;  %v244_v25 = vadd.f32 %v1320_v7, %v173_v17  ;;  %v1235_v15 = vld [vmem:[%s1631_s0 + $0x90] sm:$0xff]   ;;  %v1236_v20 = vld [vmem:[%s1631_s0 + $0x98] sm:$0xff]  }
  0x29   :  { %v245_v26 = vadd.f32 %v1320_v7, %v174_v18  ;;  %v175_v27 = vmul.f32 %v984_v19, %v1306_v1  ;;  %v176_v35 = vmul.f32 %v985_v23, %v1306_v1  ;;  %v988_v41 = vunpack.c.l.bf16 %v1231_v28 }
  0x2a   :  { %vm306_vm6 = vcmp.gt.f32.partialorder %v242_v21, 0.0  ;;  %vm307_vm7 = vcmp.gt.f32.partialorder %v243_v22, 0.0  ;;  %v370_v29 = vmul.f32 0.2, %v242_v21  ;;  %v371_v30 = vmul.f32 0.2, %v243_v22 }
  0x2b   :  { %1258 = vst [vmem:[%s1634_s3 + $0x50] sm:$0xff] %v1111_v24   ;;  %vm308_vm8 = vcmp.gt.f32.partialorder %v244_v25, 0.0  ;;  %vm309_vm9 = vcmp.gt.f32.partialorder %v245_v26, 0.0  ;;  %v372_v31 = vmul.f32 0.2, %v244_v25  ;;  %v246_v36 = vadd.f32 %v1320_v7, %v175_v27 }
  0x2c   :  { %v373_v32 = vmul.f32 0.2, %v245_v26  ;;  %v434_v33 = vsel %vm306_vm6, %v242_v21, %v370_v29  ;;  %v435_v34 = vsel %vm307_vm7, %v243_v22, %v371_v30  ;;  %v247_v44 = vadd.f32 %v1320_v7, %v176_v35  ;;  %v1237_v21 = vld [vmem:[%s1631_s0 + $0xa0] sm:$0xff]  }
  0x2d   :  { %v1116_v38 = vpack.c.bf16 %v435_v34, %v434_v33  ;;  %v436_v39 = vsel %vm308_vm8, %v244_v25, %v372_v31  ;;  %vm310_vm10 = vcmp.gt.f32.partialorder %v246_v36, 0.0  ;;  %v374_v45 = vmul.f32 0.2, %v246_v36 }
  0x2e   :  { %v437_v40 = vsel %vm309_vm9, %v245_v26, %v373_v32  ;;  %v989_v46 = vunpack.c.h.bf16 %v1231_v28  ;;  %v177_v47 = vmul.f32 %v988_v41, %v1306_v1  ;;  %v992_v48 = vunpack.c.l.bf16 %v1232_v37 }
  0x2f   :  { %v1121_v43 = vpack.c.bf16 %v437_v40, %v436_v39  ;;  %1259 = vst [vmem:[%s1634_s3 + $0x58] sm:$0xff] %v1116_v38   ;;  %v993_v49 = vunpack.c.h.bf16 %v1232_v37  ;;  %vm311_vm11 = vcmp.gt.f32.partialorder %v247_v44, 0.0  ;;  %v375_v51 = vmul.f32 0.2, %v247_v44  ;;  %v1238_v40 = vld [vmem:[%s1631_s0 + $0xa8] sm:$0xff]  }
  0x30   :  { %v438_v52 = vsel %vm310_vm10, %v246_v36, %v374_v45  ;;  %v996_v53 = vunpack.c.l.bf16 %v1233_v42  ;;  %v178_v54 = vmul.f32 %v989_v46, %v1306_v1  ;;  %v248_v55 = vadd.f32 %v1320_v7, %v177_v47 }
  0x31   :  { %1260 = vst [vmem:[%s1634_s3 + $0x60] sm:$0xff] %v1121_v43   ;;  %v179_v56 = vmul.f32 %v992_v48, %v1306_v1  ;;  %v180_v57 = vmul.f32 %v993_v49, %v1306_v1  ;;  %v439_v58 = vsel %vm311_vm11, %v247_v44, %v375_v51  ;;  %v997_v59 = vunpack.c.h.bf16 %v1233_v42 }
  0x32   :  { %v181_v60 = vmul.f32 %v996_v53, %v1306_v1  ;;  %v1000_v61 = vunpack.c.l.bf16 %v1234_v50  ;;  %v1126_v62 = vpack.c.bf16 %v439_v58, %v438_v52  ;;  %v249_v63 = vadd.f32 %v1320_v7, %v178_v54 }
  0x33   :  { %vm312_vm12 = vcmp.gt.f32.partialorder %v248_v55, 0.0  ;;  %v376_v0 = vmul.f32 0.2, %v248_v55  ;;  %v250_v2 = vadd.f32 %v1320_v7, %v179_v56  ;;  %v251_v3 = vadd.f32 %v1320_v7, %v180_v57 }
  0x34   :  { %v182_v4 = vmul.f32 %v997_v59, %v1306_v1  ;;  %v252_v5 = vadd.f32 %v1320_v7, %v181_v60  ;;  %1261 = vst [vmem:[%s1634_s3 + $0x68] sm:$0xff] %v1126_v62   ;;  %vm313_vm13 = vcmp.gt.f32.partialorder %v249_v63, 0.0  ;;  %v377_v6 = vmul.f32 0.2, %v249_v63 }
  0x35   :  { %v440_v8 = vsel %vm312_vm12, %v248_v55, %v376_v0  ;;  %v1001_v9 = vunpack.c.h.bf16 %v1234_v50  ;;  %vm314_vm14 = vcmp.gt.f32.partialorder %v250_v2, 0.0  ;;  %vm315_vm15 = vcmp.gt.f32.partialorder %v251_v3, 0.0  ;;  %v1239_v0 = vld [vmem:[%s1631_s0 + $0xb0] sm:$0xff]  }
  0x36   :  { %v378_v10 = vmul.f32 0.2, %v250_v2  ;;  %v379_v11 = vmul.f32 0.2, %v251_v3  ;;  %v441_v12 = vsel %vm313_vm13, %v249_v63, %v377_v6  ;;  %v253_v13 = vadd.f32 %v1320_v7, %v182_v4 }
  0x37   :  { %vm316_vm0 = vcmp.gt.f32.partialorder %v252_v5, 0.0  ;;  %v380_v14 = vmul.f32 0.2, %v252_v5  ;;  %v1131_v16 = vpack.c.bf16 %v441_v12, %v440_v8  ;;  %v183_v19 = vmul.f32 %v1000_v61, %v1306_v1 }
  0x38   :  { %v442_v17 = vsel %vm314_vm14, %v250_v2, %v378_v10  ;;  %v443_v18 = vsel %vm315_vm15, %v251_v3, %v379_v11  ;;  %vm317_vm1 = vcmp.gt.f32.partialorder %v253_v13, 0.0  ;;  %v381_v23 = vmul.f32 0.2, %v253_v13  ;;  %v1240_v2 = vld [vmem:[%s1631_s0 + $0xb8] sm:$0xff]  }
  0x39   :  { %v1136_v22 = vpack.c.bf16 %v443_v18, %v442_v17  ;;  %v444_v24 = vsel %vm316_vm0, %v252_v5, %v380_v14  ;;  %1262 = vst [vmem:[%s1634_s3 + $0x70] sm:$0xff] %v1131_v16   ;;  %v184_v25 = vmul.f32 %v1001_v9, %v1306_v1  ;;  %v254_v26 = vadd.f32 %v1320_v7, %v183_v19  ;;  %v1241_v18 = vld [vmem:[%s1631_s0 + $0xc0] sm:$0xff]  }
  0x3a   :  { %v1004_v27 = vunpack.c.l.bf16 %v1235_v15  ;;  %v1005_v28 = vunpack.c.h.bf16 %v1235_v15  ;;  %v445_v29 = vsel %vm317_vm1, %v253_v13, %v381_v23  ;;  %v1008_v30 = vunpack.c.l.bf16 %v1236_v20 }
  0x3b   :  { %1263 = vst [vmem:[%s1634_s3 + $0x78] sm:$0xff] %v1136_v22   ;;  %v1009_v31 = vunpack.c.h.bf16 %v1236_v20  ;;  %v1012_v32 = vunpack.c.l.bf16 %v1237_v21  ;;  %v1141_v33 = vpack.c.bf16 %v445_v29, %v444_v24  ;;  %v255_v34 = vadd.f32 %v1320_v7, %v184_v25 }
  0x3c   :  { %vm318_vm2 = vcmp.gt.f32.partialorder %v254_v26, 0.0  ;;  %v382_v35 = vmul.f32 0.2, %v254_v26  ;;  %v185_v36 = vmul.f32 %v1004_v27, %v1306_v1  ;;  %v186_v37 = vmul.f32 %v1005_v28, %v1306_v1 }
  0x3d   :  { %v187_v38 = vmul.f32 %v1008_v30, %v1306_v1  ;;  %v188_v39 = vmul.f32 %v1009_v31, %v1306_v1  ;;  %1264 = vst [vmem:[%s1634_s3 + $0x80] sm:$0xff] %v1141_v33   ;;  %vm319_vm3 = vcmp.gt.f32.partialorder %v255_v34, 0.0  ;;  %v383_v41 = vmul.f32 0.2, %v255_v34 }
  0x3e   :  { %v446_v42 = vsel %vm318_vm2, %v254_v26, %v382_v35  ;;  %v1013_v43 = vunpack.c.h.bf16 %v1237_v21  ;;  %v256_v44 = vadd.f32 %v1320_v7, %v185_v36  ;;  %v257_v45 = vadd.f32 %v1320_v7, %v186_v37  ;;  %v1242_v36 = vld [vmem:[%s1631_s0 + $0xc8] sm:$0xff]  }
  0x3f   :  { %v258_v46 = vadd.f32 %v1320_v7, %v187_v38  ;;  %v259_v47 = vadd.f32 %v1320_v7, %v188_v39  ;;  %v447_v48 = vsel %vm319_vm3, %v255_v34, %v383_v41  ;;  %v189_v49 = vmul.f32 %v1012_v32, %v1306_v1 }
  0x40   :  { %v190_v50 = vmul.f32 %v1013_v43, %v1306_v1  ;;  %v1016_v51 = vunpack.c.l.bf16 %v1238_v40  ;;  %v1146_v52 = vpack.c.bf16 %v447_v48, %v446_v42  ;;  %vm320_vm4 = vcmp.gt.f32.partialorder %v256_v44, 0.0  ;;  %v1243_v42 = vld [vmem:[%s1631_s0 + $0xd0] sm:$0xff]  }
  0x41   :  { %vm321_vm5 = vcmp.gt.f32.partialorder %v257_v45, 0.0  ;;  %v384_v53 = vmul.f32 0.2, %v256_v44  ;;  %v385_v54 = vmul.f32 0.2, %v257_v45  ;;  %vm322_vm6 = vcmp.gt.f32.partialorder %v258_v46, 0.0 }
  0x42   :  { %vm323_vm7 = vcmp.gt.f32.partialorder %v259_v47, 0.0  ;;  %v386_v55 = vmul.f32 0.2, %v258_v46  ;;  %1265 = vst [vmem:[%s1634_s3 + $0x88] sm:$0xff] %v1146_v52   ;;  %v387_v57 = vmul.f32 0.2, %v259_v47  ;;  %v260_v58 = vadd.f32 %v1320_v7, %v189_v49 }
  0x43   :  { %v448_v56 = vsel %vm320_vm4, %v256_v44, %v384_v53  ;;  %v261_v59 = vadd.f32 %v1320_v7, %v190_v50  ;;  %v449_v60 = vsel %vm321_vm5, %v257_v45, %v385_v54  ;;  %v1017_v62 = vunpack.c.h.bf16 %v1238_v40 }
  0x44   :  { %v450_v61 = vsel %vm322_vm6, %v258_v46, %v386_v55  ;;  %v191_v63 = vmul.f32 %v1016_v51, %v1306_v1  ;;  %v1151_v3 = vpack.c.bf16 %v449_v60, %v448_v56  ;;  %v451_v4 = vsel %vm323_vm7, %v259_v47, %v387_v57  ;;  %v1244_v55 = vld [vmem:[%s1631_s0 + $0xd8] sm:$0xff]  }
  0x45   :  { %vm324_vm8 = vcmp.gt.f32.partialorder %v260_v58, 0.0  ;;  %vm325_vm9 = vcmp.gt.f32.partialorder %v261_v59, 0.0  ;;  %v1156_v5 = vpack.c.bf16 %v451_v4, %v450_v61  ;;  %v388_v6 = vmul.f32 0.2, %v260_v58 }
  0x46   :  { %v389_v8 = vmul.f32 0.2, %v261_v59  ;;  %v192_v9 = vmul.f32 %v1017_v62, %v1306_v1  ;;  %1266 = vst [vmem:[%s1634_s3 + $0x90] sm:$0xff] %v1151_v3   ;;  %v262_v10 = vadd.f32 %v1320_v7, %v191_v63  ;;  %v1020_v11 = vunpack.c.l.bf16 %v1239_v0 }
  0x47   :  { %v1021_v12 = vunpack.c.h.bf16 %v1239_v0  ;;  %v1024_v13 = vunpack.c.l.bf16 %v1240_v2  ;;  %1267 = vst [vmem:[%s1634_s3 + $0x98] sm:$0xff] %v1156_v5   ;;  %v452_v14 = vsel %vm324_vm8, %v260_v58, %v388_v6  ;;  %v1025_v17 = vunpack.c.h.bf16 %v1240_v2 }
  0x48   :  { %v453_v15 = vsel %vm325_vm9, %v261_v59, %v389_v8  ;;  %v263_v16 = vadd.f32 %v1320_v7, %v192_v9  ;;  %vm326_vm10 = vcmp.gt.f32.partialorder %v262_v10, 0.0  ;;  %v390_v20 = vmul.f32 0.2, %v262_v10 }
  0x49   :  { %v1161_v19 = vpack.c.bf16 %v453_v15, %v452_v14  ;;  %v193_v21 = vmul.f32 %v1020_v11, %v1306_v1  ;;  %v194_v23 = vmul.f32 %v1021_v12, %v1306_v1  ;;  %v195_v24 = vmul.f32 %v1024_v13, %v1306_v1  ;;  %v1246_v14 = vld [vmem:[%s1631_s0 + $0xe8] sm:$0xff]  }
  0x4a   :  { %vm327_vm11 = vcmp.gt.f32.partialorder %v263_v16, 0.0  ;;  %v391_v22 = vmul.f32 0.2, %v263_v16  ;;  %v454_v25 = vsel %vm326_vm10, %v262_v10, %v390_v20  ;;  %v196_v27 = vmul.f32 %v1025_v17, %v1306_v1  ;;  %v1245_v10 = vld [vmem:[%s1631_s0 + $0xe0] sm:$0xff]  }
  0x4b   :  { %1268 = vst [vmem:[%s1634_s3 + $0xa0] sm:$0xff] %v1161_v19   ;;  %v264_v26 = vadd.f32 %v1320_v7, %v193_v21  ;;  %v1028_v28 = vunpack.c.l.bf16 %v1241_v18  ;;  %v265_v30 = vadd.f32 %v1320_v7, %v194_v23  ;;  %v266_v31 = vadd.f32 %v1320_v7, %v195_v24 }
  0x4c   :  { %v455_v29 = vsel %vm327_vm11, %v263_v16, %v391_v22  ;;  %v1029_v32 = vunpack.c.h.bf16 %v1241_v18  ;;  %v267_v35 = vadd.f32 %v1320_v7, %v196_v27  ;;  %v1032_v46 = vunpack.c.l.bf16 %v1242_v36 }
  0x4d   :  { %v1166_v33 = vpack.c.bf16 %v455_v29, %v454_v25  ;;  %vm328_vm12 = vcmp.gt.f32.partialorder %v264_v26, 0.0  ;;  %v392_v34 = vmul.f32 0.2, %v264_v26  ;;  %vm329_vm13 = vcmp.gt.f32.partialorder %v265_v30, 0.0 }
  0x4e   :  { %v393_v37 = vmul.f32 0.2, %v265_v30  ;;  %vm330_vm14 = vcmp.gt.f32.partialorder %v266_v31, 0.0  ;;  %v394_v38 = vmul.f32 0.2, %v266_v31  ;;  %vm331_vm15 = vcmp.gt.f32.partialorder %v267_v35, 0.0 }
  0x4f   :  { %1269 = vst [vmem:[%s1634_s3 + $0xa8] sm:$0xff] %v1166_v33   ;;  %v456_v39 = vsel %vm328_vm12, %v264_v26, %v392_v34  ;;  %v395_v40 = vmul.f32 0.2, %v267_v35  ;;  %v197_v41 = vmul.f32 %v1028_v28, %v1306_v1  ;;  %v198_v45 = vmul.f32 %v1029_v32, %v1306_v1 }
  0x50   :  { %v457_v43 = vsel %vm329_vm13, %v265_v30, %v393_v37  ;;  %v458_v44 = vsel %vm330_vm14, %v266_v31, %v394_v38  ;;  %v1033_v50 = vunpack.c.h.bf16 %v1242_v36  ;;  %v199_v53 = vmul.f32 %v1032_v46, %v1306_v1  ;;  %v1247_v30 = vld [vmem:[%s1631_s0 + $0xf0] sm:$0xff]  }
  0x51   :  { %v1171_v47 = vpack.c.bf16 %v457_v43, %v456_v39  ;;  %v459_v48 = vsel %vm331_vm15, %v267_v35, %v395_v40  ;;  %v268_v49 = vadd.f32 %v1320_v7, %v197_v41  ;;  %v269_v52 = vadd.f32 %v1320_v7, %v198_v45 }
  0x52   :  { %v1176_v51 = vpack.c.bf16 %v459_v48, %v458_v44  ;;  %v1036_v54 = vunpack.c.l.bf16 %v1243_v42  ;;  %v200_v57 = vmul.f32 %v1033_v50, %v1306_v1  ;;  %v1037_v58 = vunpack.c.h.bf16 %v1243_v42  ;;  %v1248_v44 = vld [vmem:[%s1631_s0 + $0xf8] sm:$0xff]  }
  0x53   :  { %1270 = vst [vmem:[%s1634_s3 + $0xb0] sm:$0xff] %v1171_v47   ;;  %vm332_vm0 = vcmp.gt.f32.partialorder %v268_v49, 0.0  ;;  %v396_v56 = vmul.f32 0.2, %v268_v49  ;;  %vm333_vm1 = vcmp.gt.f32.partialorder %v269_v52, 0.0  ;;  %v270_v60 = vadd.f32 %v1320_v7, %v199_v53 }
  0x54   :  { %1271 = vst [vmem:[%s1634_s3 + $0xb8] sm:$0xff] %v1176_v51   ;;  %v397_v59 = vmul.f32 0.2, %v269_v52  ;;  %v201_v61 = vmul.f32 %v1036_v54, %v1306_v1  ;;  %v271_v63 = vadd.f32 %v1320_v7, %v200_v57  ;;  %v202_v0 = vmul.f32 %v1037_v58, %v1306_v1 }
  0x55   :  { %v460_v62 = vsel %vm332_vm0, %v268_v49, %v396_v56  ;;  %v1040_v2 = vunpack.c.l.bf16 %v1244_v55  ;;  %vm334_vm2 = vcmp.gt.f32.partialorder %v270_v60, 0.0  ;;  %v398_v4 = vmul.f32 0.2, %v270_v60 }
  0x56   :  { %v461_v3 = vsel %vm333_vm1, %v269_v52, %v397_v59  ;;  %v272_v5 = vadd.f32 %v1320_v7, %v201_v61  ;;  %vm335_vm3 = vcmp.gt.f32.partialorder %v271_v63, 0.0  ;;  %v399_v8 = vmul.f32 0.2, %v271_v63 }
  0x57   :  { %v1181_v6 = vpack.c.bf16 %v461_v3, %v460_v62  ;;  %v273_v9 = vadd.f32 %v1320_v7, %v202_v0  ;;  %v462_v11 = vsel %vm334_vm2, %v270_v60, %v398_v4  ;;  %v1041_v13 = vunpack.c.h.bf16 %v1244_v55 }
  0x58   :  { %vm336_vm4 = vcmp.gt.f32.partialorder %v272_v5, 0.0  ;;  %v400_v12 = vmul.f32 0.2, %v272_v5  ;;  %v463_v15 = vsel %vm335_vm3, %v271_v63, %v399_v8  ;;  %v203_v17 = vmul.f32 %v1040_v2, %v1306_v1 }
  0x59   :  { %1272 = vst [vmem:[%s1634_s3 + $0xc0] sm:$0xff] %v1181_v6   ;;  %vm337_vm5 = vcmp.gt.f32.partialorder %v273_v9, 0.0  ;;  %v401_v16 = vmul.f32 0.2, %v273_v9  ;;  %v1186_v18 = vpack.c.bf16 %v463_v15, %v462_v11  ;;  %v204_v20 = vmul.f32 %v1041_v13, %v1306_v1 }
  0x5a   :  { %v464_v19 = vsel %vm336_vm4, %v272_v5, %v400_v12  ;;  %v1044_v21 = vunpack.c.l.bf16 %v1245_v10  ;;  %v274_v23 = vadd.f32 %v1320_v7, %v203_v17  ;;  %v1045_v24 = vunpack.c.h.bf16 %v1245_v10 }
  0x5b   :  { %v465_v22 = vsel %vm337_vm5, %v273_v9, %v401_v16  ;;  %v1048_v25 = vunpack.c.l.bf16 %v1246_v14  ;;  %1273 = vst [vmem:[%s1634_s3 + $0xc8] sm:$0xff] %v1186_v18   ;;  %v275_v27 = vadd.f32 %v1320_v7, %v204_v20  ;;  %v1049_v29 = vunpack.c.h.bf16 %v1246_v14 }
  0x5c   :  { %v1191_v26 = vpack.c.bf16 %v465_v22, %v464_v19  ;;  %v205_v28 = vmul.f32 %v1044_v21, %v1306_v1  ;;  %vm338_vm6 = vcmp.gt.f32.partialorder %v274_v23, 0.0  ;;  %v402_v31 = vmul.f32 0.2, %v274_v23 }
  0x5d   :  { %v206_v32 = vmul.f32 %v1045_v24, %v1306_v1  ;;  %v207_v33 = vmul.f32 %v1048_v25, %v1306_v1  ;;  %vm339_vm7 = vcmp.gt.f32.partialorder %v275_v27, 0.0  ;;  %v403_v34 = vmul.f32 0.2, %v275_v27 }
  0x5e   :  { %1274 = vst [vmem:[%s1634_s3 + $0xd0] sm:$0xff] %v1191_v26   ;;  %v276_v35 = vadd.f32 %v1320_v7, %v205_v28  ;;  %v208_v36 = vmul.f32 %v1049_v29, %v1306_v1  ;;  %v466_v37 = vsel %vm338_vm6, %v274_v23, %v402_v31  ;;  %v1052_v40 = vunpack.c.l.bf16 %v1247_v30 }
  0x5f   :  { %v277_v38 = vadd.f32 %v1320_v7, %v206_v32  ;;  %v278_v39 = vadd.f32 %v1320_v7, %v207_v33  ;;  %v467_v41 = vsel %vm339_vm7, %v275_v27, %v403_v34  ;;  %v1053_v51 = vunpack.c.h.bf16 %v1247_v30 }
  0x60   :  { %vm340_vm8 = vcmp.gt.f32.partialorder %v276_v35, 0.0  ;;  %v404_v42 = vmul.f32 0.2, %v276_v35  ;;  %v279_v43 = vadd.f32 %v1320_v7, %v208_v36  ;;  %v1196_v45 = vpack.c.bf16 %v467_v41, %v466_v37 }
  0x61   :  { %vm341_vm9 = vcmp.gt.f32.partialorder %v277_v38, 0.0  ;;  %v405_v46 = vmul.f32 0.2, %v277_v38  ;;  %vm342_vm10 = vcmp.gt.f32.partialorder %v278_v39, 0.0  ;;  %v406_v48 = vmul.f32 0.2, %v278_v39 }
  0x62   :  { %v468_v47 = vsel %vm340_vm8, %v276_v35, %v404_v42  ;;  %vm343_vm11 = vcmp.gt.f32.partialorder %v279_v43, 0.0  ;;  %v407_v49 = vmul.f32 0.2, %v279_v43  ;;  %1275 = vst [vmem:[%s1634_s3 + $0xd8] sm:$0xff] %v1196_v45   ;;  %v209_v52 = vmul.f32 %v1052_v40, %v1306_v1 }
  0x63   :  { %v469_v50 = vsel %vm341_vm9, %v277_v38, %v405_v46  ;;  %v1056_v53 = vunpack.c.l.bf16 %v1248_v44  ;;  %v470_v55 = vsel %vm342_vm10, %v278_v39, %v406_v48  ;;  %v1057_v57 = vunpack.c.h.bf16 %v1248_v44 }
  0x64   :  { %v1201_v54 = vpack.c.bf16 %v469_v50, %v468_v47  ;;  %v471_v56 = vsel %vm343_vm11, %v279_v43, %v407_v49  ;;  %v210_v59 = vmul.f32 %v1053_v51, %v1306_v1  ;;  %v280_v60 = vadd.f32 %v1320_v7, %v209_v52 }
  0x65   :  { %v1206_v58 = vpack.c.bf16 %v471_v56, %v470_v55  ;;  %v211_v61 = vmul.f32 %v1056_v53, %v1306_v1  ;;  %v212_v62 = vmul.f32 %v1057_v57, %v1306_v1 }
  0x66   :  { %1276 = vst [vmem:[%s1634_s3 + $0xe0] sm:$0xff] %v1201_v54   ;;  %v281_v63 = vadd.f32 %v1320_v7, %v210_v59  ;;  %vm344_vm12 = vcmp.gt.f32.partialorder %v280_v60, 0.0  ;;  %v408_v0 = vmul.f32 0.2, %v280_v60 }
  0x67   :  { %1277 = vst [vmem:[%s1634_s3 + $0xe8] sm:$0xff] %v1206_v58   ;;  %v282_v2 = vadd.f32 %v1320_v7, %v211_v61  ;;  %v283_v3 = vadd.f32 %v1320_v7, %v212_v62 }
  0x68   :  { %vm345_vm13 = vcmp.gt.f32.partialorder %v281_v63, 0.0  ;;  %v409_v4 = vmul.f32 0.2, %v281_v63  ;;  %v472_v5 = vsel %vm344_vm12, %v280_v60, %v408_v0 }
  0x69   :  { %vm346_vm14 = vcmp.gt.f32.partialorder %v282_v2, 0.0  ;;  %vm347_vm15 = vcmp.gt.f32.partialorder %v283_v3, 0.0  ;;  %v410_v6 = vmul.f32 0.2, %v282_v2  ;;  %v411_v8 = vmul.f32 0.2, %v283_v3 }
  0x6a   :  { %v473_v1 = vsel %vm345_vm13, %v281_v63, %v409_v4 }
  0x6b   :  { %v1211_v9 = vpack.c.bf16 %v473_v1, %v472_v5  ;;  %v474_v10 = vsel %vm346_vm14, %v282_v2, %v410_v6  ;;  %v475_v11 = vsel %vm347_vm15, %v283_v3, %v411_v8 }
  0x6c   :  { %v1216_v12 = vpack.c.bf16 %v475_v11, %v474_v10 }
  0x6d   :  { %1278 = vst [vmem:[%s1634_s3 + $0xf0] sm:$0xff] %v1211_v9  }
  0x6e   :  { %1279 = vst [vmem:[%s1634_s3 + $0xf8] sm:$0xff] %v1216_v12  }

// kernel: forward.10
= control target key start
LH: loop header
LB: loop body
LE: loop exit
PB: predicated region body
PF: predicated region fallthrough
CT: control target
= control target key end

     0   :  { %s2490_s0 = inlined_call_operand.vmem [shape: bf16[512,128], index: 0, kind: input, shape index: {}]   ;;  %s2491_s1 = inlined_call_operand.vmem [shape: bf16[128,128], index: 1, kind: input, shape index: {}]   ;;  %s2492_s2 = inlined_call_operand.vmem [shape: bf16[512,128], index: 2, kind: output, shape index: {0}]   ;;  %s2493_s3 = inlined_call_operand.hbm [shape: f32[1,2,128], index: 3, kind: output, shape index: {1}]  }
   0x1   :  { %v1996_v0 = vld [vmem:[%s2491_s1 + $0x38] sm:$0xff]   ;;  %v1997_v1 = vld [vmem:[%s2491_s1 + $0x30] sm:$0xff]   ;;  %v1998_v2 = vld [vmem:[%s2491_s1 + $0x28] sm:$0xff]  }
   0x2   :  { %1899 = vmatprep.subr.bf16.mxu0 %v1996_v0  ;;  %1979 = vmatprep.subr.bf16.mxu1 %v1996_v0  ;;  %v1999_v3 = vld [vmem:[%s2491_s1 + $0x20] sm:$0xff]   ;;  %v2000_v5 = vld [vmem:[%s2491_s1 + $0x18] sm:$0xff]   ;;  %v2001_v6 = vld [vmem:[%s2491_s1 + $0x10] sm:$0xff]  }
   0x3   :  { %1900 = vmatpush3.bf16.msra.mxu0 %v1996_v0  ;;  %1987 = vmatpush3.bf16.msra.mxu1 %v1996_v0  ;;  %v2004_v4 = vld [vmem:[%s2490_s0] sm:$0xff]   ;;  %v2002_v7 = vld [vmem:[%s2491_s1 + $0x8] sm:$0xff]   ;;  %v2006_v11 = vld [vmem:[%s2490_s0 + $0x10] sm:$0xff]  }
   0x4   :  { %1901 = vmatprep.subr.bf16.mxu0 %v1997_v1  ;;  %1980 = vmatprep.subr.bf16.mxu1 %v1997_v1  ;;  %v2003_v8 = vld [vmem:[%s2491_s1] sm:$0xff]   ;;  %v2005_v10 = vld [vmem:[%s2490_s0 + $0x8] sm:$0xff]   ;;  %v2022_v13 = vld [vmem:[%s2490_s0 + $0x90] sm:$0xff]  }
   0x5   :  { %1915 = vmatprep.mubr.bf16.mxu0 %v2004_v4  ;;  %v2020_v9 = vld [vmem:[%s2490_s0 + $0x80] sm:$0xff]   ;;  %v2021_v12 = vld [vmem:[%s2490_s0 + $0x88] sm:$0xff]   ;;  %v2007_v14 = vld [vmem:[%s2490_s0 + $0x18] sm:$0xff]  }
   0x6   :  { %1947 = vmatprep.mubr.bf16.mxu1 %v2020_v9  ;;  %v2008_v15 = vld [vmem:[%s2490_s0 + $0x20] sm:$0xff]   ;;  %v2023_v16 = vld [vmem:[%s2490_s0 + $0x98] sm:$0xff]  }
   0x7   :  { %1902 = vmatpush3.bf16.msra.mxu0 %v1997_v1  ;;  %1988 = vmatpush3.bf16.msra.mxu1 %v1997_v1  ;;  %v2024_v17 = vld [vmem:[%s2490_s0 + $0xa0] sm:$0xff]  }
   0x8   :  { %1903 = vmatprep.subr.bf16.mxu0 %v1998_v2  ;;  %1981 = vmatprep.subr.bf16.mxu1 %v1998_v2 }
   0xb   :  { %1904 = vmatpush3.bf16.msra.mxu0 %v1998_v2  ;;  %1989 = vmatpush3.bf16.msra.mxu1 %v1998_v2 }
   0xc   :  { %1905 = vmatprep.subr.bf16.mxu0 %v1999_v3  ;;  %1982 = vmatprep.subr.bf16.mxu1 %v1999_v3 }
   0xf   :  { %1906 = vmatpush3.bf16.msra.mxu0 %v1999_v3  ;;  %1990 = vmatpush3.bf16.msra.mxu1 %v1999_v3 }
  0x10   :  { %1907 = vmatprep.subr.bf16.mxu0 %v2000_v5  ;;  %1983 = vmatprep.subr.bf16.mxu1 %v2000_v5 }
  0x13   :  { %1908 = vmatpush3.bf16.msra.mxu0 %v2000_v5  ;;  %1991 = vmatpush3.bf16.msra.mxu1 %v2000_v5 }
  0x14   :  { %1909 = vmatprep.subr.bf16.mxu0 %v2001_v6  ;;  %1984 = vmatprep.subr.bf16.mxu1 %v2001_v6 }
  0x17   :  { %1910 = vmatpush3.bf16.msra.mxu0 %v2001_v6  ;;  %1992 = vmatpush3.bf16.msra.mxu1 %v2001_v6 }
  0x18   :  { %1911 = vmatprep.subr.bf16.mxu0 %v2002_v7  ;;  %1985 = vmatprep.subr.bf16.mxu1 %v2002_v7 }
  0x1b   :  { %1912 = vmatpush3.bf16.msra.mxu0 %v2002_v7  ;;  %1993 = vmatpush3.bf16.msra.mxu1 %v2002_v7 }
  0x1c   :  { %1913 = vmatprep.subr.bf16.mxu0 %v2003_v8  ;;  %1986 = vmatprep.subr.bf16.mxu1 %v2003_v8 }
  0x1f   :  { %1914 = vmatpush3.bf16.msra.mxu0 %v2003_v8  ;;  %1994 = vmatpush3.bf16.msra.mxu1 %v2003_v8 }
  0x22   :  { %1916 = vmatmul.mubr.bf16.vlgmr.msra.gmra.mxu0 %v2005_v10  ;;  %1948 = vmatmul.mubr.bf16.vlgmr.msra.gmra.mxu1 %v2021_v12 }
  0x23   :  { %1919 = vmatprep.mubr.bf16.mxu0 %v2006_v11  ;;  %1951 = vmatprep.mubr.bf16.mxu1 %v2022_v13 }
  0x24   :  { %9 = vsyncpa [#allocation4], 0  ;;  %v2009_v18 = vld [vmem:[%s2490_s0 + $0x28] sm:$0xff]   ;;  %v2010_v20 = vld [vmem:[%s2490_s0 + $0x30] sm:$0xff]  }
  0x25   :  { %v2025_v19 = vld [vmem:[%s2490_s0 + $0xa8] sm:$0xff]   ;;  %v2026_v21 = vld [vmem:[%s2490_s0 + $0xb0] sm:$0xff]   ;;  %v2011_v22 = vld [vmem:[%s2490_s0 + $0x38] sm:$0xff]  }
  0x26   :  { %v2027_v23 = vld [vmem:[%s2490_s0 + $0xb8] sm:$0xff]   ;;  %v2012_v24 = vld [vmem:[%s2490_s0 + $0x40] sm:$0xff]   ;;  %v2013_v26 = vld [vmem:[%s2490_s0 + $0x48] sm:$0xff]  }
  0x27   :  { %v2028_v25 = vld [vmem:[%s2490_s0 + $0xc0] sm:$0xff]   ;;  %v2029_v27 = vld [vmem:[%s2490_s0 + $0xc8] sm:$0xff]   ;;  %v2014_v28 = vld [vmem:[%s2490_s0 + $0x50] sm:$0xff]  }
  0x28   :  { %v2030_v29 = vld [vmem:[%s2490_s0 + $0xd0] sm:$0xff]   ;;  %v2015_v30 = vld [vmem:[%s2490_s0 + $0x58] sm:$0xff]   ;;  %v2016_v32 = vld [vmem:[%s2490_s0 + $0x60] sm:$0xff]  }
  0x29   :  { %v2031_v31 = vld [vmem:[%s2490_s0 + $0xd8] sm:$0xff]   ;;  %v2032_v33 = vld [vmem:[%s2490_s0 + $0xe0] sm:$0xff]   ;;  %v2017_v34 = vld [vmem:[%s2490_s0 + $0x68] sm:$0xff]  }
  0x2a   :  { %1920 = vmatmul.mubr.bf16.gmra.mxu0 %v2007_v14  ;;  %1952 = vmatmul.mubr.bf16.gmra.mxu1 %v2023_v16  ;;  %v2033_v35 = vld [vmem:[%s2490_s0 + $0xe8] sm:$0xff]   ;;  %v2018_v36 = vld [vmem:[%s2490_s0 + $0x70] sm:$0xff]   ;;  %v2019_v38 = vld [vmem:[%s2490_s0 + $0x78] sm:$0xff]  }
  0x2b   :  { %1923 = vmatprep.mubr.bf16.mxu0 %v2008_v15  ;;  %1955 = vmatprep.mubr.bf16.mxu1 %v2024_v17  ;;  %v2034_v37 = vld [vmem:[%s2490_s0 + $0xf0] sm:$0xff]   ;;  %v2035_v39 = vld [vmem:[%s2490_s0 + $0xf8] sm:$0xff]  }
  0x32   :  { %1924 = vmatmul.mubr.bf16.gmra.mxu0 %v2009_v18  ;;  %1956 = vmatmul.mubr.bf16.gmra.mxu1 %v2025_v19 }
  0x33   :  { %1927 = vmatprep.mubr.bf16.mxu0 %v2010_v20  ;;  %1959 = vmatprep.mubr.bf16.mxu1 %v2026_v21 }
  0x3a   :  { %1928 = vmatmul.mubr.bf16.gmra.mxu0 %v2011_v22  ;;  %1960 = vmatmul.mubr.bf16.gmra.mxu1 %v2027_v23 }
  0x3b   :  { %1931 = vmatprep.mubr.bf16.mxu0 %v2012_v24  ;;  %1963 = vmatprep.mubr.bf16.mxu1 %v2028_v25 }
  0x42   :  { %1932 = vmatmul.mubr.bf16.gmra.mxu0 %v2013_v26  ;;  %1964 = vmatmul.mubr.bf16.gmra.mxu1 %v2029_v27 }
  0x43   :  { %1935 = vmatprep.mubr.bf16.mxu0 %v2014_v28  ;;  %1967 = vmatprep.mubr.bf16.mxu1 %v2030_v29 }
  0x4a   :  { %1936 = vmatmul.mubr.bf16.gmra.mxu0 %v2015_v30  ;;  %1968 = vmatmul.mubr.bf16.gmra.mxu1 %v2031_v31 }
  0x4b   :  { %1939 = vmatprep.mubr.bf16.mxu0 %v2016_v32  ;;  %1971 = vmatprep.mubr.bf16.mxu1 %v2032_v33 }
  0x52   :  { %1940 = vmatmul.mubr.bf16.gmra.mxu0 %v2017_v34  ;;  %1972 = vmatmul.mubr.bf16.gmra.mxu1 %v2033_v35 }
  0x53   :  { %1943 = vmatprep.mubr.bf16.mxu0 %v2018_v36  ;;  %1975 = vmatprep.mubr.bf16.mxu1 %v2034_v37 }
  0x5a   :  { %1944 = vmatmul.mubr.bf16.gmra.mxu0 %v2019_v38  ;;  %1976 = vmatmul.mubr.bf16.gmra.mxu1 %v2035_v39 }
  0xe2   :  { %v1917_v40 = vpop.f32.mrf.mxu0  ;;  %v2199_v41 = vpop.f32.mrf.mxu1 }
  0xe3   :  { %v1348_v57 = vmul.f32 %v1917_v40, %v1917_v40 }
  0xe4   :  { %v506_v42 = vpop.f32.mrf.mxu0  ;;  %v2201_v43 = vpop.f32.mrf.mxu1 }
  0xe5   :  { %v1346_v48 = vmul.f32 %v506_v42, %v506_v42 }
  0xe6   :  { %v1918_v44 = vpop.f32.mrf.mxu0  ;;  %v2203_v45 = vpop.f32.mrf.mxu1 }
  0xe7   :  { %v1676_v46 = vpack.c.bf16 %v1918_v44, %v1917_v40  ;;  %v1756_v47 = vpack.c.bf16 %v2203_v45, %v2199_v41  ;;  %v1349_v62 = vmul.f32 %v1918_v44, %v1918_v44 }
  0xe8   :  { %v509_v49 = vpop.f32.mrf.mxu0  ;;  %v2207_v50 = vpop.f32.mrf.mxu1 }
  0xe9   :  { %1828 = vst [vmem:[%s2492_s2 + $0x8] sm:$0xff] %v1676_v46   ;;  %v1671_v51 = vpack.c.bf16 %v509_v49, %v506_v42  ;;  %v1276_v52 = vadd.f32 %v509_v49, %v506_v42  ;;  %v1347_v53 = vmul.f32 %v509_v49, %v509_v49  ;;  %1844 = vst [vmem:[%s2492_s2 + $0x88] sm:$0xff] %v1756_v47  }
  0xea   :  { %v1751_v54 = vpack.c.bf16 %v2207_v50, %v2201_v43  ;;  %v1921_v55 = vpop.f32.mrf.mxu0  ;;  %v2217_v56 = vpop.f32.mrf.mxu1 }
  0xeb   :  { %1672 = vst [vmem:[%s2492_s2] sm:$0xff] %v1671_v51   ;;  %v1277_v58 = vadd.f32 %v1917_v40, %v1276_v52  ;;  %v1410_v59 = vadd.f32 %v1347_v53, %v1346_v48  ;;  %v1352_v17 = vmul.f32 %v1921_v55, %v1921_v55 }
  0xec   :  { %1843 = vst [vmem:[%s2492_s2 + $0x80] sm:$0xff] %v1751_v54   ;;  %v522_v60 = vpop.f32.mrf.mxu0  ;;  %v2225_v61 = vpop.f32.mrf.mxu1 }
  0xed   :  { %v1411_v63 = vadd.f32 %v1410_v59, %v1348_v57  ;;  %v1278_v0 = vadd.f32 %v1918_v44, %v1277_v58  ;;  %v1350_v4 = vmul.f32 %v522_v60, %v522_v60 }
  0xee   :  { %v1922_v1 = vpop.f32.mrf.mxu0  ;;  %v2227_v2 = vpop.f32.mrf.mxu1 }
  0xef   :  { %v1279_v3 = vadd.f32 %v1278_v0, %v522_v60  ;;  %v1412_v5 = vadd.f32 %v1411_v63, %v1349_v62  ;;  %v1686_v6 = vpack.c.bf16 %v1922_v1, %v1921_v55  ;;  %v1766_v8 = vpack.c.bf16 %v2227_v2, %v2217_v56 }
  0xf0   :  { %v525_v7 = vpop.f32.mrf.mxu0  ;;  %v2231_v9 = vpop.f32.mrf.mxu1  ;;  %v1353_v22 = vmul.f32 %v1922_v1, %v1922_v1 }
  0xf1   :  { %v1413_v10 = vadd.f32 %v1412_v5, %v1350_v4  ;;  %1830 = vst [vmem:[%s2492_s2 + $0x18] sm:$0xff] %v1686_v6   ;;  %v1681_v11 = vpack.c.bf16 %v525_v7, %v522_v60  ;;  %v1280_v12 = vadd.f32 %v1279_v3, %v525_v7  ;;  %v1351_v13 = vmul.f32 %v525_v7, %v525_v7 }
  0xf2   :  { %v1925_v14 = vpop.f32.mrf.mxu0  ;;  %1846 = vst [vmem:[%s2492_s2 + $0x98] sm:$0xff] %v1766_v8   ;;  %v1761_v15 = vpack.c.bf16 %v2231_v9, %v2225_v61  ;;  %v2241_v16 = vpop.f32.mrf.mxu1 }
  0xf3   :  { %1829 = vst [vmem:[%s2492_s2 + $0x10] sm:$0xff] %v1681_v11   ;;  %v1281_v18 = vadd.f32 %v1921_v55, %v1280_v12  ;;  %v1414_v19 = vadd.f32 %v1413_v10, %v1351_v13  ;;  %v1356_v42 = vmul.f32 %v1925_v14, %v1925_v14 }
  0xf4   :  { %v538_v20 = vpop.f32.mrf.mxu0  ;;  %1845 = vst [vmem:[%s2492_s2 + $0x90] sm:$0xff] %v1761_v15   ;;  %v2249_v21 = vpop.f32.mrf.mxu1 }
  0xf5   :  { %v1415_v23 = vadd.f32 %v1414_v19, %v1352_v17  ;;  %v1282_v24 = vadd.f32 %v1922_v1, %v1281_v18  ;;  %v1354_v28 = vmul.f32 %v538_v20, %v538_v20 }
  0xf6   :  { %v1926_v25 = vpop.f32.mrf.mxu0  ;;  %v2251_v26 = vpop.f32.mrf.mxu1 }
  0xf7   :  { %v1283_v27 = vadd.f32 %v1282_v24, %v538_v20  ;;  %v1416_v29 = vadd.f32 %v1415_v23, %v1353_v22  ;;  %v1696_v30 = vpack.c.bf16 %v1926_v25, %v1925_v14  ;;  %v1776_v32 = vpack.c.bf16 %v2251_v26, %v2241_v16 }
  0xf8   :  { %v541_v31 = vpop.f32.mrf.mxu0  ;;  %v2255_v33 = vpop.f32.mrf.mxu1  ;;  %v1357_v49 = vmul.f32 %v1926_v25, %v1926_v25 }
  0xf9   :  { %v1417_v34 = vadd.f32 %v1416_v29, %v1354_v28  ;;  %1832 = vst [vmem:[%s2492_s2 + $0x28] sm:$0xff] %v1696_v30   ;;  %v1691_v35 = vpack.c.bf16 %v541_v31, %v538_v20  ;;  %v1284_v36 = vadd.f32 %v1283_v27, %v541_v31  ;;  %v1355_v37 = vmul.f32 %v541_v31, %v541_v31 }
  0xfa   :  { %v1929_v38 = vpop.f32.mrf.mxu0  ;;  %1848 = vst [vmem:[%s2492_s2 + $0xa8] sm:$0xff] %v1776_v32   ;;  %v1771_v39 = vpack.c.bf16 %v2255_v33, %v2249_v21  ;;  %v2265_v40 = vpop.f32.mrf.mxu1 }
  0xfb   :  { %1831 = vst [vmem:[%s2492_s2 + $0x20] sm:$0xff] %v1691_v35   ;;  %v1285_v44 = vadd.f32 %v1925_v14, %v1284_v36  ;;  %v1418_v46 = vadd.f32 %v1417_v34, %v1355_v37  ;;  %v1360_v8 = vmul.f32 %v1929_v38, %v1929_v38 }
  0xfc   :  { %v554_v47 = vpop.f32.mrf.mxu0  ;;  %1847 = vst [vmem:[%s2492_s2 + $0xa0] sm:$0xff] %v1771_v39   ;;  %v2273_v48 = vpop.f32.mrf.mxu1 }
  0xfd   :  { %v1419_v51 = vadd.f32 %v1418_v46, %v1356_v42  ;;  %v1286_v52 = vadd.f32 %v1926_v25, %v1285_v44  ;;  %v1358_v57 = vmul.f32 %v554_v47, %v554_v47 }
  0xfe   :  { %v1930_v53 = vpop.f32.mrf.mxu0  ;;  %v2275_v54 = vpop.f32.mrf.mxu1 }
  0xff   :  { %v1287_v55 = vadd.f32 %v1286_v52, %v554_v47  ;;  %v1420_v58 = vadd.f32 %v1419_v51, %v1357_v49  ;;  %v1706_v59 = vpack.c.bf16 %v1930_v53, %v1929_v38  ;;  %v1786_v62 = vpack.c.bf16 %v2275_v54, %v2265_v40 }
 0x100   :  { %v557_v60 = vpop.f32.mrf.mxu0  ;;  %v2279_v63 = vpop.f32.mrf.mxu1  ;;  %v1361_v14 = vmul.f32 %v1930_v53, %v1930_v53 }
 0x101   :  { %v1421_v0 = vadd.f32 %v1420_v58, %v1358_v57  ;;  %1834 = vst [vmem:[%s2492_s2 + $0x38] sm:$0xff] %v1706_v59   ;;  %v1701_v1 = vpack.c.bf16 %v557_v60, %v554_v47  ;;  %v1288_v3 = vadd.f32 %v1287_v55, %v557_v60  ;;  %v1359_v4 = vmul.f32 %v557_v60, %v557_v60 }
 0x102   :  { %v1933_v5 = vpop.f32.mrf.mxu0  ;;  %1850 = vst [vmem:[%s2492_s2 + $0xb8] sm:$0xff] %v1786_v62   ;;  %v1781_v6 = vpack.c.bf16 %v2279_v63, %v2273_v48  ;;  %v2289_v7 = vpop.f32.mrf.mxu1 }
 0x103   :  { %1833 = vst [vmem:[%s2492_s2 + $0x30] sm:$0xff] %v1701_v1   ;;  %v1289_v10 = vadd.f32 %v1929_v38, %v1288_v3  ;;  %v1422_v11 = vadd.f32 %v1421_v0, %v1359_v4  ;;  %v1364_v37 = vmul.f32 %v1933_v5, %v1933_v5 }
 0x104   :  { %v570_v12 = vpop.f32.mrf.mxu0  ;;  %1849 = vst [vmem:[%s2492_s2 + $0xb0] sm:$0xff] %v1781_v6   ;;  %v2297_v13 = vpop.f32.mrf.mxu1 }
 0x105   :  { %v1423_v15 = vadd.f32 %v1422_v11, %v1360_v8  ;;  %v1290_v17 = vadd.f32 %v1930_v53, %v1289_v10  ;;  %v1362_v22 = vmul.f32 %v570_v12, %v570_v12 }
 0x106   :  { %v1934_v18 = vpop.f32.mrf.mxu0  ;;  %v2299_v19 = vpop.f32.mrf.mxu1 }
 0x107   :  { %v1291_v20 = vadd.f32 %v1290_v17, %v570_v12  ;;  %v1424_v23 = vadd.f32 %v1423_v15, %v1361_v14  ;;  %v1716_v24 = vpack.c.bf16 %v1934_v18, %v1933_v5  ;;  %v1796_v27 = vpack.c.bf16 %v2299_v19, %v2289_v7 }
 0x108   :  { %v573_v25 = vpop.f32.mrf.mxu0  ;;  %v2303_v28 = vpop.f32.mrf.mxu1  ;;  %v1365_v46 = vmul.f32 %v1934_v18, %v1934_v18 }
 0x109   :  { %v1425_v29 = vadd.f32 %v1424_v23, %v1362_v22  ;;  %1836 = vst [vmem:[%s2492_s2 + $0x48] sm:$0xff] %v1716_v24   ;;  %v1711_v30 = vpack.c.bf16 %v573_v25, %v570_v12  ;;  %v1292_v31 = vadd.f32 %v1291_v20, %v573_v25  ;;  %v1363_v32 = vmul.f32 %v573_v25, %v573_v25 }
 0x10a   :  { %v1937_v34 = vpop.f32.mrf.mxu0  ;;  %1852 = vst [vmem:[%s2492_s2 + $0xc8] sm:$0xff] %v1796_v27   ;;  %v1791_v35 = vpack.c.bf16 %v2303_v28, %v2297_v13  ;;  %v2313_v36 = vpop.f32.mrf.mxu1 }
 0x10b   :  { %1835 = vst [vmem:[%s2492_s2 + $0x40] sm:$0xff] %v1711_v30   ;;  %v1293_v38 = vadd.f32 %v1933_v5, %v1292_v31  ;;  %v1426_v39 = vadd.f32 %v1425_v29, %v1363_v32  ;;  %v1368_v10 = vmul.f32 %v1937_v34, %v1937_v34 }
 0x10c   :  { %v586_v42 = vpop.f32.mrf.mxu0  ;;  %1851 = vst [vmem:[%s2492_s2 + $0xc0] sm:$0xff] %v1791_v35   ;;  %v2321_v44 = vpop.f32.mrf.mxu1 }
 0x10d   :  { %v1427_v47 = vadd.f32 %v1426_v39, %v1364_v37  ;;  %v1294_v49 = vadd.f32 %v1934_v18, %v1293_v38  ;;  %v1366_v55 = vmul.f32 %v586_v42, %v586_v42 }
 0x10e   :  { %v1938_v51 = vpop.f32.mrf.mxu0  ;;  %v2323_v52 = vpop.f32.mrf.mxu1 }
 0x10f   :  { %v1295_v53 = vadd.f32 %v1294_v49, %v586_v42  ;;  %v1428_v57 = vadd.f32 %v1427_v47, %v1365_v46  ;;  %v1726_v58 = vpack.c.bf16 %v1938_v51, %v1937_v34  ;;  %v1806_v60 = vpack.c.bf16 %v2323_v52, %v2313_v36 }
 0x110   :  { %v589_v59 = vpop.f32.mrf.mxu0  ;;  %v2327_v62 = vpop.f32.mrf.mxu1  ;;  %v1369_v17 = vmul.f32 %v1938_v51, %v1938_v51 }
 0x111   :  { %v1429_v0 = vadd.f32 %v1428_v57, %v1366_v55  ;;  %1838 = vst [vmem:[%s2492_s2 + $0x58] sm:$0xff] %v1726_v58   ;;  %v1721_v1 = vpack.c.bf16 %v589_v59, %v586_v42  ;;  %v1296_v3 = vadd.f32 %v1295_v53, %v589_v59  ;;  %v1367_v4 = vmul.f32 %v589_v59, %v589_v59 }
 0x112   :  { %v1941_v5 = vpop.f32.mrf.mxu0  ;;  %1854 = vst [vmem:[%s2492_s2 + $0xd8] sm:$0xff] %v1806_v60   ;;  %v1801_v6 = vpack.c.bf16 %v2327_v62, %v2321_v44  ;;  %v2337_v8 = vpop.f32.mrf.mxu1 }
 0x113   :  { %1837 = vst [vmem:[%s2492_s2 + $0x50] sm:$0xff] %v1721_v1   ;;  %v1297_v11 = vadd.f32 %v1937_v34, %v1296_v3  ;;  %v1430_v12 = vadd.f32 %v1429_v0, %v1367_v4  ;;  %v1372_v47 = vmul.f32 %v1941_v5, %v1941_v5 }
 0x114   :  { %v602_v14 = vpop.f32.mrf.mxu0  ;;  %1853 = vst [vmem:[%s2492_s2 + $0xd0] sm:$0xff] %v1801_v6   ;;  %v2345_v15 = vpop.f32.mrf.mxu1 }
 0x115   :  { %v1431_v18 = vadd.f32 %v1430_v12, %v1368_v10  ;;  %v1298_v20 = vadd.f32 %v1938_v51, %v1297_v11  ;;  %v1370_v25 = vmul.f32 %v602_v14, %v602_v14 }
 0x116   :  { %v1942_v22 = vpop.f32.mrf.mxu0  ;;  %v2347_v23 = vpop.f32.mrf.mxu1 }
 0x117   :  { %v1299_v24 = vadd.f32 %v1298_v20, %v602_v14  ;;  %v1432_v27 = vadd.f32 %v1431_v18, %v1369_v17  ;;  %v1736_v29 = vpack.c.bf16 %v1942_v22, %v1941_v5  ;;  %v1816_v31 = vpack.c.bf16 %v2347_v23, %v2337_v8 }
 0x118   :  { %v605_v30 = vpop.f32.mrf.mxu0  ;;  %v2351_v32 = vpop.f32.mrf.mxu1  ;;  %v1373_v57 = vmul.f32 %v1942_v22, %v1942_v22 }
 0x119   :  { %v1433_v34 = vadd.f32 %v1432_v27, %v1370_v25  ;;  %1840 = vst [vmem:[%s2492_s2 + $0x68] sm:$0xff] %v1736_v29   ;;  %v1731_v35 = vpack.c.bf16 %v605_v30, %v602_v14  ;;  %v1300_v37 = vadd.f32 %v1299_v24, %v605_v30  ;;  %v1371_v38 = vmul.f32 %v605_v30, %v605_v30 }
 0x11a   :  { %v1945_v39 = vpop.f32.mrf.mxu0  ;;  %1856 = vst [vmem:[%s2492_s2 + $0xe8] sm:$0xff] %v1816_v31   ;;  %v1811_v42 = vpack.c.bf16 %v2351_v32, %v2345_v15  ;;  %v2361_v46 = vpop.f32.mrf.mxu1  ;;  %v1378_v31 = vmul.f32 %v2201_v43, %v2201_v43 }
 0x11b   :  { %1839 = vst [vmem:[%s2492_s2 + $0x60] sm:$0xff] %v1731_v35   ;;  %v1301_v49 = vadd.f32 %v1941_v5, %v1300_v37  ;;  %v1434_v51 = vadd.f32 %v1433_v34, %v1371_v38  ;;  %v1379_v38 = vmul.f32 %v2207_v50, %v2207_v50 }
 0x11c   :  { %v618_v53 = vpop.f32.mrf.mxu0  ;;  %1855 = vst [vmem:[%s2492_s2 + $0xe0] sm:$0xff] %v1811_v42   ;;  %v2369_v55 = vpop.f32.mrf.mxu1  ;;  %v1380_v42 = vmul.f32 %v2199_v41, %v2199_v41 }
 0x11d   :  { %v1435_v58 = vadd.f32 %v1434_v51, %v1372_v47  ;;  %v1302_v59 = vadd.f32 %v1942_v22, %v1301_v49  ;;  %v1374_v3 = vmul.f32 %v618_v53, %v618_v53  ;;  %v1376_v22 = vmul.f32 %v1945_v39, %v1945_v39 }
 0x11e   :  { %v1946_v60 = vpop.f32.mrf.mxu0  ;;  %v2371_v0 = vpop.f32.mrf.mxu1  ;;  %v1381_v51 = vmul.f32 %v2203_v45, %v2203_v45 }
 0x11f   :  { %v1303_v1 = vadd.f32 %v1302_v59, %v618_v53  ;;  %v1436_v4 = vadd.f32 %v1435_v58, %v1373_v57  ;;  %v1746_v6 = vpack.c.bf16 %v1946_v60, %v1945_v39  ;;  %v1826_v5 = vpack.c.bf16 %v2371_v0, %v2361_v46 }
 0x120   :  { %v621_v10 = vpop.f32.mrf.mxu0  ;;  %v2375_v11 = vpop.f32.mrf.mxu1  ;;  %v1377_v27 = vmul.f32 %v1946_v60, %v1946_v60  ;;  %v1382_v58 = vmul.f32 %v2225_v61, %v2225_v61 }
 0x121   :  { %v1437_v12 = vadd.f32 %v1436_v4, %v1374_v3  ;;  %1842 = vst [vmem:[%s2492_s2 + $0x78] sm:$0xff] %v1746_v6   ;;  %v1741_v14 = vpack.c.bf16 %v621_v10, %v618_v53  ;;  %v1304_v17 = vadd.f32 %v1303_v1, %v621_v10  ;;  %v1375_v18 = vmul.f32 %v621_v10, %v621_v10 }
 0x122   :  { %1858 = vst [vmem:[%s2492_s2 + $0xf8] sm:$0xff] %v1826_v5   ;;  %v1821_v20 = vpack.c.bf16 %v2375_v11, %v2369_v55  ;;  %v1383_v1 = vmul.f32 %v2231_v9, %v2231_v9  ;;  %v1386_v5 = vmul.f32 %v2249_v21, %v2249_v21 }
 0x123   :  { %1841 = vst [vmem:[%s2492_s2 + $0x70] sm:$0xff] %v1741_v14   ;;  %v1305_v24 = vadd.f32 %v1945_v39, %v1304_v17  ;;  %v1438_v25 = vadd.f32 %v1437_v12, %v1375_v18  ;;  %v1387_v17 = vmul.f32 %v2255_v33, %v2255_v33 }
 0x124   :  { %1857 = vst [vmem:[%s2492_s2 + $0xf0] sm:$0xff] %v1821_v20   ;;  %s2058_s2 = smov [#allocation3]  }
 0x125   :  { %v1306_v29 = vadd.f32 %v1946_v60, %v1305_v24  ;;  %v1439_v30 = vadd.f32 %v1438_v25, %v1376_v22  ;;  %v1390_v25 = vmul.f32 %v2273_v48, %v2273_v48  ;;  %s1488_s13 = sshll.u32 %s2058_s2, 4  ;;  %s1489_s13 = int_to_ptr.vmem [resolvable:$true] %s1488_s13 }
 0x126   :  { %s2036_s14 = scalar_lea.vmem %s1489_s13, 32  ;;  %p2041_p1 = scmp.lt.s32.totalorder %s1489_s13, %s1489_s13 }
 0x127   :  { %v1440_v34 = vadd.f32 %v1439_v30, %v1377_v27  ;;  %v1307_v35 = vadd.f32 %v1306_v29, %v2201_v43  ;;  %v1391_v30 = vmul.f32 %v2279_v63, %v2279_v63  ;;  %p2037_p0 = scmp.ne.s32.totalorder %s1489_s13, %s2036_s14  ;;  %p2042_p2 = scmp.lt.s32.totalorder %s2036_s14, %s2036_s14 }
 0x129   :  { %v1308_v37 = vadd.f32 %v1307_v35, %v2207_v50  ;;  %v1441_v39 = vadd.f32 %v1440_v34, %v1378_v31  ;;  %p2043_p3 = por %p2042_p2, %p2041_p1 }
 0x12b   :  { %v1309_v47 = vadd.f32 %v2199_v41, %v1308_v37  ;;  %v1442_v49 = vadd.f32 %v1441_v39, %v1379_v38  ;;  %v1384_v41 = vmul.f32 %v2217_v56, %v2217_v56  ;;  %v1394_v38 = vmul.f32 %v2297_v13, %v2297_v13  ;;  %p2044_p4 = pnand %p2043_p3, %p2037_p0 }
 0x12d   :  { %v1443_v53 = vadd.f32 %v1442_v49, %v1380_v42  ;;  %v1310_v57 = vadd.f32 %v2203_v45, %v1309_v47  ;;  %v1385_v45 = vmul.f32 %v2227_v2, %v2227_v2  ;;  %v1395_v47 = vmul.f32 %v2303_v28, %v2303_v28 }
 0x12f   :  { %v1311_v43 = vadd.f32 %v1310_v57, %v2225_v61  ;;  %v1444_v59 = vadd.f32 %v1443_v53, %v1381_v51 }
 0x131   :  { %v1445_v50 = vadd.f32 %v1444_v59, %v1382_v58  ;;  %v1312_v60 = vadd.f32 %v1311_v43, %v2231_v9  ;;  %v1398_v43 = vmul.f32 %v2321_v44, %v2321_v44 }
 0x133   :  { %v1313_v3 = vadd.f32 %v2217_v56, %v1312_v60  ;;  %v1446_v4 = vadd.f32 %v1445_v50, %v1383_v1  ;;  %v1388_v56 = vmul.f32 %v2241_v16, %v2241_v16  ;;  %v1399_v50 = vmul.f32 %v2327_v62, %v2327_v62 }
 0x135   :  { %v1447_v6 = vadd.f32 %v1446_v4, %v1384_v41  ;;  %v1314_v10 = vadd.f32 %v2227_v2, %v1313_v3  ;;  %v1389_v2 = vmul.f32 %v2251_v26, %v2251_v26  ;;  %v1402_v4 = vmul.f32 %v2345_v15, %v2345_v15 }
 0x137   :  { %v1315_v61 = vadd.f32 %v1314_v10, %v2249_v21  ;;  %v1448_v12 = vadd.f32 %v1447_v6, %v1385_v45  ;;  %v1403_v10 = vmul.f32 %v2351_v32, %v2351_v32 }
 0x139   :  { %v1449_v14 = vadd.f32 %v1448_v12, %v1386_v5  ;;  %v1316_v9 = vadd.f32 %v1315_v61, %v2255_v33 }
 0x13b   :  { %v1317_v18 = vadd.f32 %v2241_v16, %v1316_v9  ;;  %v1450_v20 = vadd.f32 %v1449_v14, %v1387_v17  ;;  %v1392_v16 = vmul.f32 %v2265_v40, %v2265_v40  ;;  %v1406_v9 = vmul.f32 %v2369_v55, %v2369_v55 }
 0x13d   :  { %v1451_v22 = vadd.f32 %v1450_v20, %v1388_v56  ;;  %v1318_v24 = vadd.f32 %v2251_v26, %v1317_v18  ;;  %v1393_v26 = vmul.f32 %v2275_v54, %v2275_v54  ;;  %v1407_v18 = vmul.f32 %v2375_v11, %v2375_v11 }
 0x13f   :  { %v1319_v21 = vadd.f32 %v1318_v24, %v2273_v48  ;;  %v1452_v27 = vadd.f32 %v1451_v22, %v1389_v2 }
 0x141   :  { %v1453_v29 = vadd.f32 %v1452_v27, %v1390_v25  ;;  %v1320_v33 = vadd.f32 %v1319_v21, %v2279_v63 }
 0x143   :  { %v1321_v31 = vadd.f32 %v2265_v40, %v1320_v33  ;;  %v1454_v34 = vadd.f32 %v1453_v29, %v1391_v30  ;;  %v1396_v40 = vmul.f32 %v2289_v7, %v2289_v7 }
 0x145   :  { %v1455_v35 = vadd.f32 %v1454_v34, %v1392_v16  ;;  %v1322_v37 = vadd.f32 %v2275_v54, %v1321_v31  ;;  %v1397_v54 = vmul.f32 %v2299_v19, %v2299_v19 }
 0x147   :  { %v1323_v48 = vadd.f32 %v1322_v37, %v2297_v13  ;;  %v1456_v39 = vadd.f32 %v1455_v35, %v1393_v26 }
 0x149   :  { %v1457_v42 = vadd.f32 %v1456_v39, %v1394_v38  ;;  %v1324_v63 = vadd.f32 %v1323_v48, %v2303_v28 }
 0x14b   :  { %v1325_v49 = vadd.f32 %v2289_v7, %v1324_v63  ;;  %v1458_v51 = vadd.f32 %v1457_v42, %v1395_v47  ;;  %v1400_v7 = vmul.f32 %v2313_v36, %v2313_v36 }
 0x14d   :  { %v1459_v53 = vadd.f32 %v1458_v51, %v1396_v40  ;;  %v1326_v57 = vadd.f32 %v2299_v19, %v1325_v49  ;;  %v1401_v19 = vmul.f32 %v2323_v52, %v2323_v52 }
 0x14f   :  { %v1327_v13 = vadd.f32 %v1326_v57, %v2321_v44  ;;  %v1460_v58 = vadd.f32 %v1459_v53, %v1397_v54 }
 0x151   :  { %v1461_v59 = vadd.f32 %v1460_v58, %v1398_v43  ;;  %v1328_v28 = vadd.f32 %v1327_v13, %v2327_v62 }
 0x153   :  { %v1329_v60 = vadd.f32 %v2313_v36, %v1328_v28  ;;  %v1462_v1 = vadd.f32 %v1461_v59, %v1399_v50  ;;  %v1404_v36 = vmul.f32 %v2337_v8, %v2337_v8 }
 0x155   :  { %v1463_v41 = vadd.f32 %v1462_v1, %v1400_v7  ;;  %v1330_v3 = vadd.f32 %v2323_v52, %v1329_v60  ;;  %v1405_v52 = vmul.f32 %v2347_v23, %v2347_v23 }
 0x157   :  { %v1331_v44 = vadd.f32 %v1330_v3, %v2345_v15  ;;  %v1464_v45 = vadd.f32 %v1463_v41, %v1401_v19 }
 0x159   :  { %v1465_v6 = vadd.f32 %v1464_v45, %v1402_v4  ;;  %v1332_v62 = vadd.f32 %v1331_v44, %v2351_v32 }
 0x15b   :  { %v1333_v61 = vadd.f32 %v2337_v8, %v1332_v62  ;;  %v1466_v5 = vadd.f32 %v1465_v6, %v1403_v10  ;;  %v1408_v8 = vmul.f32 %v2361_v46, %v2361_v46 }
 0x15d   :  { %v1467_v12 = vadd.f32 %v1466_v5, %v1404_v36  ;;  %v1334_v14 = vadd.f32 %v2347_v23, %v1333_v61  ;;  %v1409_v23 = vmul.f32 %v2371_v0, %v2371_v0 }
 0x15f   :  { %v1335_v15 = vadd.f32 %v1334_v14, %v2369_v55  ;;  %v1468_v17 = vadd.f32 %v1467_v12, %v1405_v52 }
 0x161   :  { %v1469_v56 = vadd.f32 %v1468_v17, %v1406_v9  ;;  %v1336_v32 = vadd.f32 %v1335_v15, %v2375_v11 }
 0x163   :  { %v1337_v20 = vadd.f32 %v2361_v46, %v1336_v32  ;;  %v1470_v2 = vadd.f32 %v1469_v56, %v1407_v18 }
 0x165   :  { %v1338_v22 = vadd.f32 %v2371_v0, %v1337_v20  ;;  %v1471_v24 = vadd.f32 %v1470_v2, %v1408_v8 }
 0x167   :  { %v1339_v55 = vrot.slane %v1338_v22, 4  ;;  %v1472_v21 = vadd.f32 %v1471_v24, %v1409_v23 }
 0x169   :  { %v1340_v25 = vadd.f32 %v1339_v55, %v1338_v22  ;;  %v1473_v27 = vrot.slane %v1472_v21, 4 }
 0x16b   :  { %v1341_v29 = vrot.slane %v1340_v25, 2  ;;  %v1474_v33 = vadd.f32 %v1473_v27, %v1472_v21 }
 0x16d   :  { %v1342_v30 = vadd.f32 %v1341_v29, %v1340_v25  ;;  %v1475_v11 = vrot.slane %v1474_v33, 2 }
 0x16f   :  { %v1343_v16 = vrot.slane %v1342_v30, 1  ;;  %v1476_v31 = vadd.f32 %v1475_v11, %v1474_v33 }
 0x171   :  { %v1344_v46 = vadd.f32 %v1343_v16, %v1342_v30  ;;  %v1477_v34 = vrot.slane %v1476_v31, 1 }
 0x173   :  { %1345 = vst [vmem:[#allocation3] sm:$0x1] %v1344_v46  ;;  %v1478_v26 = vadd.f32 %v1477_v34, %v1476_v31 }
 0x175   :  { %1479 = vst [vmem:[#allocation3 + $0x1] sm:$0x1] %v1478_v26 }
 0x176   :  { %2047 = shalt.err (!%p2044_p4)
}
 0x177   :  { %1491 = dma.vmem_to_hbm [thread:$0]  %s1489_s13, 32, %s2493_s3, [#allocation4]  }
 0x178   :  { %2056 = dma.done.wait [#allocation4], 32  }
 0x179   :  { %2057 = vsyncadd [#allocation4], 4294967264 }
 0x17a   :  { %1497 = vsyncpa [#allocation4], 1 }

// kernel: forward.12
= control target key start
LH: loop header
LB: loop body
LE: loop exit
PB: predicated region body
PF: predicated region fallthrough
CT: control target
= control target key end

     0   :  { %s978_s1 = inlined_call_operand.vmem [shape: bf16[256,128], index: 1, kind: input, shape index: {}]   ;;  %s979_s0 = inlined_call_operand.vmem [shape: bf16[128,256], index: 0, kind: input, shape index: {}]   ;;  %s980_s2 = inlined_call_operand.vmem [shape: bf16[128,128], index: 2, kind: output, shape index: {0}]   ;;  %s981_s3 = inlined_call_operand.vmem [shape: f32[1,2,128], index: 3, kind: output, shape index: {1}]  }
   0x1   :  { %v768_v0 = vld [vmem:[%s978_s1 + $0x78] sm:$0xff]   ;;  %v770_v2 = vld [vmem:[%s978_s1 + $0x70] sm:$0xff]   ;;  %v772_v4 = vld [vmem:[%s978_s1 + $0x68] sm:$0xff]  }
   0x2   :  { %v769_v1 = vld [vmem:[%s978_s1 + $0x38] sm:$0xff]   ;;  %688 = vmatprep.subr.bf16.mxu0 %v768_v0  ;;  %752 = vmatprep.subr.bf16.mxu1 %v768_v0  ;;  %v771_v3 = vld [vmem:[%s978_s1 + $0x30] sm:$0xff]   ;;  %v773_v5 = vld [vmem:[%s978_s1 + $0x28] sm:$0xff]  }
   0x3   :  { %689 = vmatpush3.bf16.msra.mxu0 %v769_v1  ;;  %760 = vmatpush3.bf16.msra.mxu1 %v769_v1  ;;  %v774_v6 = vld [vmem:[%s978_s1 + $0x60] sm:$0xff]   ;;  %v776_v8 = vld [vmem:[%s978_s1 + $0x58] sm:$0xff]   ;;  %v778_v10 = vld [vmem:[%s978_s1 + $0x50] sm:$0xff]  }
   0x4   :  { %690 = vmatprep.subr.bf16.mxu0 %v770_v2  ;;  %753 = vmatprep.subr.bf16.mxu1 %v770_v2  ;;  %v775_v7 = vld [vmem:[%s978_s1 + $0x20] sm:$0xff]   ;;  %v777_v9 = vld [vmem:[%s978_s1 + $0x18] sm:$0xff]   ;;  %v779_v12 = vld [vmem:[%s978_s1 + $0x10] sm:$0xff]  }
   0x5   :  { %v786_v11 = vld [vmem:[%s979_s0 + $0x4] ss:$8 sps:$4 sm:$0xff]   ;;  %v784_v18 = vld [vmem:[%s979_s0] ss:$8 sps:$4 sm:$0xff]   ;;  %v787_v20 = vld [vmem:[%s979_s0 + $0x14] ss:$8 sps:$4 sm:$0xff]  }
   0x6   :  { %v792_v13 = vld [vmem:[%s979_s0 + $0x44] ss:$8 sps:$4 sm:$0xff]   ;;  %311 = vmatprep.mubr.bf16.mxu0 %v786_v11  ;;  %v790_v19 = vld [vmem:[%s979_s0 + $0x40] ss:$8 sps:$4 sm:$0xff]   ;;  %v796_v21 = vld [vmem:[%s979_s0 + $0x54] ss:$8 sps:$4 sm:$0xff]  }
   0x7   :  { %691 = vmatpush3.bf16.msra.mxu0 %v771_v3  ;;  %761 = vmatpush3.bf16.msra.mxu1 %v771_v3  ;;  %v780_v14 = vld [vmem:[%s978_s1 + $0x48] sm:$0xff]   ;;  %v782_v16 = vld [vmem:[%s978_s1 + $0x40] sm:$0xff]   ;;  %v789_v22 = vld [vmem:[%s979_s0 + $0x10] ss:$8 sps:$4 sm:$0xff]  }
   0x8   :  { %692 = vmatprep.subr.bf16.mxu0 %v772_v4  ;;  %754 = vmatprep.subr.bf16.mxu1 %v772_v4  ;;  %v781_v15 = vld [vmem:[%s978_s1 + $0x8] sm:$0xff]   ;;  %v783_v17 = vld [vmem:[%s978_s1] sm:$0xff]   ;;  %v798_v23 = vld [vmem:[%s979_s0 + $0x50] ss:$8 sps:$4 sm:$0xff]  }
   0x9   :  { %343 = vmatprep.mubr.bf16.mxu1 %v792_v13  ;;  %v793_v24 = vld [vmem:[%s979_s0 + $0x24] ss:$8 sps:$4 sm:$0xff]   ;;  %v795_v26 = vld [vmem:[%s979_s0 + $0x20] ss:$8 sps:$4 sm:$0xff]   ;;  %v799_v28 = vld [vmem:[%s979_s0 + $0x34] ss:$8 sps:$4 sm:$0xff]  }
   0xa   :  { %v802_v25 = vld [vmem:[%s979_s0 + $0x64] ss:$8 sps:$4 sm:$0xff]   ;;  %v804_v27 = vld [vmem:[%s979_s0 + $0x60] ss:$8 sps:$4 sm:$0xff]   ;;  %v805_v29 = vld [vmem:[%s979_s0 + $0x74] ss:$8 sps:$4 sm:$0xff]  }
   0xb   :  { %693 = vmatpush3.bf16.msra.mxu0 %v773_v5  ;;  %762 = vmatpush3.bf16.msra.mxu1 %v773_v5  ;;  %v801_v30 = vld [vmem:[%s979_s0 + $0x30] ss:$8 sps:$4 sm:$0xff]  }
   0xc   :  { %694 = vmatprep.subr.bf16.mxu0 %v774_v6  ;;  %755 = vmatprep.subr.bf16.mxu1 %v774_v6  ;;  %v807_v31 = vld [vmem:[%s979_s0 + $0x70] ss:$8 sps:$4 sm:$0xff]  }
   0xf   :  { %695 = vmatpush3.bf16.msra.mxu0 %v775_v7  ;;  %763 = vmatpush3.bf16.msra.mxu1 %v775_v7 }
  0x10   :  { %696 = vmatprep.subr.bf16.mxu0 %v776_v8  ;;  %756 = vmatprep.subr.bf16.mxu1 %v776_v8 }
  0x13   :  { %697 = vmatpush3.bf16.msra.mxu0 %v777_v9  ;;  %764 = vmatpush3.bf16.msra.mxu1 %v777_v9 }
  0x14   :  { %698 = vmatprep.subr.bf16.mxu0 %v778_v10  ;;  %757 = vmatprep.subr.bf16.mxu1 %v778_v10 }
  0x17   :  { %699 = vmatpush3.bf16.msra.mxu0 %v779_v12  ;;  %765 = vmatpush3.bf16.msra.mxu1 %v779_v12 }
  0x18   :  { %700 = vmatprep.subr.bf16.mxu0 %v780_v14  ;;  %758 = vmatprep.subr.bf16.mxu1 %v780_v14 }
  0x1b   :  { %701 = vmatpush3.bf16.msra.mxu0 %v781_v15  ;;  %766 = vmatpush3.bf16.msra.mxu1 %v781_v15 }
  0x1c   :  { %702 = vmatprep.subr.bf16.mxu0 %v782_v16  ;;  %759 = vmatprep.subr.bf16.mxu1 %v782_v16 }
  0x1f   :  { %703 = vmatpush3.bf16.msra.mxu0 %v783_v17  ;;  %767 = vmatpush3.bf16.msra.mxu1 %v783_v17 }
  0x22   :  { %312 = vmatmul.mubr.bf16.vlgmr.msra.gmra.mxu0 %v784_v18  ;;  %344 = vmatmul.mubr.bf16.vlgmr.msra.gmra.mxu1 %v790_v19 }
  0x23   :  { %319 = vmatprep.mubr.bf16.mxu0 %v787_v20  ;;  %351 = vmatprep.mubr.bf16.mxu1 %v796_v21 }
  0x2a   :  { %320 = vmatmul.mubr.bf16.gmra.mxu0 %v789_v22  ;;  %352 = vmatmul.mubr.bf16.gmra.mxu1 %v798_v23 }
  0x2b   :  { %327 = vmatprep.mubr.bf16.mxu0 %v793_v24  ;;  %359 = vmatprep.mubr.bf16.mxu1 %v802_v25 }
  0x32   :  { %328 = vmatmul.mubr.bf16.gmra.mxu0 %v795_v26  ;;  %360 = vmatmul.mubr.bf16.gmra.mxu1 %v804_v27 }
  0x33   :  { %335 = vmatprep.mubr.bf16.mxu0 %v799_v28  ;;  %367 = vmatprep.mubr.bf16.mxu1 %v805_v29 }
  0x3a   :  { %336 = vmatmul.mubr.bf16.gmra.mxu0 %v801_v30  ;;  %368 = vmatmul.mubr.bf16.gmra.mxu1 %v807_v31 }
  0xe2   :  { %v704_v32 = vpop.f32.mrf.mxu0  ;;  %v728_v33 = vpop.f32.mrf.mxu1 }
  0xe4   :  { %v705_v34 = vpop.f32.mrf.mxu0  ;;  %v729_v35 = vpop.f32.mrf.mxu1 }
  0xe5   :  { %v924_v38 = vadd.f32 %v729_v35, %v728_v33  ;;  %v706_v41 = vadd.f32 %v705_v34, %v704_v32 }
  0xe6   :  { %v707_v36 = vpop.f32.mrf.mxu0  ;;  %v731_v37 = vpop.f32.mrf.mxu1 }
  0xe7   :  { %v529_v1 = vmul.f32 %v706_v41, %v706_v41 }
  0xe8   :  { %v708_v39 = vpop.f32.mrf.mxu0  ;;  %v732_v40 = vpop.f32.mrf.mxu1 }
  0xe9   :  { %v709_v42 = vadd.f32 %v708_v39, %v707_v36  ;;  %v926_v43 = vadd.f32 %v732_v40, %v731_v37 }
  0xea   :  { %v710_v44 = vpop.f32.mrf.mxu0  ;;  %v734_v45 = vpop.f32.mrf.mxu1 }
  0xeb   :  { %v644_v46 = vpack.c.bf16 %v709_v42, %v706_v41  ;;  %v664_v47 = vpack.c.bf16 %v926_v43, %v924_v38  ;;  %v530_v62 = vmul.f32 %v709_v42, %v709_v42  ;;  %v507_v6 = vadd.f32 %v709_v42, %v706_v41 }
  0xec   :  { %v711_v48 = vpop.f32.mrf.mxu0  ;;  %v735_v49 = vpop.f32.mrf.mxu1 }
  0xed   :  { %645 = vst [vmem:[%s980_s2] sm:$0xff] %v644_v46   ;;  %684 = vst [vmem:[%s980_s2 + $0x20] sm:$0xff] %v664_v47   ;;  %v936_v52 = vadd.f32 %v735_v49, %v734_v45  ;;  %v712_v55 = vadd.f32 %v711_v48, %v710_v44  ;;  %v545_v8 = vadd.f32 %v530_v62, %v529_v1 }
  0xee   :  { %v713_v50 = vpop.f32.mrf.mxu0  ;;  %v737_v51 = vpop.f32.mrf.mxu1  ;;  %v537_v47 = vmul.f32 %v924_v38, %v924_v38 }
  0xef   :  { %v531_v2 = vmul.f32 %v712_v55, %v712_v55  ;;  %v508_v12 = vadd.f32 %v712_v55, %v507_v6 }
  0xf0   :  { %v714_v53 = vpop.f32.mrf.mxu0  ;;  %v738_v54 = vpop.f32.mrf.mxu1 }
  0xf1   :  { %v715_v56 = vadd.f32 %v714_v53, %v713_v50  ;;  %v938_v57 = vadd.f32 %v738_v54, %v737_v51  ;;  %v546_v15 = vadd.f32 %v545_v8, %v531_v2  ;;  %v538_v50 = vmul.f32 %v926_v43, %v926_v43 }
  0xf2   :  { %v716_v58 = vpop.f32.mrf.mxu0  ;;  %v740_v59 = vpop.f32.mrf.mxu1  ;;  %v539_v54 = vmul.f32 %v936_v52, %v936_v52 }
  0xf3   :  { %v649_v60 = vpack.c.bf16 %v715_v56, %v712_v55  ;;  %v669_v61 = vpack.c.bf16 %v938_v57, %v936_v52  ;;  %v532_v9 = vmul.f32 %v715_v56, %v715_v56  ;;  %v509_v19 = vadd.f32 %v715_v56, %v508_v12 }
  0xf4   :  { %v717_v63 = vpop.f32.mrf.mxu0  ;;  %v741_v0 = vpop.f32.mrf.mxu1 }
  0xf5   :  { %681 = vst [vmem:[%s980_s2 + $0x8] sm:$0xff] %v649_v60   ;;  %685 = vst [vmem:[%s980_s2 + $0x28] sm:$0xff] %v669_v61   ;;  %v718_v3 = vadd.f32 %v717_v63, %v716_v58  ;;  %v742_v7 = vadd.f32 %v741_v0, %v740_v59  ;;  %v547_v22 = vadd.f32 %v546_v15, %v532_v9 }
  0xf6   :  { %v719_v4 = vpop.f32.mrf.mxu0  ;;  %v743_v5 = vpop.f32.mrf.mxu1 }
  0xf7   :  { %v533_v16 = vmul.f32 %v718_v3, %v718_v3  ;;  %v510_v26 = vadd.f32 %v718_v3, %v509_v19  ;;  %v541_v60 = vmul.f32 %v742_v7, %v742_v7 }
  0xf8   :  { %v720_v10 = vpop.f32.mrf.mxu0  ;;  %v744_v11 = vpop.f32.mrf.mxu1 }
  0xf9   :  { %v721_v13 = vadd.f32 %v720_v10, %v719_v4  ;;  %v745_v14 = vadd.f32 %v744_v11, %v743_v5  ;;  %v548_v28 = vadd.f32 %v547_v22, %v533_v16 }
  0xfa   :  { %v722_v17 = vpop.f32.mrf.mxu0  ;;  %v746_v18 = vpop.f32.mrf.mxu1 }
  0xfb   :  { %v654_v20 = vpack.c.bf16 %v721_v13, %v718_v3  ;;  %v674_v21 = vpack.c.bf16 %v745_v14, %v742_v7  ;;  %v534_v23 = vmul.f32 %v721_v13, %v721_v13  ;;  %v511_v31 = vadd.f32 %v721_v13, %v510_v26 }
  0xfc   :  { %v723_v24 = vpop.f32.mrf.mxu0  ;;  %v747_v25 = vpop.f32.mrf.mxu1  ;;  %v542_v0 = vmul.f32 %v745_v14, %v745_v14 }
  0xfd   :  { %682 = vst [vmem:[%s980_s2 + $0x10] sm:$0xff] %v654_v20   ;;  %v724_v27 = vadd.f32 %v723_v24, %v722_v17  ;;  %686 = vst [vmem:[%s980_s2 + $0x30] sm:$0xff] %v674_v21   ;;  %v748_v33 = vadd.f32 %v747_v25, %v746_v18  ;;  %v549_v34 = vadd.f32 %v548_v28, %v534_v23 }
  0xfe   :  { %v725_v29 = vpop.f32.mrf.mxu0  ;;  %v749_v30 = vpop.f32.mrf.mxu1 }
  0xff   :  { %v535_v32 = vmul.f32 %v724_v27, %v724_v27  ;;  %v512_v37 = vadd.f32 %v724_v27, %v511_v31  ;;  %v543_v3 = vmul.f32 %v748_v33, %v748_v33 }
 0x100   :  { %v726_v35 = vpop.f32.mrf.mxu0  ;;  %v750_v36 = vpop.f32.mrf.mxu1 }
 0x101   :  { %v727_v39 = vadd.f32 %v726_v35, %v725_v29  ;;  %v751_v40 = vadd.f32 %v750_v36, %v749_v30  ;;  %v550_v41 = vadd.f32 %v549_v34, %v535_v32 }
 0x103   :  { %v659_v42 = vpack.c.bf16 %v727_v39, %v724_v27  ;;  %v513_v44 = vadd.f32 %v727_v39, %v512_v37  ;;  %v536_v45 = vmul.f32 %v727_v39, %v727_v39  ;;  %v679_v46 = vpack.c.bf16 %v751_v40, %v748_v33 }
 0x104   :  { %v544_v6 = vmul.f32 %v751_v40, %v751_v40 }
 0x105   :  { %683 = vst [vmem:[%s980_s2 + $0x18] sm:$0xff] %v659_v42   ;;  %v514_v48 = vadd.f32 %v924_v38, %v513_v44  ;;  %v551_v49 = vadd.f32 %v550_v41, %v536_v45  ;;  %687 = vst [vmem:[%s980_s2 + $0x38] sm:$0xff] %v679_v46   ;;  %v540_v38 = vmul.f32 %v938_v57, %v938_v57 }
 0x107   :  { %v515_v51 = vadd.f32 %v926_v43, %v514_v48  ;;  %v552_v53 = vadd.f32 %v551_v49, %v537_v47 }
 0x109   :  { %v553_v55 = vadd.f32 %v552_v53, %v538_v50  ;;  %v516_v56 = vadd.f32 %v936_v52, %v515_v51 }
 0x10b   :  { %v517_v58 = vadd.f32 %v938_v57, %v516_v56  ;;  %v554_v59 = vadd.f32 %v553_v55, %v539_v54 }
 0x10d   :  { %v518_v61 = vadd.f32 %v742_v7, %v517_v58  ;;  %v555_v62 = vadd.f32 %v554_v59, %v540_v38 }
 0x10f   :  { %v519_v63 = vadd.f32 %v745_v14, %v518_v61  ;;  %v556_v1 = vadd.f32 %v555_v62, %v541_v60 }
 0x111   :  { %v557_v43 = vadd.f32 %v556_v1, %v542_v0  ;;  %v520_v2 = vadd.f32 %v748_v33, %v519_v63 }
 0x113   :  { %v558_v4 = vadd.f32 %v557_v43, %v543_v3  ;;  %v521_v5 = vadd.f32 %v751_v40, %v520_v2 }
 0x115   :  { %v522_v8 = vrot.slane %v521_v5, 4  ;;  %v559_v52 = vadd.f32 %v558_v4, %v544_v6 }
 0x117   :  { %v523_v9 = vadd.f32 %v522_v8, %v521_v5  ;;  %v560_v10 = vrot.slane %v559_v52, 4 }
 0x119   :  { %v524_v11 = vrot.slane %v523_v9, 2  ;;  %v561_v12 = vadd.f32 %v560_v10, %v559_v52 }
 0x11b   :  { %v525_v57 = vadd.f32 %v524_v11, %v523_v9  ;;  %v562_v13 = vrot.slane %v561_v12, 2 }
 0x11d   :  { %v526_v15 = vrot.slane %v525_v57, 1  ;;  %v563_v7 = vadd.f32 %v562_v13, %v561_v12 }
 0x11f   :  { %v527_v16 = vadd.f32 %v526_v15, %v525_v57  ;;  %v564_v17 = vrot.slane %v563_v7, 1 }
 0x121   :  { %528 = vst [vmem:[%s981_s3] sm:$0x1] %v527_v16  ;;  %v565_v14 = vadd.f32 %v564_v17, %v563_v7 }
 0x123   :  { %566 = vst [vmem:[%s981_s3 + $0x1] sm:$0x1] %v565_v14 }

// kernel: forward.13
= control target key start
LH: loop header
LB: loop body
LE: loop exit
PB: predicated region body
PF: predicated region fallthrough
CT: control target
= control target key end

     0   :  { %s455_s0 = inlined_call_operand.vmem [shape: bf16[128,128], index: 0, kind: input, shape index: {}]   ;;  %s456_s1 = inlined_call_operand.vmem [shape: f32[1,128], index: 1, kind: input, shape index: {}]   ;;  %s457_s2 = inlined_call_operand.vmem [shape: f32[1,128], index: 2, kind: input, shape index: {}]   ;;  %s458_s3 = inlined_call_operand.vmem [shape: bf16[128,128], index: 3, kind: output, shape index: {}]  }
   0x1   :  { %v259_v0 = vld [vmem:[%s455_s0] sm:$0xff]   ;;  %v330_v4 = vld [vmem:[%s455_s0 + $0x8] sm:$0xff]   ;;  %v331_v5 = vld [vmem:[%s455_s0 + $0x10] sm:$0xff]  }
   0x2   :  { %v370_v1 = vld [vmem:[%s456_s1] ss:$0 sm:$0xff]  ;;  %v260_v2 = vunpack.c.l.bf16 %v259_v0  ;;  %v261_v3 = vunpack.c.h.bf16 %v259_v0  ;;  %v332_v6 = vld [vmem:[%s455_s0 + $0x18] sm:$0xff]   ;;  %v264_v8 = vunpack.c.l.bf16 %v330_v4  ;;  %v265_v9 = vunpack.c.h.bf16 %v330_v4  ;;  %v334_v35 = vld [vmem:[%s455_s0 + $0x28] sm:$0xff]  }
   0x3   :  { %v384_v7 = vld [vmem:[%s457_s2] ss:$0 sm:$0xff]  ;;  %v268_v10 = vunpack.c.l.bf16 %v331_v5  ;;  %v269_v11 = vunpack.c.h.bf16 %v331_v5  ;;  %v272_v14 = vunpack.c.l.bf16 %v332_v6  ;;  %v273_v15 = vunpack.c.h.bf16 %v332_v6  ;;  %v335_v48 = vld [vmem:[%s455_s0 + $0x30] sm:$0xff]   ;;  %v336_v4 = vld [vmem:[%s455_s0 + $0x38] sm:$0xff]  }
   0x4   :  { %v53_v12 = vmul.f32 %v260_v2, %v370_v1  ;;  %v54_v13 = vmul.f32 %v261_v3, %v370_v1  ;;  %v55_v16 = vmul.f32 %v264_v8, %v370_v1  ;;  %v56_v17 = vmul.f32 %v265_v9, %v370_v1  ;;  %v333_v34 = vld [vmem:[%s455_s0 + $0x20] sm:$0xff]  }
   0x5   :  { %v57_v18 = vmul.f32 %v268_v10, %v370_v1  ;;  %v58_v19 = vmul.f32 %v269_v11, %v370_v1  ;;  %v59_v22 = vmul.f32 %v272_v14, %v370_v1  ;;  %v60_v23 = vmul.f32 %v273_v15, %v370_v1 }
   0x6   :  { %v76_v20 = vadd.f32 %v384_v7, %v53_v12  ;;  %v77_v21 = vadd.f32 %v384_v7, %v54_v13  ;;  %v78_v24 = vadd.f32 %v384_v7, %v55_v16  ;;  %v79_v25 = vadd.f32 %v384_v7, %v56_v17 }
   0x7   :  { %v80_v26 = vadd.f32 %v384_v7, %v57_v18  ;;  %v81_v27 = vadd.f32 %v384_v7, %v58_v19  ;;  %v82_v42 = vadd.f32 %v384_v7, %v59_v22  ;;  %v83_v43 = vadd.f32 %v384_v7, %v60_v23 }
   0x8   :  { %vm92_vm0 = vcmp.gt.f32.partialorder %v76_v20, 0.0  ;;  %vm93_vm1 = vcmp.gt.f32.partialorder %v77_v21, 0.0  ;;  %v108_v28 = vmul.f32 0.2, %v76_v20  ;;  %v109_v29 = vmul.f32 0.2, %v77_v21 }
   0x9   :  { %vm94_vm2 = vcmp.gt.f32.partialorder %v78_v24, 0.0  ;;  %vm95_vm3 = vcmp.gt.f32.partialorder %v79_v25, 0.0  ;;  %v110_v30 = vmul.f32 0.2, %v78_v24  ;;  %v111_v31 = vmul.f32 0.2, %v79_v25 }
   0xa   :  { %v124_v32 = vsel %vm92_vm0, %v76_v20, %v108_v28  ;;  %v125_v33 = vsel %vm93_vm1, %v77_v21, %v109_v29  ;;  %vm96_vm4 = vcmp.gt.f32.partialorder %v80_v26, 0.0  ;;  %vm97_vm5 = vcmp.gt.f32.partialorder %v81_v27, 0.0 }
   0xb   :  { %v293_v36 = vpack.c.bf16 %v125_v33, %v124_v32  ;;  %v126_v37 = vsel %vm94_vm2, %v78_v24, %v110_v30  ;;  %v127_v38 = vsel %vm95_vm3, %v79_v25, %v111_v31  ;;  %v112_v39 = vmul.f32 0.2, %v80_v26 }
   0xc   :  { %v298_v40 = vpack.c.bf16 %v127_v38, %v126_v37  ;;  %v113_v41 = vmul.f32 0.2, %v81_v27  ;;  %v276_v45 = vunpack.c.l.bf16 %v333_v34  ;;  %v277_v46 = vunpack.c.h.bf16 %v333_v34 }
   0xd   :  { %294 = vst [vmem:[%s458_s3] sm:$0xff] %v293_v36   ;;  %v128_v44 = vsel %vm96_vm4, %v80_v26, %v112_v39  ;;  %v280_v47 = vunpack.c.l.bf16 %v334_v35  ;;  %vm98_vm6 = vcmp.gt.f32.partialorder %v82_v42, 0.0  ;;  %vm99_vm7 = vcmp.gt.f32.partialorder %v83_v43, 0.0 }
   0xe   :  { %337 = vst [vmem:[%s458_s3 + $0x8] sm:$0xff] %v298_v40   ;;  %v129_v49 = vsel %vm97_vm5, %v81_v27, %v113_v41  ;;  %v114_v50 = vmul.f32 0.2, %v82_v42  ;;  %v115_v52 = vmul.f32 0.2, %v83_v43  ;;  %v61_v53 = vmul.f32 %v276_v45, %v370_v1 }
   0xf   :  { %v303_v51 = vpack.c.bf16 %v129_v49, %v128_v44  ;;  %v62_v54 = vmul.f32 %v277_v46, %v370_v1  ;;  %v281_v56 = vunpack.c.h.bf16 %v334_v35  ;;  %v63_v57 = vmul.f32 %v280_v47, %v370_v1 }
  0x10   :  { %v130_v55 = vsel %vm98_vm6, %v82_v42, %v114_v50  ;;  %v284_v58 = vunpack.c.l.bf16 %v335_v48  ;;  %v131_v59 = vsel %vm99_vm7, %v83_v43, %v115_v52  ;;  %v84_v60 = vadd.f32 %v384_v7, %v61_v53 }
  0x11   :  { %338 = vst [vmem:[%s458_s3 + $0x10] sm:$0xff] %v303_v51   ;;  %v85_v61 = vadd.f32 %v384_v7, %v62_v54  ;;  %v285_v62 = vunpack.c.h.bf16 %v335_v48  ;;  %v308_v63 = vpack.c.bf16 %v131_v59, %v130_v55  ;;  %v64_v0 = vmul.f32 %v281_v56, %v370_v1 }
  0x12   :  { %v86_v2 = vadd.f32 %v384_v7, %v63_v57  ;;  %v65_v3 = vmul.f32 %v284_v58, %v370_v1  ;;  %vm100_vm8 = vcmp.gt.f32.partialorder %v84_v60, 0.0  ;;  %v116_v5 = vmul.f32 0.2, %v84_v60 }
  0x13   :  { %vm101_vm9 = vcmp.gt.f32.partialorder %v85_v61, 0.0  ;;  %v117_v6 = vmul.f32 0.2, %v85_v61  ;;  %339 = vst [vmem:[%s458_s3 + $0x18] sm:$0xff] %v308_v63   ;;  %v87_v8 = vadd.f32 %v384_v7, %v64_v0  ;;  %v66_v10 = vmul.f32 %v285_v62, %v370_v1 }
  0x14   :  { %vm102_vm10 = vcmp.gt.f32.partialorder %v86_v2, 0.0  ;;  %v118_v9 = vmul.f32 0.2, %v86_v2  ;;  %v132_v11 = vsel %vm100_vm8, %v84_v60, %v116_v5  ;;  %v88_v13 = vadd.f32 %v384_v7, %v65_v3 }
  0x15   :  { %v133_v12 = vsel %vm101_vm9, %v85_v61, %v117_v6  ;;  %v288_v14 = vunpack.c.l.bf16 %v336_v4  ;;  %vm103_vm11 = vcmp.gt.f32.partialorder %v87_v8, 0.0  ;;  %v119_v16 = vmul.f32 0.2, %v87_v8 }
  0x16   :  { %v313_v15 = vpack.c.bf16 %v133_v12, %v132_v11  ;;  %v134_v17 = vsel %vm102_vm10, %v86_v2, %v118_v9  ;;  %v89_v18 = vadd.f32 %v384_v7, %v66_v10  ;;  %vm104_vm12 = vcmp.gt.f32.partialorder %v88_v13, 0.0 }
  0x17   :  { %v120_v19 = vmul.f32 0.2, %v88_v13  ;;  %v289_v20 = vunpack.c.h.bf16 %v336_v4  ;;  %v135_v21 = vsel %vm103_vm11, %v87_v8, %v119_v16  ;;  %v67_v22 = vmul.f32 %v288_v14, %v370_v1 }
  0x18   :  { %340 = vst [vmem:[%s458_s3 + $0x20] sm:$0xff] %v313_v15   ;;  %v318_v23 = vpack.c.bf16 %v135_v21, %v134_v17  ;;  %vm105_vm13 = vcmp.gt.f32.partialorder %v89_v18, 0.0  ;;  %v121_v24 = vmul.f32 0.2, %v89_v18 }
  0x19   :  { %v136_v25 = vsel %vm104_vm12, %v88_v13, %v120_v19  ;;  %v68_v26 = vmul.f32 %v289_v20, %v370_v1  ;;  %v90_v27 = vadd.f32 %v384_v7, %v67_v22 }
  0x1a   :  { %341 = vst [vmem:[%s458_s3 + $0x28] sm:$0xff] %v318_v23   ;;  %v137_v28 = vsel %vm105_vm13, %v89_v18, %v121_v24 }
  0x1b   :  { %v323_v29 = vpack.c.bf16 %v137_v28, %v136_v25  ;;  %v91_v30 = vadd.f32 %v384_v7, %v68_v26  ;;  %vm106_vm14 = vcmp.gt.f32.partialorder %v90_v27, 0.0  ;;  %v122_v31 = vmul.f32 0.2, %v90_v27 }
  0x1d   :  { %342 = vst [vmem:[%s458_s3 + $0x30] sm:$0xff] %v323_v29   ;;  %vm107_vm15 = vcmp.gt.f32.partialorder %v91_v30, 0.0  ;;  %v123_v32 = vmul.f32 0.2, %v91_v30  ;;  %v138_v33 = vsel %vm106_vm14, %v90_v27, %v122_v31 }
  0x1f   :  { %v139_v1 = vsel %vm107_vm15, %v91_v30, %v123_v32 }
  0x20   :  { %v328_v34 = vpack.c.bf16 %v139_v1, %v138_v33 }
  0x22   :  { %343 = vst [vmem:[%s458_s3 + $0x38] sm:$0xff] %v328_v34  }

// kernel: forward.14
= control target key start
LH: loop header
LB: loop body
LE: loop exit
PB: predicated region body
PF: predicated region fallthrough
CT: control target
= control target key end

     0   :  { %s813_s1 = inlined_call_operand.vmem [shape: bf16[512,128], index: 1, kind: input, shape index: {}]   ;;  %s814_s0 = inlined_call_operand.vmem [shape: bf16[32,512], index: 0, kind: input, shape index: {}]   ;;  %s815_s2 = inlined_call_operand.vmem [shape: bf16[32,128], index: 2, kind: output, shape index: {0}]   ;;  %s816_s3 = inlined_call_operand.vmem [shape: f32[1,2,128], index: 3, kind: output, shape index: {1}]  }
   0x1   :  { %v617_v0 = vld [vmem:[%s813_s1 + $0x78] sm:$0xff]   ;;  %v621_v4 = vld [vmem:[%s813_s1 + $0x70] sm:$0xff]   ;;  %v625_v8 = vld [vmem:[%s813_s1 + $0x68] sm:$0xff]  }
   0x2   :  { %v618_v1 = vld [vmem:[%s813_s1 + $0xf8] sm:$0xff]   ;;  %561 = vmatprep.subr.bf16.mxu0 %v617_v0  ;;  %v622_v5 = vld [vmem:[%s813_s1 + $0xf0] sm:$0xff]   ;;  %v626_v9 = vld [vmem:[%s813_s1 + $0xe8] sm:$0xff]  }
   0x3   :  { %v619_v2 = vld [vmem:[%s813_s1 + $0x38] sm:$0xff]   ;;  %589 = vmatprep.subr.bf16.mxu1 %v618_v1  ;;  %v623_v6 = vld [vmem:[%s813_s1 + $0x30] sm:$0xff]   ;;  %v627_v10 = vld [vmem:[%s813_s1 + $0x28] sm:$0xff]  }
   0x4   :  { %v620_v3 = vld [vmem:[%s813_s1 + $0xb8] sm:$0xff]   ;;  %562 = vmatpush3.bf16.msra.mxu0 %v619_v2  ;;  %v624_v7 = vld [vmem:[%s813_s1 + $0xb0] sm:$0xff]   ;;  %v628_v11 = vld [vmem:[%s813_s1 + $0xa8] sm:$0xff]  }
   0x5   :  { %590 = vmatpush3.bf16.msra.mxu1 %v620_v3  ;;  %563 = vmatprep.subr.bf16.mxu0 %v621_v4  ;;  %v629_v12 = vld [vmem:[%s813_s1 + $0x60] sm:$0xff]   ;;  %v633_v16 = vld [vmem:[%s813_s1 + $0x58] sm:$0xff]   ;;  %v637_v20 = vld [vmem:[%s813_s1 + $0x50] sm:$0xff]  }
   0x6   :  { %591 = vmatprep.subr.bf16.mxu1 %v622_v5  ;;  %v630_v13 = vld [vmem:[%s813_s1 + $0xe0] sm:$0xff]   ;;  %v634_v17 = vld [vmem:[%s813_s1 + $0xd8] sm:$0xff]   ;;  %v638_v21 = vld [vmem:[%s813_s1 + $0xd0] sm:$0xff]  }
   0x7   :  { %v631_v14 = vld [vmem:[%s813_s1 + $0x20] sm:$0xff]   ;;  %v635_v18 = vld [vmem:[%s813_s1 + $0x18] sm:$0xff]   ;;  %v639_v22 = vld [vmem:[%s813_s1 + $0x10] sm:$0xff]  }
   0x8   :  { %564 = vmatpush3.bf16.msra.mxu0 %v623_v6  ;;  %v632_v15 = vld [vmem:[%s813_s1 + $0xa0] sm:$0xff]   ;;  %v636_v19 = vld [vmem:[%s813_s1 + $0x98] sm:$0xff]   ;;  %v640_v23 = vld [vmem:[%s813_s1 + $0x90] sm:$0xff]  }
   0x9   :  { %592 = vmatpush3.bf16.msra.mxu1 %v624_v7  ;;  %565 = vmatprep.subr.bf16.mxu0 %v625_v8  ;;  %v641_v24 = vld [vmem:[%s813_s1 + $0x48] sm:$0xff]   ;;  %v645_v28 = vld [vmem:[%s813_s1 + $0x40] sm:$0xff]  }
   0xa   :  { %593 = vmatprep.subr.bf16.mxu1 %v626_v9  ;;  %v642_v25 = vld [vmem:[%s813_s1 + $0xc8] sm:$0xff]   ;;  %v646_v29 = vld [vmem:[%s813_s1 + $0xc0] sm:$0xff]  }
   0xb   :  { %v643_v26 = vld [vmem:[%s813_s1 + $0x8] sm:$0xff]   ;;  %v647_v30 = vld [vmem:[%s813_s1] sm:$0xff]  }
   0xc   :  { %566 = vmatpush3.bf16.msra.mxu0 %v627_v10  ;;  %v644_v27 = vld [vmem:[%s813_s1 + $0x88] sm:$0xff]   ;;  %v648_v31 = vld [vmem:[%s813_s1 + $0x80] sm:$0xff]  }
   0xd   :  { %594 = vmatpush3.bf16.msra.mxu1 %v628_v11  ;;  %567 = vmatprep.subr.bf16.mxu0 %v629_v12  ;;  %v649_v32 = vld [vmem:[%s814_s0] ss:$16 sps:$4 sm:$0xff]   ;;  %v651_v33 = vld [vmem:[%s814_s0 + $0x4] ss:$16 sps:$4 sm:$0xff]   ;;  %v652_v34 = vld [vmem:[%s814_s0 + $0x8] ss:$16 sps:$4 sm:$0xff]  }
   0xe   :  { %595 = vmatprep.subr.bf16.mxu1 %v630_v13  ;;  %v654_v35 = vld [vmem:[%s814_s0 + $0xc] ss:$16 sps:$4 sm:$0xff]   ;;  %367 = vmatprep.mubr.bf16.mxu0 %v651_v33  ;;  %v655_v36 = vld [vmem:[%s814_s0 + $0x24] ss:$16 sps:$4 sm:$0xff]   ;;  %v659_v38 = vld [vmem:[%s814_s0 + $0x20] ss:$16 sps:$4 sm:$0xff]  }
   0xf   :  { %416 = vmatprep.mubr.bf16.mxu1 %v654_v35  ;;  %v657_v37 = vld [vmem:[%s814_s0 + $0x2c] ss:$16 sps:$4 sm:$0xff]   ;;  %v660_v39 = vld [vmem:[%s814_s0 + $0x28] ss:$16 sps:$4 sm:$0xff]  }
  0x10   :  { %568 = vmatpush3.bf16.msra.mxu0 %v631_v14 }
  0x11   :  { %596 = vmatpush3.bf16.msra.mxu1 %v632_v15  ;;  %569 = vmatprep.subr.bf16.mxu0 %v633_v16 }
  0x12   :  { %597 = vmatprep.subr.bf16.mxu1 %v634_v17 }
  0x14   :  { %570 = vmatpush3.bf16.msra.mxu0 %v635_v18 }
  0x15   :  { %598 = vmatpush3.bf16.msra.mxu1 %v636_v19  ;;  %571 = vmatprep.subr.bf16.mxu0 %v637_v20 }
  0x16   :  { %599 = vmatprep.subr.bf16.mxu1 %v638_v21 }
  0x18   :  { %572 = vmatpush3.bf16.msra.mxu0 %v639_v22 }
  0x19   :  { %600 = vmatpush3.bf16.msra.mxu1 %v640_v23  ;;  %573 = vmatprep.subr.bf16.mxu0 %v641_v24 }
  0x1a   :  { %601 = vmatprep.subr.bf16.mxu1 %v642_v25 }
  0x1c   :  { %574 = vmatpush3.bf16.msra.mxu0 %v643_v26 }
  0x1d   :  { %602 = vmatpush3.bf16.msra.mxu1 %v644_v27  ;;  %575 = vmatprep.subr.bf16.mxu0 %v645_v28 }
  0x1e   :  { %603 = vmatprep.subr.bf16.mxu1 %v646_v29 }
  0x20   :  { %576 = vmatpush3.bf16.msra.mxu0 %v647_v30 }
  0x21   :  { %604 = vmatpush3.bf16.msra.mxu1 %v648_v31 }
  0x23   :  { %368 = vmatmul.mubr.bf16.vlgmr.msra.gmra.mxu0 %v649_v32 }
  0x24   :  { %417 = vmatmul.mubr.bf16.vlgmr.msra.gmra.mxu1 %v652_v34  ;;  %375 = vmatprep.mubr.bf16.mxu0 %v655_v36 }
  0x25   :  { %424 = vmatprep.mubr.bf16.mxu1 %v657_v37 }
  0x2b   :  { %376 = vmatmul.mubr.bf16.gmra.mxu0 %v659_v38 }
  0x2c   :  { %425 = vmatmul.mubr.bf16.gmra.mxu1 %v660_v39 }
  0xe3   :  { %v577_v40 = vpop.f32.mrf.mxu0 }
  0xe4   :  { %v605_v41 = vpop.f32.mrf.mxu1 }
  0xe5   :  { %v578_v42 = vpop.f32.mrf.mxu0 }
  0xe6   :  { %v606_v43 = vpop.f32.mrf.mxu1  ;;  %v579_v46 = vadd.f32 %v578_v42, %v577_v40 }
  0xe7   :  { %v580_v44 = vpop.f32.mrf.mxu0  ;;  %v607_v47 = vadd.f32 %v606_v43, %v605_v41 }
  0xe8   :  { %v608_v45 = vpop.f32.mrf.mxu1 }
  0xe9   :  { %v581_v48 = vpop.f32.mrf.mxu0  ;;  %v419_v54 = vadd.f32 %v607_v47, %v579_v46 }
  0xea   :  { %v582_v49 = vadd.f32 %v581_v48, %v580_v44  ;;  %v609_v50 = vpop.f32.mrf.mxu1 }
  0xeb   :  { %v610_v51 = vadd.f32 %v609_v50, %v608_v45  ;;  %v583_v52 = vpop.f32.mrf.mxu0  ;;  %v478_v4 = vmul.f32 %v419_v54, %v419_v54 }
  0xec   :  { %v611_v53 = vpop.f32.mrf.mxu1 }
  0xed   :  { %v422_v55 = vadd.f32 %v610_v51, %v582_v49  ;;  %v584_v56 = vpop.f32.mrf.mxu0 }
  0xee   :  { %v585_v57 = vadd.f32 %v584_v56, %v583_v52  ;;  %v612_v58 = vpop.f32.mrf.mxu1 }
  0xef   :  { %v553_v59 = vpack.c.bf16 %v422_v55, %v419_v54  ;;  %v613_v60 = vadd.f32 %v612_v58, %v611_v53  ;;  %v586_v61 = vpop.f32.mrf.mxu0  ;;  %v479_v63 = vmul.f32 %v422_v55, %v422_v55  ;;  %v468_v5 = vadd.f32 %v422_v55, %v419_v54 }
  0xf0   :  { %v614_v62 = vpop.f32.mrf.mxu1 }
  0xf1   :  { %554 = vst [vmem:[%s815_s2] sm:$0xff] %v553_v59   ;;  %v427_v0 = vadd.f32 %v613_v60, %v585_v57  ;;  %v587_v1 = vpop.f32.mrf.mxu0  ;;  %v482_v8 = vadd.f32 %v479_v63, %v478_v4 }
  0xf2   :  { %v588_v2 = vadd.f32 %v587_v1, %v586_v61  ;;  %v615_v3 = vpop.f32.mrf.mxu1 }
  0xf3   :  { %v480_v6 = vmul.f32 %v427_v0, %v427_v0  ;;  %v616_v7 = vadd.f32 %v615_v3, %v614_v62  ;;  %v469_v9 = vadd.f32 %v468_v5, %v427_v0 }
  0xf5   :  { %v430_v10 = vadd.f32 %v616_v7, %v588_v2  ;;  %v483_v11 = vadd.f32 %v482_v8, %v480_v6 }
  0xf7   :  { %v558_v12 = vpack.c.bf16 %v430_v10, %v427_v0  ;;  %v470_v13 = vadd.f32 %v469_v9, %v430_v10  ;;  %v481_v14 = vmul.f32 %v430_v10, %v430_v10 }
  0xf9   :  { %560 = vst [vmem:[%s815_s2 + $0x8] sm:$0xff] %v558_v12   ;;  %v471_v15 = vrot.slane %v470_v13, 4  ;;  %v484_v16 = vadd.f32 %v483_v11, %v481_v14 }
  0xfb   :  { %v472_v17 = vadd.f32 %v471_v15, %v470_v13  ;;  %v485_v18 = vrot.slane %v484_v16, 4 }
  0xfd   :  { %v473_v19 = vrot.slane %v472_v17, 2  ;;  %v486_v20 = vadd.f32 %v485_v18, %v484_v16 }
  0xff   :  { %v474_v21 = vadd.f32 %v473_v19, %v472_v17  ;;  %v487_v22 = vrot.slane %v486_v20, 2 }
 0x101   :  { %v475_v23 = vrot.slane %v474_v21, 1  ;;  %v488_v24 = vadd.f32 %v487_v22, %v486_v20 }
 0x103   :  { %v476_v25 = vadd.f32 %v475_v23, %v474_v21  ;;  %v489_v26 = vrot.slane %v488_v24, 1 }
 0x105   :  { %477 = vst [vmem:[%s816_s3] sm:$0x1] %v476_v25  ;;  %v490_v27 = vadd.f32 %v489_v26, %v488_v24 }
 0x107   :  { %491 = vst [vmem:[%s816_s3 + $0x1] sm:$0x1] %v490_v27 }

// kernel: forward.15
= control target key start
LH: loop header
LB: loop body
LE: loop exit
PB: predicated region body
PF: predicated region fallthrough
CT: control target
= control target key end

     0   :  { %s148_s0 = inlined_call_operand.vmem [shape: bf16[32,128], index: 0, kind: input, shape index: {}]   ;;  %s149_s1 = inlined_call_operand.vmem [shape: f32[1,128], index: 1, kind: input, shape index: {}]   ;;  %s150_s2 = inlined_call_operand.vmem [shape: f32[1,128], index: 2, kind: input, shape index: {}]   ;;  %s151_s3 = inlined_call_operand.vmem [shape: bf16[32,128], index: 3, kind: output, shape index: {}]  }
   0x1   :  { %v91_v0 = vld [vmem:[%s148_s0] sm:$0xff]   ;;  %v108_v4 = vld [vmem:[%s148_s0 + $0x8] sm:$0xff]  }
   0x2   :  { %v80_v1 = vld [vmem:[%s149_s1] ss:$0 sm:$0xff]  ;;  %v92_v2 = vunpack.c.l.bf16 %v91_v0  ;;  %v93_v3 = vunpack.c.h.bf16 %v91_v0  ;;  %v96_v6 = vunpack.c.l.bf16 %v108_v4  ;;  %v97_v7 = vunpack.c.h.bf16 %v108_v4 }
   0x3   :  { %v81_v5 = vld [vmem:[%s150_s2] ss:$0 sm:$0xff] }
   0x4   :  { %v29_v8 = vmul.f32 %v92_v2, %v80_v1  ;;  %v30_v9 = vmul.f32 %v93_v3, %v80_v1  ;;  %v31_v10 = vmul.f32 %v96_v6, %v80_v1  ;;  %v32_v11 = vmul.f32 %v97_v7, %v80_v1 }
   0x6   :  { %v40_v12 = vadd.f32 %v81_v5, %v29_v8  ;;  %v41_v13 = vadd.f32 %v81_v5, %v30_v9  ;;  %v42_v14 = vadd.f32 %v81_v5, %v31_v10  ;;  %v43_v15 = vadd.f32 %v81_v5, %v32_v11 }
   0x8   :  { %vm44_vm0 = vcmp.gt.f32.partialorder %v40_v12, 0.0  ;;  %vm45_vm1 = vcmp.gt.f32.partialorder %v41_v13, 0.0  ;;  %v48_v16 = vmul.f32 0.2, %v40_v12  ;;  %v49_v17 = vmul.f32 0.2, %v41_v13 }
   0x9   :  { %vm46_vm2 = vcmp.gt.f32.partialorder %v42_v14, 0.0  ;;  %vm47_vm3 = vcmp.gt.f32.partialorder %v43_v15, 0.0  ;;  %v50_v18 = vmul.f32 0.2, %v42_v14  ;;  %v51_v19 = vmul.f32 0.2, %v43_v15 }
   0xa   :  { %v52_v20 = vsel %vm44_vm0, %v40_v12, %v48_v16  ;;  %v53_v21 = vsel %vm45_vm1, %v41_v13, %v49_v17 }
   0xb   :  { %v101_v22 = vpack.c.bf16 %v53_v21, %v52_v20  ;;  %v54_v23 = vsel %vm46_vm2, %v42_v14, %v50_v18  ;;  %v55_v24 = vsel %vm47_vm3, %v43_v15, %v51_v19 }
   0xc   :  { %v106_v25 = vpack.c.bf16 %v55_v24, %v54_v23 }
   0xd   :  { %102 = vst [vmem:[%s151_s3] sm:$0xff] %v101_v22  }
   0xe   :  { %109 = vst [vmem:[%s151_s3 + $0x8] sm:$0xff] %v106_v25  }

// kernel: forward.16
= control target key start
LH: loop header
LB: loop body
LE: loop exit
PB: predicated region body
PF: predicated region fallthrough
CT: control target
= control target key end

     0   :  { %s1407_s1 = inlined_call_operand.vmem [shape: bf16[1024,128], index: 1, kind: input, shape index: {}]   ;;  %s1408_s0 = inlined_call_operand.vmem [shape: bf16[24,1024], index: 0, kind: input, shape index: {}]   ;;  %s1409_s2 = inlined_call_operand.vmem [shape: bf16[24,128], index: 2, kind: output, shape index: {0}]   ;;  %s1410_s3 = inlined_call_operand.vmem [shape: f32[1,2,128], index: 3, kind: output, shape index: {1}]  }
   0x1   :  { %v1075_v0 = vld [vmem:[%s1407_s1 + $0x78] sm:$0xff]   ;;  %v1079_v4 = vld [vmem:[%s1407_s1 + $0x70] sm:$0xff]   ;;  %v1083_v8 = vld [vmem:[%s1407_s1 + $0x68] sm:$0xff]  }
   0x2   :  { %v1076_v1 = vld [vmem:[%s1407_s1 + $0xf8] sm:$0xff]   ;;  %963 = vmatprep.subr.bf16.mxu0 %v1075_v0  ;;  %v1080_v5 = vld [vmem:[%s1407_s1 + $0xf0] sm:$0xff]   ;;  %v1084_v9 = vld [vmem:[%s1407_s1 + $0xe8] sm:$0xff]  }
   0x3   :  { %v1077_v2 = vld [vmem:[%s1407_s1 + $0x38] sm:$0xff]   ;;  %991 = vmatprep.subr.bf16.mxu1 %v1076_v1  ;;  %v1081_v6 = vld [vmem:[%s1407_s1 + $0x30] sm:$0xff]   ;;  %v1085_v10 = vld [vmem:[%s1407_s1 + $0x28] sm:$0xff]  }
   0x4   :  { %v1078_v3 = vld [vmem:[%s1407_s1 + $0xb8] sm:$0xff]   ;;  %964 = vmatpush3.bf16.msra.mxu0 %v1077_v2  ;;  %v1082_v7 = vld [vmem:[%s1407_s1 + $0xb0] sm:$0xff]   ;;  %v1086_v11 = vld [vmem:[%s1407_s1 + $0xa8] sm:$0xff]  }
   0x5   :  { %992 = vmatpush3.bf16.msra.mxu1 %v1078_v3  ;;  %965 = vmatprep.subr.bf16.mxu0 %v1079_v4  ;;  %v1087_v12 = vld [vmem:[%s1407_s1 + $0x60] sm:$0xff]   ;;  %v1091_v16 = vld [vmem:[%s1407_s1 + $0x58] sm:$0xff]   ;;  %v1095_v20 = vld [vmem:[%s1407_s1 + $0x50] sm:$0xff]  }
   0x6   :  { %993 = vmatprep.subr.bf16.mxu1 %v1080_v5  ;;  %v1088_v13 = vld [vmem:[%s1407_s1 + $0xe0] sm:$0xff]   ;;  %v1092_v17 = vld [vmem:[%s1407_s1 + $0xd8] sm:$0xff]   ;;  %v1096_v21 = vld [vmem:[%s1407_s1 + $0xd0] sm:$0xff]  }
   0x7   :  { %v1089_v14 = vld [vmem:[%s1407_s1 + $0x20] sm:$0xff]   ;;  %v1093_v18 = vld [vmem:[%s1407_s1 + $0x18] sm:$0xff]   ;;  %v1097_v22 = vld [vmem:[%s1407_s1 + $0x10] sm:$0xff]  }
   0x8   :  { %966 = vmatpush3.bf16.msra.mxu0 %v1081_v6  ;;  %v1090_v15 = vld [vmem:[%s1407_s1 + $0xa0] sm:$0xff]   ;;  %v1094_v19 = vld [vmem:[%s1407_s1 + $0x98] sm:$0xff]   ;;  %v1098_v23 = vld [vmem:[%s1407_s1 + $0x90] sm:$0xff]  }
   0x9   :  { %994 = vmatpush3.bf16.msra.mxu1 %v1082_v7  ;;  %967 = vmatprep.subr.bf16.mxu0 %v1083_v8  ;;  %v1099_v24 = vld [vmem:[%s1407_s1 + $0x48] sm:$0xff]   ;;  %v1103_v28 = vld [vmem:[%s1407_s1 + $0x40] sm:$0xff]   ;;  %v1107_v40 = vld [vmem:[%s1407_s1 + $0x178] sm:$0xff]  }
   0xa   :  { %995 = vmatprep.subr.bf16.mxu1 %v1084_v9  ;;  %v1100_v25 = vld [vmem:[%s1407_s1 + $0xc8] sm:$0xff]   ;;  %v1104_v29 = vld [vmem:[%s1407_s1 + $0xc0] sm:$0xff]   ;;  %v1108_v41 = vld [vmem:[%s1407_s1 + $0x1f8] sm:$0xff]  }
   0xb   :  { %v1101_v26 = vld [vmem:[%s1407_s1 + $0x8] sm:$0xff]   ;;  %v1105_v30 = vld [vmem:[%s1407_s1] sm:$0xff]   ;;  %v1109_v42 = vld [vmem:[%s1407_s1 + $0x138] sm:$0xff]  }
   0xc   :  { %968 = vmatpush3.bf16.msra.mxu0 %v1085_v10  ;;  %v1102_v27 = vld [vmem:[%s1407_s1 + $0x88] sm:$0xff]   ;;  %v1106_v31 = vld [vmem:[%s1407_s1 + $0x80] sm:$0xff]   ;;  %v1110_v43 = vld [vmem:[%s1407_s1 + $0x1b8] sm:$0xff]  }
   0xd   :  { %996 = vmatpush3.bf16.msra.mxu1 %v1086_v11  ;;  %969 = vmatprep.subr.bf16.mxu0 %v1087_v12  ;;  %v157_v32 = vld [vmem:[%s1408_s0] sm:$0xff]  ;;  %v158_v34 = vld [vmem:[%s1408_s0 + $0x8] sm:$0xff]  ;;  %v1111_v44 = vld [vmem:[%s1407_s1 + $0x170] sm:$0xff]  }
   0xe   :  { %997 = vmatprep.subr.bf16.mxu1 %v1088_v13  ;;  %v161_v33 = vld [vmem:[%s1408_s0 + $0x20] sm:$0xff]  ;;  %v162_v37 = vld [vmem:[%s1408_s0 + $0x28] sm:$0xff]  ;;  %v1112_v45 = vld [vmem:[%s1407_s1 + $0x1f0] sm:$0xff]  }
   0xf   :  { %v872_v35 = vcombine.low %v157_v32, %v161_v33  ;;  %v873_v36 = vcombine.high %v157_v32, %v161_v33  ;;  %v874_v38 = vcombine.low %v158_v34, %v162_v37  ;;  %v875_v39 = vcombine.high %v158_v34, %v162_v37  ;;  %v1113_v46 = vld [vmem:[%s1407_s1 + $0x130] sm:$0xff]   ;;  %v1115_v48 = vld [vmem:[%s1407_s1 + $0x168] sm:$0xff]   ;;  %v1119_v52 = vld [vmem:[%s1407_s1 + $0x160] sm:$0xff]  }
  0x10   :  { %970 = vmatpush3.bf16.msra.mxu0 %v1089_v14  ;;  %v1114_v47 = vld [vmem:[%s1407_s1 + $0x1b0] sm:$0xff]   ;;  %v1116_v49 = vld [vmem:[%s1407_s1 + $0x1e8] sm:$0xff]   ;;  %v1120_v53 = vld [vmem:[%s1407_s1 + $0x1e0] sm:$0xff]  }
  0x11   :  { %998 = vmatpush3.bf16.msra.mxu1 %v1090_v15  ;;  %971 = vmatprep.subr.bf16.mxu0 %v1091_v16  ;;  %v1117_v50 = vld [vmem:[%s1407_s1 + $0x128] sm:$0xff]   ;;  %v1121_v54 = vld [vmem:[%s1407_s1 + $0x120] sm:$0xff]   ;;  %v1123_v56 = vld [vmem:[%s1407_s1 + $0x158] sm:$0xff]  }
  0x12   :  { %999 = vmatprep.subr.bf16.mxu1 %v1092_v17  ;;  %653 = vmatprep.mubr.bf16.mxu0 %v873_v36  ;;  %v1118_v51 = vld [vmem:[%s1407_s1 + $0x1a8] sm:$0xff]   ;;  %v1122_v55 = vld [vmem:[%s1407_s1 + $0x1a0] sm:$0xff]   ;;  %v1124_v57 = vld [vmem:[%s1407_s1 + $0x1d8] sm:$0xff]  }
  0x13   :  { %701 = vmatprep.mubr.bf16.mxu1 %v875_v39  ;;  %v165_v58 = vld [vmem:[%s1408_s0 + $0x40] sm:$0xff]  ;;  %v1126_v60 = vld [vmem:[%s1407_s1 + $0x118] sm:$0xff]   ;;  %v166_v63 = vld [vmem:[%s1408_s0 + $0x48] sm:$0xff] }
  0x14   :  { %972 = vmatpush3.bf16.msra.mxu0 %v1093_v18  ;;  %v881_v59 = vcombine.high %v165_v58, %v165_v58  ;;  %v880_v61 = vcombine.low %v165_v58, %v165_v58  ;;  %v1127_v62 = vld [vmem:[%s1407_s1 + $0x198] sm:$0xff]   ;;  %v883_v0 = vcombine.high %v166_v63, %v166_v63  ;;  %v882_v1 = vcombine.low %v166_v63, %v166_v63  ;;  %v1131_v2 = vld [vmem:[%s1407_s1 + $0x150] sm:$0xff]   ;;  %v1135_v6 = vld [vmem:[%s1407_s1 + $0x148] sm:$0xff]  }
  0x15   :  { %1000 = vmatpush3.bf16.msra.mxu1 %v1094_v19  ;;  %973 = vmatprep.subr.bf16.mxu0 %v1095_v20  ;;  %v1132_v3 = vld [vmem:[%s1407_s1 + $0x1d0] sm:$0xff]   ;;  %v1136_v7 = vld [vmem:[%s1407_s1 + $0x1c8] sm:$0xff]   ;;  %v1139_v10 = vld [vmem:[%s1407_s1 + $0x140] sm:$0xff]  }
  0x16   :  { %1001 = vmatprep.subr.bf16.mxu1 %v1096_v21  ;;  %v1133_v4 = vld [vmem:[%s1407_s1 + $0x110] sm:$0xff]   ;;  %v1137_v8 = vld [vmem:[%s1407_s1 + $0x108] sm:$0xff]   ;;  %v1140_v11 = vld [vmem:[%s1407_s1 + $0x1c0] sm:$0xff]  }
  0x17   :  { %v1134_v5 = vld [vmem:[%s1407_s1 + $0x190] sm:$0xff]   ;;  %v1138_v9 = vld [vmem:[%s1407_s1 + $0x188] sm:$0xff]   ;;  %v1141_v12 = vld [vmem:[%s1407_s1 + $0x100] sm:$0xff]  }
  0x18   :  { %974 = vmatpush3.bf16.msra.mxu0 %v1097_v22  ;;  %v1142_v13 = vld [vmem:[%s1407_s1 + $0x180] sm:$0xff]   ;;  %v159_v14 = vld [vmem:[%s1408_s0 + $0x10] sm:$0xff]  ;;  %v160_v16 = vld [vmem:[%s1408_s0 + $0x18] sm:$0xff] }
  0x19   :  { %1002 = vmatpush3.bf16.msra.mxu1 %v1098_v23  ;;  %975 = vmatprep.subr.bf16.mxu0 %v1099_v24  ;;  %v163_v15 = vld [vmem:[%s1408_s0 + $0x30] sm:$0xff]  ;;  %v164_v19 = vld [vmem:[%s1408_s0 + $0x38] sm:$0xff] }
  0x1a   :  { %1003 = vmatprep.subr.bf16.mxu1 %v1100_v25  ;;  %v876_v17 = vcombine.low %v159_v14, %v163_v15  ;;  %v877_v18 = vcombine.high %v159_v14, %v163_v15  ;;  %v167_v20 = vld [vmem:[%s1408_s0 + $0x50] sm:$0xff]  ;;  %v168_v21 = vld [vmem:[%s1408_s0 + $0x58] sm:$0xff]  ;;  %v878_v22 = vcombine.low %v160_v16, %v164_v19  ;;  %v879_v23 = vcombine.high %v160_v16, %v164_v19 }
  0x1b   :  { %v885_v24 = vcombine.high %v167_v20, %v167_v20  ;;  %v887_v25 = vcombine.high %v168_v21, %v168_v21 }
  0x1c   :  { %976 = vmatpush3.bf16.msra.mxu0 %v1101_v26  ;;  %v884_v26 = vcombine.low %v167_v20, %v167_v20 }
  0x1d   :  { %1004 = vmatpush3.bf16.msra.mxu1 %v1102_v27  ;;  %977 = vmatprep.subr.bf16.mxu0 %v1103_v28  ;;  %v886_v27 = vcombine.low %v168_v21, %v168_v21 }
  0x1e   :  { %1005 = vmatprep.subr.bf16.mxu1 %v1104_v29 }
  0x20   :  { %978 = vmatpush3.bf16.msra.mxu0 %v1105_v30 }
  0x21   :  { %1006 = vmatpush3.bf16.msra.mxu1 %v1106_v31  ;;  %1019 = vmatprep.subr.bf16.mxu0 %v1107_v40 }
  0x22   :  { %1047 = vmatprep.subr.bf16.mxu1 %v1108_v41 }
  0x23   :  { %654 = vmatmul.mubr.bf16.vlgmr.msra.gmra.mxu0 %v872_v35 }
  0x24   :  { %702 = vmatmul.mubr.bf16.vlgmr.msra.gmra.mxu1 %v874_v38  ;;  %1020 = vmatpush3.bf16.msra.mxu0 %v1109_v42 }
  0x25   :  { %1048 = vmatpush3.bf16.msra.mxu1 %v1110_v43  ;;  %1021 = vmatprep.subr.bf16.mxu0 %v1111_v44 }
  0x26   :  { %1049 = vmatprep.subr.bf16.mxu1 %v1112_v45  ;;  %661 = vmatprep.mubr.bf16.mxu0 %v881_v59 }
  0x27   :  { %709 = vmatprep.mubr.bf16.mxu1 %v883_v0 }
  0x28   :  { %1022 = vmatpush3.bf16.msra.mxu0 %v1113_v46 }
  0x29   :  { %1050 = vmatpush3.bf16.msra.mxu1 %v1114_v47  ;;  %1023 = vmatprep.subr.bf16.mxu0 %v1115_v48 }
  0x2a   :  { %1051 = vmatprep.subr.bf16.mxu1 %v1116_v49 }
  0x2b   :  { %662 = vmatmul.mubr.bf16.gmra.mxu0 %v880_v61 }
  0x2c   :  { %1024 = vmatpush3.bf16.msra.mxu0 %v1117_v50  ;;  %710 = vmatmul.mubr.bf16.gmra.mxu1 %v882_v1 }
  0x2d   :  { %1052 = vmatpush3.bf16.msra.mxu1 %v1118_v51  ;;  %1025 = vmatprep.subr.bf16.mxu0 %v1119_v52 }
  0x2e   :  { %1053 = vmatprep.subr.bf16.mxu1 %v1120_v53  ;;  %749 = vmatprep.mubr.bf16.mxu0 %v877_v18 }
  0x2f   :  { %797 = vmatprep.mubr.bf16.mxu1 %v879_v23 }
  0x30   :  { %1026 = vmatpush3.bf16.msra.mxu0 %v1121_v54 }
  0x31   :  { %1054 = vmatpush3.bf16.msra.mxu1 %v1122_v55  ;;  %1027 = vmatprep.subr.bf16.mxu0 %v1123_v56 }
  0x32   :  { %1055 = vmatprep.subr.bf16.mxu1 %v1124_v57 }
  0x34   :  { %1028 = vmatpush3.bf16.msra.mxu0 %v1126_v60 }
  0x35   :  { %1056 = vmatpush3.bf16.msra.mxu1 %v1127_v62  ;;  %1029 = vmatprep.subr.bf16.mxu0 %v1131_v2 }
  0x36   :  { %1057 = vmatprep.subr.bf16.mxu1 %v1132_v3 }
  0x38   :  { %1030 = vmatpush3.bf16.msra.mxu0 %v1133_v4 }
  0x39   :  { %1058 = vmatpush3.bf16.msra.mxu1 %v1134_v5  ;;  %1031 = vmatprep.subr.bf16.mxu0 %v1135_v6 }
  0x3a   :  { %1059 = vmatprep.subr.bf16.mxu1 %v1136_v7 }
  0x3c   :  { %1032 = vmatpush3.bf16.msra.mxu0 %v1137_v8 }
  0x3d   :  { %1060 = vmatpush3.bf16.msra.mxu1 %v1138_v9  ;;  %1033 = vmatprep.subr.bf16.mxu0 %v1139_v10 }
  0x3e   :  { %1061 = vmatprep.subr.bf16.mxu1 %v1140_v11 }
  0x40   :  { %1034 = vmatpush3.bf16.msra.mxu0 %v1141_v12 }
  0x41   :  { %1062 = vmatpush3.bf16.msra.mxu1 %v1142_v13 }
  0x43   :  { %750 = vmatmul.mubr.bf16.vlgmr.msra.gmra.mxu0 %v876_v17 }
  0x44   :  { %798 = vmatmul.mubr.bf16.vlgmr.msra.gmra.mxu1 %v878_v22  ;;  %757 = vmatprep.mubr.bf16.mxu0 %v885_v24 }
  0x45   :  { %805 = vmatprep.mubr.bf16.mxu1 %v887_v25 }
  0x4b   :  { %758 = vmatmul.mubr.bf16.gmra.mxu0 %v884_v26 }
  0x4c   :  { %806 = vmatmul.mubr.bf16.gmra.mxu1 %v886_v27 }
  0xe3   :  { %v979_v28 = vpop.f32.mrf.mxu0 }
  0xe4   :  { %v1007_v29 = vpop.f32.mrf.mxu1 }
  0xe5   :  { %v980_v30 = vpop.f32.mrf.mxu0 }
  0xe6   :  { %v1008_v31 = vpop.f32.mrf.mxu1  ;;  %v981_v45 = vadd.f32 %v980_v30, %v979_v28 }
  0xe7   :  { %v982_v32 = vpop.f32.mrf.mxu0  ;;  %v1009_v46 = vadd.f32 %v1008_v31, %v1007_v29 }
  0xe8   :  { %v1010_v33 = vpop.f32.mrf.mxu1 }
  0xe9   :  { %v983_v34 = vpop.f32.mrf.mxu0  ;;  %v704_v54 = vadd.f32 %v1009_v46, %v981_v45 }
  0xea   :  { %v1011_v35 = vpop.f32.mrf.mxu1  ;;  %v984_v48 = vadd.f32 %v983_v34, %v982_v32 }
  0xeb   :  { %v985_v36 = vpop.f32.mrf.mxu0  ;;  %v1012_v49 = vadd.f32 %v1011_v35, %v1010_v33 }
  0xec   :  { %v1013_v38 = vpop.f32.mrf.mxu1 }
  0xed   :  { %v986_v37 = vpop.f32.mrf.mxu0  ;;  %v707_v56 = vadd.f32 %v1012_v49, %v984_v48 }
  0xee   :  { %v1014_v40 = vpop.f32.mrf.mxu1  ;;  %v987_v58 = vadd.f32 %v986_v37, %v985_v36 }
  0xef   :  { %v988_v39 = vpop.f32.mrf.mxu0  ;;  %v1015_v59 = vadd.f32 %v1014_v40, %v1013_v38 }
  0xf0   :  { %v1016_v42 = vpop.f32.mrf.mxu1 }
  0xf1   :  { %v989_v41 = vpop.f32.mrf.mxu0  ;;  %v712_v5 = vadd.f32 %v1015_v59, %v987_v58 }
  0xf2   :  { %v1017_v43 = vpop.f32.mrf.mxu1 }
 0x103   :  { %v1035_v44 = vpop.f32.mrf.mxu0 }
 0x104   :  { %v1063_v47 = vpop.f32.mrf.mxu1 }
 0x105   :  { %v1036_v50 = vpop.f32.mrf.mxu0 }
 0x106   :  { %v1037_v51 = vadd.f32 %v1036_v50, %v1035_v44  ;;  %v1064_v52 = vpop.f32.mrf.mxu1 }
 0x107   :  { %v1038_v53 = vpop.f32.mrf.mxu0  ;;  %v1065_v0 = vadd.f32 %v1064_v52, %v1063_v47 }
 0x108   :  { %v1066_v55 = vpop.f32.mrf.mxu1  ;;  %v752_v60 = vadd.f32 %v1037_v51, %v704_v54 }
 0x109   :  { %v1039_v57 = vpop.f32.mrf.mxu0 }
 0x10a   :  { %v1040_v61 = vadd.f32 %v1039_v57, %v1038_v53  ;;  %v1067_v62 = vpop.f32.mrf.mxu1  ;;  %v800_v6 = vadd.f32 %v1065_v0, %v752_v60 }
 0x10b   :  { %v1041_v63 = vpop.f32.mrf.mxu0  ;;  %v1068_v2 = vadd.f32 %v1067_v62, %v1066_v55 }
 0x10c   :  { %v755_v1 = vadd.f32 %v1040_v61, %v707_v56  ;;  %v1069_v3 = vpop.f32.mrf.mxu1  ;;  %v850_v17 = vmul.f32 %v800_v6, %v800_v6 }
 0x10d   :  { %v1042_v4 = vpop.f32.mrf.mxu0 }
 0x10e   :  { %v803_v7 = vadd.f32 %v1068_v2, %v755_v1  ;;  %v1043_v8 = vadd.f32 %v1042_v4, %v1041_v63  ;;  %v1070_v9 = vpop.f32.mrf.mxu1 }
 0x10f   :  { %v1044_v10 = vpop.f32.mrf.mxu0  ;;  %v1071_v14 = vadd.f32 %v1070_v9, %v1069_v3 }
 0x110   :  { %v961_v11 = vpack.c.bf16 %v803_v7, %v800_v6  ;;  %v851_v12 = vmul.f32 %v803_v7, %v803_v7  ;;  %v760_v13 = vadd.f32 %v1043_v8, %v712_v5  ;;  %v1072_v15 = vpop.f32.mrf.mxu1  ;;  %v841_v18 = vadd.f32 %v803_v7, %v800_v6 }
 0x111   :  { %v1045_v16 = vpop.f32.mrf.mxu0 }
 0x112   :  { %962 = vst [vmem:[%s1409_s2] sm:$0xff] %v961_v11   ;;  %v808_v19 = vadd.f32 %v1071_v14, %v760_v13  ;;  %v1073_v20 = vpop.f32.mrf.mxu1  ;;  %v853_v21 = vadd.f32 %v851_v12, %v850_v17 }
 0x114   :  { %v957_v22 = vpack.c.bf16 %v808_v19, %v808_v19  ;;  %v842_v23 = vadd.f32 %v841_v18, %v808_v19  ;;  %v852_v24 = vmul.f32 %v808_v19, %v808_v19 }
 0x116   :  { %840 = vst [vmem:[%s1409_s2 + $0x8] sm:$0xf] %v957_v22  ;;  %v843_v25 = vrot.slane %v842_v23, 4  ;;  %v854_v26 = vadd.f32 %v853_v21, %v852_v24 }
 0x118   :  { %v844_v27 = vadd.f32 %v843_v25, %v842_v23  ;;  %v855_v28 = vrot.slane %v854_v26, 4 }
 0x11a   :  { %v845_v29 = vrot.slane %v844_v27, 2  ;;  %v856_v30 = vadd.f32 %v855_v28, %v854_v26 }
 0x11c   :  { %v846_v31 = vadd.f32 %v845_v29, %v844_v27  ;;  %v857_v32 = vrot.slane %v856_v30, 2 }
 0x11e   :  { %v847_v33 = vrot.slane %v846_v31, 1  ;;  %v858_v34 = vadd.f32 %v857_v32, %v856_v30 }
 0x120   :  { %v848_v35 = vadd.f32 %v847_v33, %v846_v31  ;;  %v859_v36 = vrot.slane %v858_v34, 1 }
 0x122   :  { %849 = vst [vmem:[%s1410_s3] sm:$0x1] %v848_v35  ;;  %v860_v37 = vadd.f32 %v859_v36, %v858_v34 }
 0x124   :  { %861 = vst [vmem:[%s1410_s3 + $0x1] sm:$0x1] %v860_v37 }

// kernel: forward.17
= control target key start
LH: loop header
LB: loop body
LE: loop exit
PB: predicated region body
PF: predicated region fallthrough
CT: control target
= control target key end

     0   :  { %s124_s0 = inlined_call_operand.vmem [shape: bf16[24,128], index: 0, kind: input, shape index: {}]   ;;  %s125_s1 = inlined_call_operand.vmem [shape: f32[1,128], index: 1, kind: input, shape index: {}]   ;;  %s126_s2 = inlined_call_operand.vmem [shape: f32[1,128], index: 2, kind: input, shape index: {}]   ;;  %s127_s3 = inlined_call_operand.vmem [shape: bf16[24,128], index: 3, kind: output, shape index: {}]  }
   0x1   :  { %v78_v0 = vld [vmem:[%s124_s0] sm:$0xff]   ;;  %v16_v4 = vld [vmem:[%s124_s0 + $0x8] sm:$0xf] }
   0x2   :  { %v69_v1 = vld [vmem:[%s125_s1] ss:$0 sm:$0xff]  ;;  %v79_v2 = vunpack.c.l.bf16 %v78_v0  ;;  %v80_v3 = vunpack.c.h.bf16 %v78_v0  ;;  %v19_v6 = vunpack.c.l.bf16 %v16_v4 }
   0x3   :  { %v70_v5 = vld [vmem:[%s126_s2] ss:$0 sm:$0xff] }
   0x4   :  { %v27_v7 = vmul.f32 %v79_v2, %v69_v1  ;;  %v28_v8 = vmul.f32 %v80_v3, %v69_v1  ;;  %v29_v9 = vmul.f32 %v69_v1, %v19_v6 }
   0x6   :  { %v37_v10 = vadd.f32 %v70_v5, %v27_v7  ;;  %v38_v11 = vadd.f32 %v70_v5, %v28_v8  ;;  %v39_v12 = vadd.f32 %v70_v5, %v29_v9 }
   0x8   :  { %vm40_vm0 = vcmp.gt.f32.partialorder %v37_v10, 0.0  ;;  %vm41_vm1 = vcmp.gt.f32.partialorder %v38_v11, 0.0  ;;  %v43_v13 = vmul.f32 0.2, %v37_v10  ;;  %v44_v14 = vmul.f32 0.2, %v38_v11 }
   0x9   :  { %vm42_vm2 = vcmp.gt.f32.partialorder %v39_v12, 0.0  ;;  %v45_v15 = vmul.f32 0.2, %v39_v12 }
   0xa   :  { %v46_v16 = vsel %vm40_vm0, %v37_v10, %v43_v13  ;;  %v47_v17 = vsel %vm41_vm1, %v38_v11, %v44_v14 }
   0xb   :  { %v84_v18 = vpack.c.bf16 %v47_v17, %v46_v16  ;;  %v48_v19 = vsel %vm42_vm2, %v39_v12, %v45_v15 }
   0xc   :  { %v76_v20 = vpack.c.bf16 %v48_v19, %v48_v19 }
   0xd   :  { %85 = vst [vmem:[%s127_s3] sm:$0xff] %v84_v18  }
   0xe   :  { %64 = vst [vmem:[%s127_s3 + $0x8] sm:$0xf] %v76_v20 }

// kernel: forward.19
= control target key start
LH: loop header
LB: loop body
LE: loop exit
PB: predicated region body
PF: predicated region fallthrough
CT: control target
= control target key end

     0   :  { %s71_s0 = inlined_call_operand.vmem [shape: bf16[8,128], index: 0, kind: input, shape index: {}]   ;;  %s72_s1 = inlined_call_operand.vmem [shape: f32[1,128], index: 1, kind: input, shape index: {}]   ;;  %s73_s2 = inlined_call_operand.vmem [shape: f32[1,128], index: 2, kind: input, shape index: {}]   ;;  %s74_s3 = inlined_call_operand.vmem [shape: f32[8,128], index: 3, kind: output, shape index: {}]  }
   0x1   :  { %v14_v0 = vld [vmem:[%s71_s0] sm:$0xf] }
   0x2   :  { %v37_v1 = vld [vmem:[%s72_s1] ss:$0 sm:$0xff]  ;;  %v15_v2 = vunpack.c.l.bf16 %v14_v0 }
   0x3   :  { %v38_v3 = vld [vmem:[%s73_s2] ss:$0 sm:$0xff] }
   0x4   :  { %v23_v4 = vmul.f32 %v37_v1, %v15_v2 }
   0x6   :  { %v31_v5 = vadd.f32 %v38_v3, %v23_v4 }
   0x8   :  { %32 = vst [vmem:[%s74_s3] sm:$0xff] %v31_v5 }

// kernel: forward.18
= control target key start
LH: loop header
LB: loop body
LE: loop exit
PB: predicated region body
PF: predicated region fallthrough
CT: control target
= control target key end

     0   :  { %s2399_s0 = inlined_call_operand.vmem [shape: bf16[8,2048], index: 0, kind: input, shape index: {}]   ;;  %s2400_s1 = inlined_call_operand.vmem [shape: bf16[2048,128], index: 1, kind: input, shape index: {}]   ;;  %s2401_s2 = inlined_call_operand.vmem [shape: bf16[8,128], index: 2, kind: output, shape index: {0}]   ;;  %s2402_s3 = inlined_call_operand.hbm [shape: f32[1,2,128], index: 3, kind: output, shape index: {1}]  }
   0x1   :  { %v1798_v0 = vld [vmem:[%s2400_s1 + $0x78] sm:$0xff]   ;;  %v1802_v4 = vld [vmem:[%s2400_s1 + $0x70] sm:$0xff]   ;;  %v1806_v8 = vld [vmem:[%s2400_s1 + $0x68] sm:$0xff]  }
   0x2   :  { %v1799_v1 = vld [vmem:[%s2400_s1 + $0xf8] sm:$0xff]   ;;  %1621 = vmatprep.subr.bf16.mxu0 %v1798_v0  ;;  %v1803_v5 = vld [vmem:[%s2400_s1 + $0xf0] sm:$0xff]   ;;  %v1807_v9 = vld [vmem:[%s2400_s1 + $0xe8] sm:$0xff]  }
   0x3   :  { %v1800_v2 = vld [vmem:[%s2400_s1 + $0x38] sm:$0xff]   ;;  %1643 = vmatprep.subr.bf16.mxu1 %v1799_v1  ;;  %v1804_v6 = vld [vmem:[%s2400_s1 + $0x30] sm:$0xff]   ;;  %v1808_v10 = vld [vmem:[%s2400_s1 + $0x28] sm:$0xff]  }
   0x4   :  { %v1801_v3 = vld [vmem:[%s2400_s1 + $0xb8] sm:$0xff]   ;;  %1622 = vmatpush3.bf16.msra.mxu0 %v1800_v2  ;;  %v1805_v7 = vld [vmem:[%s2400_s1 + $0xb0] sm:$0xff]   ;;  %v1809_v11 = vld [vmem:[%s2400_s1 + $0xa8] sm:$0xff]  }
   0x5   :  { %1644 = vmatpush3.bf16.msra.mxu1 %v1801_v3  ;;  %1623 = vmatprep.subr.bf16.mxu0 %v1802_v4  ;;  %v1810_v12 = vld [vmem:[%s2400_s1 + $0x60] sm:$0xff]   ;;  %v1814_v16 = vld [vmem:[%s2400_s1 + $0x58] sm:$0xff]   ;;  %v1818_v20 = vld [vmem:[%s2400_s1 + $0x50] sm:$0xff]  }
   0x6   :  { %1645 = vmatprep.subr.bf16.mxu1 %v1803_v5  ;;  %v1811_v13 = vld [vmem:[%s2400_s1 + $0xe0] sm:$0xff]   ;;  %v1815_v17 = vld [vmem:[%s2400_s1 + $0xd8] sm:$0xff]   ;;  %v1819_v21 = vld [vmem:[%s2400_s1 + $0xd0] sm:$0xff]  }
   0x7   :  { %v1812_v14 = vld [vmem:[%s2400_s1 + $0x20] sm:$0xff]   ;;  %v1816_v18 = vld [vmem:[%s2400_s1 + $0x18] sm:$0xff]   ;;  %v1820_v22 = vld [vmem:[%s2400_s1 + $0x10] sm:$0xff]  }
   0x8   :  { %1624 = vmatpush3.bf16.msra.mxu0 %v1804_v6  ;;  %v1813_v15 = vld [vmem:[%s2400_s1 + $0xa0] sm:$0xff]   ;;  %v1817_v19 = vld [vmem:[%s2400_s1 + $0x98] sm:$0xff]   ;;  %v1821_v23 = vld [vmem:[%s2400_s1 + $0x90] sm:$0xff]  }
   0x9   :  { %1646 = vmatpush3.bf16.msra.mxu1 %v1805_v7  ;;  %1625 = vmatprep.subr.bf16.mxu0 %v1806_v8  ;;  %v1822_v24 = vld [vmem:[%s2400_s1 + $0x48] sm:$0xff]   ;;  %v1826_v28 = vld [vmem:[%s2400_s1 + $0x40] sm:$0xff]   ;;  %v1834_v38 = vld [vmem:[%s2400_s1 + $0x178] sm:$0xff]  }
   0xa   :  { %1647 = vmatprep.subr.bf16.mxu1 %v1807_v9  ;;  %v1823_v25 = vld [vmem:[%s2400_s1 + $0xc8] sm:$0xff]   ;;  %v1827_v29 = vld [vmem:[%s2400_s1 + $0xc0] sm:$0xff]   ;;  %v1835_v39 = vld [vmem:[%s2400_s1 + $0x1f8] sm:$0xff]  }
   0xb   :  { %v1824_v26 = vld [vmem:[%s2400_s1 + $0x8] sm:$0xff]   ;;  %v1828_v30 = vld [vmem:[%s2400_s1] sm:$0xff]   ;;  %v1836_v40 = vld [vmem:[%s2400_s1 + $0x138] sm:$0xff]  }
   0xc   :  { %1626 = vmatpush3.bf16.msra.mxu0 %v1808_v10  ;;  %v1825_v27 = vld [vmem:[%s2400_s1 + $0x88] sm:$0xff]   ;;  %v1829_v31 = vld [vmem:[%s2400_s1 + $0x80] sm:$0xff]   ;;  %v1837_v41 = vld [vmem:[%s2400_s1 + $0x1b8] sm:$0xff]  }
   0xd   :  { %1648 = vmatpush3.bf16.msra.mxu1 %v1809_v11  ;;  %1627 = vmatprep.subr.bf16.mxu0 %v1810_v12  ;;  %v282_v32 = vld [vmem:[%s2399_s0] sm:$0xff]  ;;  %v283_v33 = vld [vmem:[%s2399_s0 + $0x8] sm:$0xff]  ;;  %v1838_v42 = vld [vmem:[%s2400_s1 + $0x170] sm:$0xff]  }
   0xe   :  { %1649 = vmatprep.subr.bf16.mxu1 %v1811_v13  ;;  %v1477_v34 = vcombine.low %v282_v32, %v282_v32  ;;  %v1478_v35 = vcombine.high %v282_v32, %v282_v32  ;;  %v1479_v36 = vcombine.low %v283_v33, %v283_v33  ;;  %v1480_v37 = vcombine.high %v283_v33, %v283_v33  ;;  %v1839_v43 = vld [vmem:[%s2400_s1 + $0x1f0] sm:$0xff]   ;;  %v1842_v46 = vld [vmem:[%s2400_s1 + $0x168] sm:$0xff]   ;;  %v1846_v50 = vld [vmem:[%s2400_s1 + $0x160] sm:$0xff]  }
   0xf   :  { %v1840_v44 = vld [vmem:[%s2400_s1 + $0x130] sm:$0xff]   ;;  %v1843_v47 = vld [vmem:[%s2400_s1 + $0x1e8] sm:$0xff]   ;;  %v1847_v51 = vld [vmem:[%s2400_s1 + $0x1e0] sm:$0xff]  }
  0x10   :  { %1628 = vmatpush3.bf16.msra.mxu0 %v1812_v14  ;;  %1146 = vmatprep.mubr.bf16.mxu0 %v1478_v35  ;;  %v1841_v45 = vld [vmem:[%s2400_s1 + $0x1b0] sm:$0xff]   ;;  %v1844_v48 = vld [vmem:[%s2400_s1 + $0x128] sm:$0xff]   ;;  %v1848_v52 = vld [vmem:[%s2400_s1 + $0x120] sm:$0xff]  }
  0x11   :  { %1650 = vmatpush3.bf16.msra.mxu1 %v1813_v15  ;;  %1629 = vmatprep.subr.bf16.mxu0 %v1814_v16  ;;  %v1845_v49 = vld [vmem:[%s2400_s1 + $0x1a8] sm:$0xff]   ;;  %v1849_v53 = vld [vmem:[%s2400_s1 + $0x1a0] sm:$0xff]   ;;  %v1850_v54 = vld [vmem:[%s2400_s1 + $0x158] sm:$0xff]  }
  0x12   :  { %1651 = vmatprep.subr.bf16.mxu1 %v1815_v17  ;;  %1186 = vmatprep.mubr.bf16.mxu1 %v1480_v37  ;;  %v1851_v55 = vld [vmem:[%s2400_s1 + $0x1d8] sm:$0xff]   ;;  %v1854_v58 = vld [vmem:[%s2400_s1 + $0x150] sm:$0xff]   ;;  %v1858_v62 = vld [vmem:[%s2400_s1 + $0x148] sm:$0xff]  }
  0x13   :  { %v1852_v56 = vld [vmem:[%s2400_s1 + $0x118] sm:$0xff]   ;;  %v1855_v59 = vld [vmem:[%s2400_s1 + $0x1d0] sm:$0xff]   ;;  %v1859_v63 = vld [vmem:[%s2400_s1 + $0x1c8] sm:$0xff]  }
  0x14   :  { %1630 = vmatpush3.bf16.msra.mxu0 %v1816_v18  ;;  %v1853_v57 = vld [vmem:[%s2400_s1 + $0x198] sm:$0xff]   ;;  %v1856_v60 = vld [vmem:[%s2400_s1 + $0x110] sm:$0xff]   ;;  %v1860_v0 = vld [vmem:[%s2400_s1 + $0x108] sm:$0xff]  }
  0x15   :  { %1652 = vmatpush3.bf16.msra.mxu1 %v1817_v19  ;;  %1631 = vmatprep.subr.bf16.mxu0 %v1818_v20  ;;  %v1857_v61 = vld [vmem:[%s2400_s1 + $0x190] sm:$0xff]   ;;  %v1861_v1 = vld [vmem:[%s2400_s1 + $0x188] sm:$0xff]   ;;  %v1862_v2 = vld [vmem:[%s2400_s1 + $0x140] sm:$0xff]  }
  0x16   :  { %1653 = vmatprep.subr.bf16.mxu1 %v1819_v21  ;;  %v1863_v3 = vld [vmem:[%s2400_s1 + $0x1c0] sm:$0xff]   ;;  %v284_v6 = vld [vmem:[%s2399_s0 + $0x10] sm:$0xff]  ;;  %v285_v9 = vld [vmem:[%s2399_s0 + $0x18] sm:$0xff] }
  0x17   :  { %v1864_v4 = vld [vmem:[%s2400_s1 + $0x100] sm:$0xff]   ;;  %v1481_v7 = vcombine.low %v284_v6, %v284_v6  ;;  %v1482_v8 = vcombine.high %v284_v6, %v284_v6  ;;  %v1483_v10 = vcombine.low %v285_v9, %v285_v9  ;;  %v1484_v11 = vcombine.high %v285_v9, %v285_v9  ;;  %v1870_v12 = vld [vmem:[%s2400_s1 + $0x278] sm:$0xff]   ;;  %v1874_v16 = vld [vmem:[%s2400_s1 + $0x270] sm:$0xff]  }
  0x18   :  { %1632 = vmatpush3.bf16.msra.mxu0 %v1820_v22  ;;  %v1865_v5 = vld [vmem:[%s2400_s1 + $0x180] sm:$0xff]   ;;  %v1871_v13 = vld [vmem:[%s2400_s1 + $0x2f8] sm:$0xff]   ;;  %v1875_v17 = vld [vmem:[%s2400_s1 + $0x2f0] sm:$0xff]  }
  0x19   :  { %1654 = vmatpush3.bf16.msra.mxu1 %v1821_v23  ;;  %1633 = vmatprep.subr.bf16.mxu0 %v1822_v24  ;;  %v1872_v14 = vld [vmem:[%s2400_s1 + $0x238] sm:$0xff]   ;;  %v1876_v18 = vld [vmem:[%s2400_s1 + $0x230] sm:$0xff]   ;;  %v1878_v20 = vld [vmem:[%s2400_s1 + $0x268] sm:$0xff]  }
  0x1a   :  { %1655 = vmatprep.subr.bf16.mxu1 %v1823_v25  ;;  %v1873_v15 = vld [vmem:[%s2400_s1 + $0x2b8] sm:$0xff]   ;;  %v1877_v19 = vld [vmem:[%s2400_s1 + $0x2b0] sm:$0xff]   ;;  %v1879_v21 = vld [vmem:[%s2400_s1 + $0x2e8] sm:$0xff]  }
  0x1b   :  { %v1880_v22 = vld [vmem:[%s2400_s1 + $0x228] sm:$0xff]   ;;  %v1882_v24 = vld [vmem:[%s2400_s1 + $0x260] sm:$0xff]   ;;  %v1890_v32 = vld [vmem:[%s2400_s1 + $0x250] sm:$0xff]  }
  0x1c   :  { %1634 = vmatpush3.bf16.msra.mxu0 %v1824_v26  ;;  %v1881_v23 = vld [vmem:[%s2400_s1 + $0x2a8] sm:$0xff]   ;;  %v1883_v25 = vld [vmem:[%s2400_s1 + $0x2e0] sm:$0xff]   ;;  %v1891_v33 = vld [vmem:[%s2400_s1 + $0x2d0] sm:$0xff]  }
  0x1d   :  { %1656 = vmatpush3.bf16.msra.mxu1 %v1825_v27  ;;  %1635 = vmatprep.subr.bf16.mxu0 %v1826_v28  ;;  %v1884_v26 = vld [vmem:[%s2400_s1 + $0x220] sm:$0xff]   ;;  %v1886_v28 = vld [vmem:[%s2400_s1 + $0x258] sm:$0xff]   ;;  %v1893_v35 = vld [vmem:[%s2400_s1 + $0x290] sm:$0xff]  }
  0x1e   :  { %1657 = vmatprep.subr.bf16.mxu1 %v1827_v29  ;;  %v1885_v27 = vld [vmem:[%s2400_s1 + $0x2a0] sm:$0xff]   ;;  %v1887_v29 = vld [vmem:[%s2400_s1 + $0x2d8] sm:$0xff]   ;;  %v1895_v37 = vld [vmem:[%s2400_s1 + $0x2c8] sm:$0xff]  }
  0x1f   :  { %v1926_v6 = vld [vmem:[%s2400_s1 + $0x350] sm:$0xff]  }
  0x20   :  { %1636 = vmatpush3.bf16.msra.mxu0 %v1828_v30  ;;  %v1888_v30 = vld [vmem:[%s2400_s1 + $0x218] sm:$0xff]   ;;  %v1929_v9 = vld [vmem:[%s2400_s1 + $0x390] sm:$0xff]  }
  0x21   :  { %1658 = vmatpush3.bf16.msra.mxu1 %v1829_v31  ;;  %1665 = vmatprep.subr.bf16.mxu0 %v1834_v38  ;;  %v1889_v31 = vld [vmem:[%s2400_s1 + $0x298] sm:$0xff]   ;;  %v1896_v38 = vld [vmem:[%s2400_s1 + $0x208] sm:$0xff]  }
  0x22   :  { %1687 = vmatprep.subr.bf16.mxu1 %v1835_v39  ;;  %v1897_v39 = vld [vmem:[%s2400_s1 + $0x288] sm:$0xff]  }
  0x23   :  { %1147 = vmatmul.mubr.bf16.vlgmr.msra.gmra.mxu0 %v1477_v34  ;;  %v1892_v34 = vld [vmem:[%s2400_s1 + $0x210] sm:$0xff]  }
  0x24   :  { %1187 = vmatmul.mubr.bf16.vlgmr.msra.gmra.mxu1 %v1479_v36  ;;  %1666 = vmatpush3.bf16.msra.mxu0 %v1836_v40  ;;  %v1894_v36 = vld [vmem:[%s2400_s1 + $0x248] sm:$0xff]   ;;  %v1898_v40 = vld [vmem:[%s2400_s1 + $0x240] sm:$0xff]  }
  0x25   :  { %1688 = vmatpush3.bf16.msra.mxu1 %v1837_v41  ;;  %1667 = vmatprep.subr.bf16.mxu0 %v1838_v42  ;;  %v1899_v41 = vld [vmem:[%s2400_s1 + $0x2c0] sm:$0xff]  }
  0x26   :  { %1689 = vmatprep.subr.bf16.mxu1 %v1839_v43  ;;  %1226 = vmatprep.mubr.bf16.mxu0 %v1482_v8  ;;  %v1900_v42 = vld [vmem:[%s2400_s1 + $0x200] sm:$0xff]   ;;  %v1928_v8 = vld [vmem:[%s2400_s1 + $0x310] sm:$0xff]  }
  0x27   :  { %1266 = vmatprep.mubr.bf16.mxu1 %v1484_v11  ;;  %v1901_v43 = vld [vmem:[%s2400_s1 + $0x280] sm:$0xff]   ;;  %v1931_v11 = vld [vmem:[%s2400_s1 + $0x3c8] sm:$0xff]  }
  0x28   :  { %1668 = vmatpush3.bf16.msra.mxu0 %v1840_v44  ;;  %v286_v44 = vld [vmem:[%s2399_s0 + $0x20] sm:$0xff] }
  0x29   :  { %1690 = vmatpush3.bf16.msra.mxu1 %v1841_v45  ;;  %1669 = vmatprep.subr.bf16.mxu0 %v1842_v46  ;;  %v287_v45 = vld [vmem:[%s2399_s0 + $0x28] sm:$0xff]  ;;  %v1485_v46 = vcombine.low %v286_v44, %v286_v44 }
  0x2a   :  { %1691 = vmatprep.subr.bf16.mxu1 %v1843_v47  ;;  %v1486_v47 = vcombine.high %v286_v44, %v286_v44 }
  0x2c   :  { %1670 = vmatpush3.bf16.msra.mxu0 %v1844_v48  ;;  %v1487_v48 = vcombine.low %v287_v45, %v287_v45 }
  0x2d   :  { %1692 = vmatpush3.bf16.msra.mxu1 %v1845_v49  ;;  %1671 = vmatprep.subr.bf16.mxu0 %v1846_v50  ;;  %v1488_v49 = vcombine.high %v287_v45, %v287_v45  ;;  %v1906_v50 = vld [vmem:[%s2400_s1 + $0x378] sm:$0xff]  }
  0x2e   :  { %1693 = vmatprep.subr.bf16.mxu1 %v1847_v51  ;;  %v1907_v51 = vld [vmem:[%s2400_s1 + $0x3f8] sm:$0xff]  }
  0x30   :  { %1672 = vmatpush3.bf16.msra.mxu0 %v1848_v52  ;;  %v1908_v52 = vld [vmem:[%s2400_s1 + $0x338] sm:$0xff]  }
  0x31   :  { %1694 = vmatpush3.bf16.msra.mxu1 %v1849_v53  ;;  %1673 = vmatprep.subr.bf16.mxu0 %v1850_v54  ;;  %v1909_v53 = vld [vmem:[%s2400_s1 + $0x3b8] sm:$0xff]   ;;  %v1910_v54 = vld [vmem:[%s2400_s1 + $0x370] sm:$0xff]  }
  0x32   :  { %1695 = vmatprep.subr.bf16.mxu1 %v1851_v55  ;;  %v1911_v55 = vld [vmem:[%s2400_s1 + $0x3f0] sm:$0xff]  }
  0x34   :  { %1674 = vmatpush3.bf16.msra.mxu0 %v1852_v56  ;;  %v1912_v56 = vld [vmem:[%s2400_s1 + $0x330] sm:$0xff]  }
  0x35   :  { %1696 = vmatpush3.bf16.msra.mxu1 %v1853_v57  ;;  %1675 = vmatprep.subr.bf16.mxu0 %v1854_v58  ;;  %v1913_v57 = vld [vmem:[%s2400_s1 + $0x3b0] sm:$0xff]   ;;  %v1914_v58 = vld [vmem:[%s2400_s1 + $0x368] sm:$0xff]  }
  0x36   :  { %1697 = vmatprep.subr.bf16.mxu1 %v1855_v59  ;;  %v1915_v59 = vld [vmem:[%s2400_s1 + $0x3e8] sm:$0xff]  }
  0x38   :  { %1676 = vmatpush3.bf16.msra.mxu0 %v1856_v60  ;;  %v1916_v60 = vld [vmem:[%s2400_s1 + $0x328] sm:$0xff]  }
  0x39   :  { %1698 = vmatpush3.bf16.msra.mxu1 %v1857_v61  ;;  %1677 = vmatprep.subr.bf16.mxu0 %v1858_v62  ;;  %v1917_v61 = vld [vmem:[%s2400_s1 + $0x3a8] sm:$0xff]   ;;  %v1918_v62 = vld [vmem:[%s2400_s1 + $0x360] sm:$0xff]  }
  0x3a   :  { %1699 = vmatprep.subr.bf16.mxu1 %v1859_v63  ;;  %v1919_v63 = vld [vmem:[%s2400_s1 + $0x3e0] sm:$0xff]  }
  0x3c   :  { %1678 = vmatpush3.bf16.msra.mxu0 %v1860_v0  ;;  %v1920_v0 = vld [vmem:[%s2400_s1 + $0x320] sm:$0xff]  }
  0x3d   :  { %1700 = vmatpush3.bf16.msra.mxu1 %v1861_v1  ;;  %1679 = vmatprep.subr.bf16.mxu0 %v1862_v2  ;;  %v1921_v1 = vld [vmem:[%s2400_s1 + $0x3a0] sm:$0xff]   ;;  %v1922_v2 = vld [vmem:[%s2400_s1 + $0x358] sm:$0xff]  }
  0x3e   :  { %1701 = vmatprep.subr.bf16.mxu1 %v1863_v3  ;;  %v1923_v3 = vld [vmem:[%s2400_s1 + $0x3d8] sm:$0xff]  }
  0x40   :  { %1680 = vmatpush3.bf16.msra.mxu0 %v1864_v4  ;;  %v1924_v4 = vld [vmem:[%s2400_s1 + $0x318] sm:$0xff]  }
  0x41   :  { %1702 = vmatpush3.bf16.msra.mxu1 %v1865_v5  ;;  %1709 = vmatprep.subr.bf16.mxu0 %v1870_v12  ;;  %v1925_v5 = vld [vmem:[%s2400_s1 + $0x398] sm:$0xff]   ;;  %v1932_v12 = vld [vmem:[%s2400_s1 + $0x308] sm:$0xff]  }
  0x42   :  { %1731 = vmatprep.subr.bf16.mxu1 %v1871_v13  ;;  %v1933_v13 = vld [vmem:[%s2400_s1 + $0x388] sm:$0xff]  }
  0x43   :  { %1227 = vmatmul.mubr.bf16.vlgmr.msra.gmra.mxu0 %v1481_v7  ;;  %v1927_v7 = vld [vmem:[%s2400_s1 + $0x3d0] sm:$0xff]  }
  0x44   :  { %1267 = vmatmul.mubr.bf16.vlgmr.msra.gmra.mxu1 %v1483_v10  ;;  %1710 = vmatpush3.bf16.msra.mxu0 %v1872_v14  ;;  %v1930_v10 = vld [vmem:[%s2400_s1 + $0x348] sm:$0xff]   ;;  %v1934_v14 = vld [vmem:[%s2400_s1 + $0x340] sm:$0xff]  }
  0x45   :  { %1732 = vmatpush3.bf16.msra.mxu1 %v1873_v15  ;;  %1711 = vmatprep.subr.bf16.mxu0 %v1874_v16  ;;  %v1935_v15 = vld [vmem:[%s2400_s1 + $0x3c0] sm:$0xff]  }
  0x46   :  { %1733 = vmatprep.subr.bf16.mxu1 %v1875_v17  ;;  %1306 = vmatprep.mubr.bf16.mxu0 %v1486_v47  ;;  %v1936_v16 = vld [vmem:[%s2400_s1 + $0x300] sm:$0xff]  }
  0x47   :  { %1346 = vmatprep.mubr.bf16.mxu1 %v1488_v49  ;;  %v1937_v17 = vld [vmem:[%s2400_s1 + $0x380] sm:$0xff]  }
  0x48   :  { %1712 = vmatpush3.bf16.msra.mxu0 %v1876_v18  ;;  %v288_v18 = vld [vmem:[%s2399_s0 + $0x30] sm:$0xff] }
  0x49   :  { %1734 = vmatpush3.bf16.msra.mxu1 %v1877_v19  ;;  %1713 = vmatprep.subr.bf16.mxu0 %v1878_v20  ;;  %v289_v19 = vld [vmem:[%s2399_s0 + $0x38] sm:$0xff] }
  0x4a   :  { %1735 = vmatprep.subr.bf16.mxu1 %v1879_v21 }
  0x4c   :  { %1714 = vmatpush3.bf16.msra.mxu0 %v1880_v22 }
  0x4d   :  { %1736 = vmatpush3.bf16.msra.mxu1 %v1881_v23  ;;  %1715 = vmatprep.subr.bf16.mxu0 %v1882_v24 }
  0x4e   :  { %1737 = vmatprep.subr.bf16.mxu1 %v1883_v25 }
  0x50   :  { %1716 = vmatpush3.bf16.msra.mxu0 %v1884_v26 }
  0x51   :  { %1738 = vmatpush3.bf16.msra.mxu1 %v1885_v27  ;;  %1717 = vmatprep.subr.bf16.mxu0 %v1886_v28 }
  0x52   :  { %1739 = vmatprep.subr.bf16.mxu1 %v1887_v29 }
  0x54   :  { %1718 = vmatpush3.bf16.msra.mxu0 %v1888_v30 }
  0x55   :  { %1740 = vmatpush3.bf16.msra.mxu1 %v1889_v31  ;;  %1719 = vmatprep.subr.bf16.mxu0 %v1890_v32 }
  0x56   :  { %1741 = vmatprep.subr.bf16.mxu1 %v1891_v33 }
  0x58   :  { %1720 = vmatpush3.bf16.msra.mxu0 %v1892_v34 }
  0x59   :  { %1742 = vmatpush3.bf16.msra.mxu1 %v1893_v35  ;;  %1721 = vmatprep.subr.bf16.mxu0 %v1894_v36 }
  0x5a   :  { %1743 = vmatprep.subr.bf16.mxu1 %v1895_v37 }
  0x5c   :  { %1722 = vmatpush3.bf16.msra.mxu0 %v1896_v38 }
  0x5d   :  { %1744 = vmatpush3.bf16.msra.mxu1 %v1897_v39  ;;  %1723 = vmatprep.subr.bf16.mxu0 %v1898_v40 }
  0x5e   :  { %1745 = vmatprep.subr.bf16.mxu1 %v1899_v41 }
  0x60   :  { %1724 = vmatpush3.bf16.msra.mxu0 %v1900_v42 }
  0x61   :  { %1746 = vmatpush3.bf16.msra.mxu1 %v1901_v43  ;;  %1753 = vmatprep.subr.bf16.mxu0 %v1906_v50 }
  0x62   :  { %1775 = vmatprep.subr.bf16.mxu1 %v1907_v51 }
  0x63   :  { %1307 = vmatmul.mubr.bf16.vlgmr.msra.gmra.mxu0 %v1485_v46 }
  0x64   :  { %1347 = vmatmul.mubr.bf16.vlgmr.msra.gmra.mxu1 %v1487_v48  ;;  %1754 = vmatpush3.bf16.msra.mxu0 %v1908_v52 }
  0x65   :  { %1776 = vmatpush3.bf16.msra.mxu1 %v1909_v53  ;;  %1755 = vmatprep.subr.bf16.mxu0 %v1910_v54 }
  0x66   :  { %1777 = vmatprep.subr.bf16.mxu1 %v1911_v55 }
  0x68   :  { %1756 = vmatpush3.bf16.msra.mxu0 %v1912_v56 }
  0x69   :  { %1778 = vmatpush3.bf16.msra.mxu1 %v1913_v57  ;;  %1757 = vmatprep.subr.bf16.mxu0 %v1914_v58 }
  0x6a   :  { %1779 = vmatprep.subr.bf16.mxu1 %v1915_v59 }
  0x6c   :  { %1758 = vmatpush3.bf16.msra.mxu0 %v1916_v60 }
  0x6d   :  { %1780 = vmatpush3.bf16.msra.mxu1 %v1917_v61  ;;  %1759 = vmatprep.subr.bf16.mxu0 %v1918_v62 }
  0x6e   :  { %1781 = vmatprep.subr.bf16.mxu1 %v1919_v63 }
  0x70   :  { %1760 = vmatpush3.bf16.msra.mxu0 %v1920_v0 }
  0x71   :  { %1782 = vmatpush3.bf16.msra.mxu1 %v1921_v1  ;;  %1761 = vmatprep.subr.bf16.mxu0 %v1922_v2 }
  0x72   :  { %1783 = vmatprep.subr.bf16.mxu1 %v1923_v3 }
  0x74   :  { %1762 = vmatpush3.bf16.msra.mxu0 %v1924_v4 }
  0x75   :  { %1784 = vmatpush3.bf16.msra.mxu1 %v1925_v5  ;;  %1763 = vmatprep.subr.bf16.mxu0 %v1926_v6 }
  0x76   :  { %1785 = vmatprep.subr.bf16.mxu1 %v1927_v7 }
  0x78   :  { %1764 = vmatpush3.bf16.msra.mxu0 %v1928_v8 }
  0x79   :  { %1786 = vmatpush3.bf16.msra.mxu1 %v1929_v9  ;;  %1765 = vmatprep.subr.bf16.mxu0 %v1930_v10 }
  0x7a   :  { %1787 = vmatprep.subr.bf16.mxu1 %v1931_v11 }
  0x7c   :  { %1766 = vmatpush3.bf16.msra.mxu0 %v1932_v12 }
  0x7d   :  { %1788 = vmatpush3.bf16.msra.mxu1 %v1933_v13  ;;  %1767 = vmatprep.subr.bf16.mxu0 %v1934_v14 }
  0x7e   :  { %1789 = vmatprep.subr.bf16.mxu1 %v1935_v15 }
  0x7f   :  { %9 = vsyncpa [#allocation4], 0  ;;  %v1489_v20 = vcombine.low %v288_v18, %v288_v18  ;;  %v1490_v21 = vcombine.high %v288_v18, %v288_v18  ;;  %v1491_v22 = vcombine.low %v289_v19, %v289_v19  ;;  %v1492_v23 = vcombine.high %v289_v19, %v289_v19  ;;  %s1964_s14 = smov [#allocation3]  }
  0x80   :  { %1768 = vmatpush3.bf16.msra.mxu0 %v1936_v16  ;;  %s1465_s15 = sshll.u32 %s1964_s14, 4  ;;  %s1466_s15 = int_to_ptr.vmem [resolvable:$true] %s1465_s15 }
  0x81   :  { %1790 = vmatpush3.bf16.msra.mxu1 %v1937_v17  ;;  %1386 = vmatprep.mubr.bf16.mxu0 %v1490_v21  ;;  %s1942_s16 = scalar_lea.vmem %s1466_s15, 32  ;;  %p1947_p1 = scmp.lt.s32.totalorder %s1466_s15, %s1466_s15 }
  0x82   :  { %1426 = vmatprep.mubr.bf16.mxu1 %v1492_v23  ;;  %p1943_p0 = scmp.ne.s32.totalorder %s1466_s15, %s1942_s16  ;;  %p1948_p2 = scmp.lt.s32.totalorder %s1942_s16, %s1942_s16 }
  0x83   :  { %1387 = vmatmul.mubr.bf16.vlgmr.msra.gmra.mxu0 %v1489_v20 }
  0x84   :  { %1427 = vmatmul.mubr.bf16.vlgmr.msra.gmra.mxu1 %v1491_v22  ;;  %p1949_p3 = por %p1948_p2, %p1947_p1 }
  0x86   :  { %p1950_p4 = pnand %p1949_p3, %p1943_p0 }
  0xe3   :  { %v1637_v24 = vpop.f32.mrf.mxu0 }
  0xe4   :  { %v1659_v25 = vpop.f32.mrf.mxu1 }
  0xe5   :  { %v1638_v26 = vpop.f32.mrf.mxu0 }
  0xe6   :  { %v1660_v27 = vpop.f32.mrf.mxu1  ;;  %v1639_v28 = vadd.f32 %v1638_v26, %v1637_v24 }
  0xe7   :  { %v1661_v29 = vadd.f32 %v1660_v27, %v1659_v25  ;;  %v1640_v30 = vpop.f32.mrf.mxu0 }
  0xe8   :  { %v1662_v31 = vpop.f32.mrf.mxu1 }
  0xe9   :  { %v1189_v32 = vadd.f32 %v1661_v29, %v1639_v28  ;;  %v1641_v33 = vpop.f32.mrf.mxu0 }
  0xea   :  { %v1663_v34 = vpop.f32.mrf.mxu1 }
 0x103   :  { %v1681_v35 = vpop.f32.mrf.mxu0 }
 0x104   :  { %v1703_v36 = vpop.f32.mrf.mxu1 }
 0x105   :  { %v1682_v37 = vpop.f32.mrf.mxu0 }
 0x106   :  { %v1704_v38 = vpop.f32.mrf.mxu1  ;;  %v1683_v51 = vadd.f32 %v1682_v37, %v1681_v35 }
 0x107   :  { %v1684_v39 = vpop.f32.mrf.mxu0  ;;  %v1705_v53 = vadd.f32 %v1704_v38, %v1703_v36 }
 0x108   :  { %v1706_v40 = vpop.f32.mrf.mxu1  ;;  %v1229_v52 = vadd.f32 %v1683_v51, %v1189_v32 }
 0x109   :  { %v1685_v41 = vpop.f32.mrf.mxu0 }
 0x10a   :  { %v1707_v42 = vpop.f32.mrf.mxu1  ;;  %v1269_v55 = vadd.f32 %v1705_v53, %v1229_v52 }
 0x123   :  { %v1725_v43 = vpop.f32.mrf.mxu0 }
 0x124   :  { %v1747_v44 = vpop.f32.mrf.mxu1 }
 0x125   :  { %v1726_v45 = vpop.f32.mrf.mxu0 }
 0x126   :  { %v1748_v46 = vpop.f32.mrf.mxu1  ;;  %v1727_v54 = vadd.f32 %v1726_v45, %v1725_v43 }
 0x127   :  { %v1728_v47 = vpop.f32.mrf.mxu0  ;;  %v1749_v57 = vadd.f32 %v1748_v46, %v1747_v44 }
 0x128   :  { %v1750_v48 = vpop.f32.mrf.mxu1  ;;  %v1309_v56 = vadd.f32 %v1727_v54, %v1269_v55 }
 0x129   :  { %v1729_v49 = vpop.f32.mrf.mxu0 }
 0x12a   :  { %v1751_v50 = vpop.f32.mrf.mxu1  ;;  %v1349_v61 = vadd.f32 %v1749_v57, %v1309_v56 }
 0x143   :  { %v1769_v58 = vpop.f32.mrf.mxu0 }
 0x144   :  { %v1791_v59 = vpop.f32.mrf.mxu1 }
 0x145   :  { %v1770_v60 = vpop.f32.mrf.mxu0 }
 0x146   :  { %v1771_v62 = vadd.f32 %v1770_v60, %v1769_v58  ;;  %v1792_v63 = vpop.f32.mrf.mxu1 }
 0x147   :  { %v1772_v0 = vpop.f32.mrf.mxu0  ;;  %v1793_v2 = vadd.f32 %v1792_v63, %v1791_v59 }
 0x148   :  { %v1389_v1 = vadd.f32 %v1771_v62, %v1349_v61  ;;  %v1794_v3 = vpop.f32.mrf.mxu1 }
 0x149   :  { %v1773_v4 = vpop.f32.mrf.mxu0 }
 0x14a   :  { %v1429_v5 = vadd.f32 %v1793_v2, %v1389_v1  ;;  %v1795_v6 = vpop.f32.mrf.mxu1 }
 0x14c   :  { %v1440_v7 = vpack.c.bf16 %v1429_v5, %v1429_v5  ;;  %v1442_v8 = vrot.slane %v1429_v5, 4  ;;  %v1449_v9 = vmul.f32 %v1429_v5, %v1429_v5 }
 0x14e   :  { %1441 = vst [vmem:[%s2401_s2] sm:$0xf] %v1440_v7  ;;  %v1443_v10 = vadd.f32 %v1442_v8, %v1429_v5  ;;  %v1450_v11 = vrot.slane %v1449_v9, 4 }
 0x150   :  { %v1444_v12 = vrot.slane %v1443_v10, 2  ;;  %v1451_v13 = vadd.f32 %v1450_v11, %v1449_v9 }
 0x152   :  { %v1445_v14 = vadd.f32 %v1444_v12, %v1443_v10  ;;  %v1452_v15 = vrot.slane %v1451_v13, 2 }
 0x154   :  { %v1446_v16 = vrot.slane %v1445_v14, 1  ;;  %v1453_v17 = vadd.f32 %v1452_v15, %v1451_v13 }
 0x156   :  { %v1447_v18 = vadd.f32 %v1446_v16, %v1445_v14  ;;  %v1454_v19 = vrot.slane %v1453_v17, 1 }
 0x158   :  { %1448 = vst [vmem:[#allocation3] sm:$0x1] %v1447_v18  ;;  %v1455_v20 = vadd.f32 %v1454_v19, %v1453_v17 }
 0x15a   :  { %1456 = vst [vmem:[#allocation3 + $0x1] sm:$0x1] %v1455_v20 }
 0x15b   :  { %1953 = shalt.err (!%p1950_p4)
}
 0x15c   :  { %1468 = dma.vmem_to_hbm [thread:$0]  %s1466_s15, 32, %s2402_s3, [#allocation4]  }
 0x15d   :  { %1962 = dma.done.wait [#allocation4], 32  }
 0x15e   :  { %1963 = vsyncadd [#allocation4], 4294967264 }
 0x15f   :  { %1474 = vsyncpa [#allocation4], 1 }

</bundles_post_ra>
